<compile_context>
chip_gen: v7x
topology: tpu7x:2x2x1
jax: 0.10.0
libtpu: 0.0.40
codegen_flags: <defaults>
</compile_context>

<pallas_src>
import functools

import jax
import jax.numpy as jnp
from jax.experimental import pallas as pl
from jax.experimental.pallas import tpu as pltpu

HIDDEN_DIM = 500          # fixed in NASH_S.__init__
LANE = 128
HP = 512                  # hidden padded to a lane multiple (500 -> 512)


def _round_up(n, m):
    return (n + m - 1) // m * m


# ----------------------------------------------------------------------------
# Kernel
# ----------------------------------------------------------------------------
def _nash_s_kernel(V,
                   x_ref, w1_ref, b1_ref, w2_ref, b2_ref,
                   wmu_ref, bmu_ref, wdp_ref, bdp_ref,
                   prob_ref, mu_ref, score_ref,
                   acc_ref):
    k = pl.program_id(1)

    @pl.when(k == 0)
    def _():
        acc_ref[...] = jnp.zeros_like(acc_ref)

    # Streamed K-slab of the encoder's first matmul: x[:, k] @ W1[k, :].
    # x arrives f32 from HBM and is cast to bf16 on the VPU (hidden under the
    # DMA); accumulation stays f32 in the VMEM scratch.
    acc_ref[...] += jnp.dot(x_ref[...].astype(w1_ref.dtype), w1_ref[...],
                            preferred_element_type=jnp.float32)

    @pl.when(k == pl.num_programs(1) - 1)
    def _():
        mm = w2_ref.dtype   # bf16 MXU operand dtype

        # encoder tail: +b1, ReLU, Linear(Hp,Hp), ReLU   (Dropout p=0 -> id)
        h = jnp.maximum(acc_ref[...] + b1_ref[...], 0.0)
        h = jnp.dot(h.astype(mm), w2_ref[...],
                    preferred_element_type=jnp.float32)
        h = jnp.maximum(h + b2_ref[...], 0.0)

        # h_to_mu: Linear(Hp, Lp) -> Sigmoid (approx reciprocal uses the EUP)
        pre_mu = jnp.dot(h.astype(mm), wmu_ref[...],
                         preferred_element_type=jnp.float32) + bmu_ref[...]
        mu = pl.reciprocal(1.0 + jnp.exp(-pre_mu), approx=True)
        mu_ref[...] = mu

        # deterministic binarization; {0,1} is exact in bf16.
        z = jnp.where(mu > 0.5, 1.0, 0.0).astype(wdp_ref.dtype)

        # fused decoder + pred head: one matmul against [Wdec | Wpred]
        full = jnp.dot(z, wdp_ref[...],
                       preferred_element_type=jnp.float32) + bdp_ref[...]
        logits = full[:, :V]
        m = jnp.max(logits, axis=-1, keepdims=True)
        lse = m + jnp.log(jnp.sum(jnp.exp(logits - m), axis=-1, keepdims=True))
        prob_ref[...] = logits - lse          # LogSoftmax(dim=1)
        score_ref[...] = full[:, V:]          # pred scores (lane-padded)


# ----------------------------------------------------------------------------
# Parameter packing (padding / fusion / dtype cast) — layout plumbing only
# ----------------------------------------------------------------------------
def pack_params(p, matmul_dtype=jnp.bfloat16):
    V = p["w1"].shape[0]
    L = p["wmu"].shape[1]
    C = p["wpred"].shape[1]
    Lp = _round_up(L, LANE)
    Cp = _round_up(C, LANE)

    def pad2(a, r, c):
        return jnp.pad(a, ((0, r - a.shape[0]), (0, c - a.shape[1])))

    packed = {
        "w1": pad2(p["w1"], V, HP).astype(matmul_dtype),
        "b1": pad2(p["b1"], 1, HP).astype(jnp.float32),
        "w2": pad2(p["w2"], HP, HP).astype(matmul_dtype),
        "b2": pad2(p["b2"], 1, HP).astype(jnp.float32),
        "wmu": pad2(p["wmu"], HP, Lp).astype(matmul_dtype),
        "bmu": pad2(p["bmu"], 1, Lp).astype(jnp.float32),
        "wdp": jnp.concatenate([pad2(p["wdec"], Lp, V),
                                pad2(p["wpred"], Lp, Cp)],
                               axis=1).astype(matmul_dtype),
        "bdp": jnp.concatenate([p["bdec"],
                                pad2(p["bpred"], 1, Cp)],
                               axis=1).astype(jnp.float32),
    }
    meta = dict(V=V, L=L, C=C, Lp=Lp, Cp=Cp)
    return packed, meta


def _default_vmem_limit():
    # Generation-aware scoped-VMEM limit: 75% of physical capacity
    # (96 MiB on v5e/v6e, 48 MiB on v7x), falling back to 48 MiB.
    try:
        cap = int(pltpu.get_tpu_info().vmem_capacity_bytes)
        return max(32 * 1024 * 1024, (cap * 3) // 4)
    except Exception:
        return 48 * 1024 * 1024


# ----------------------------------------------------------------------------
# Wrapper
# ----------------------------------------------------------------------------
def nash_s_forward(x, packed, meta, *, tm=None, tk=512):
    B, V = x.shape
    L, C, Lp, Cp = meta["L"], meta["C"], meta["Lp"], meta["Cp"]
    assert V == meta["V"]
    assert V % LANE == 0, "vocab must be an unpadded lane multiple"

    if tm is None:
        # Fill MXU rows; on v7x one would cap tm so nb >= 2 keeps both TCs busy.
        tm = min(B, 128)
    tk = min(tk, V)
    assert B % tm == 0 and V % tk == 0, "demo shapes must tile evenly"

    nb, nk = B // tm, V // tk

    args = (x, packed["w1"], packed["b1"], packed["w2"], packed["b2"],
            packed["wmu"], packed["bmu"], packed["wdp"], packed["bdp"])

    # Deeper pipeline on the streamed slabs so DMAs keep queueing through the
    # long k==last epilogue; constant-index weights are single-buffered.
    stream_mode = pl.Buffered(3 if nk >= 3 else 2)
    const_mode = pl.Buffered(1)

    in_specs = [
        pl.BlockSpec((tm, tk), lambda i, k: (i, k),
                     pipeline_mode=stream_mode),                 # x  (f32)
        pl.BlockSpec((tk, HP), lambda i, k: (k, 0),
                     pipeline_mode=stream_mode),                 # W1 (bf16)
        pl.BlockSpec((1, HP), lambda i, k: (0, 0),
                     pipeline_mode=const_mode),                  # b1
        pl.BlockSpec((HP, HP), lambda i, k: (0, 0),
                     pipeline_mode=const_mode),                  # W2 (bf16)
        pl.BlockSpec((1, HP), lambda i, k: (0, 0),
                     pipeline_mode=const_mode),                  # b2
        pl.BlockSpec((HP, Lp), lambda i, k: (0, 0),
                     pipeline_mode=const_mode),                  # Wmu (bf16)
        pl.BlockSpec((1, Lp), lambda i, k: (0, 0),
                     pipeline_mode=const_mode),                  # bmu
        pl.BlockSpec((Lp, V + Cp), lambda i, k: (0, 0),
                     pipeline_mode=const_mode),                  # [Wdec|Wpred]
        pl.BlockSpec((1, V + Cp), lambda i, k: (0, 0),
                     pipeline_mode=const_mode),                  # [bdec|bpred]
    ]
    out_specs = [
        pl.BlockSpec((tm, V), lambda i, k: (i, 0)),              # log-probs
        pl.BlockSpec((tm, Lp), lambda i, k: (i, 0)),             # mu (padded)
        pl.BlockSpec((tm, Cp), lambda i, k: (i, 0)),             # score (padded)
    ]

    flops = 2 * B * (V * HP + HP * HP + HP * Lp + Lp * (V + Cp))
    transcendentals = B * (Lp + V + 1)
    bytes_accessed = (
        B * V * 4                                    # x, streamed once
        + nb * V * HP * 2                            # W1, re-streamed per batch tile
        + HP * HP * 2 + HP * Lp * 2                  # W2, Wmu
        + Lp * (V + Cp) * 2                          # [Wdec|Wpred]
        + (2 * HP + Lp + V + Cp) * 4                 # biases
        + B * (V + Lp + Cp) * 4)                     # outputs

    prob, mu_p, score_p = pl.pallas_call(
        functools.partial(_nash_s_kernel, V),
        out_shape=(jax.ShapeDtypeStruct((B, V), jnp.float32),
                   jax.ShapeDtypeStruct((B, Lp), jnp.float32),
                   jax.ShapeDtypeStruct((B, Cp), jnp.float32)),
        grid_spec=pltpu.PrefetchScalarGridSpec(
            num_scalar_prefetch=0,
            grid=(nb, nk),
            in_specs=in_specs,
            out_specs=out_specs,
            scratch_shapes=[pltpu.VMEM((tm, HP), jnp.float32)]),
        compiler_params=pltpu.CompilerParams(
            dimension_semantics=("parallel", "arbitrary"),
            vmem_limit_bytes=_default_vmem_limit()),
        cost_estimate=pl.CostEstimate(flops=flops,
                                      transcendentals=transcendentals,
                                      bytes_accessed=bytes_accessed),
    )(*args)

    return prob, mu_p[:, :L], score_p[:, :C]


# ----------------------------------------------------------------------------
# Init + pure-JAX reference
# ----------------------------------------------------------------------------
def init_params(key, vocab_size, latent_dim, num_classes):
    ks = jax.random.split(key, 6)

    def lin(k, fan_in, fan_out, scale_mult=1.0):
        scale = scale_mult / jnp.sqrt(jnp.float32(fan_in))
        kw, kb = jax.random.split(k)
        w = jax.random.uniform(kw, (fan_in, fan_out), jnp.float32, -scale, scale)
        b = jax.random.uniform(kb, (1, fan_out), jnp.float32, -scale, scale)
        return w, b

    p = {}
    p["w1"], p["b1"] = lin(ks[0], vocab_size, HIDDEN_DIM)
    p["w2"], p["b2"] = lin(ks[1], HIDDEN_DIM, HIDDEN_DIM)
    # Larger scale on h_to_mu spreads mu away from the 0.5 binarization
    # threshold so rounding differences rarely flip z bits in the demo.
    p["wmu"], p["bmu"] = lin(ks[2], HIDDEN_DIM, latent_dim, scale_mult=4.0)
    p["wdec"], p["bdec"] = lin(ks[3], latent_dim, vocab_size)
    p["wpred"], p["bpred"] = lin(ks[4], latent_dim, num_classes)
    return p


def nash_s_reference(x, p, matmul_dtype=jnp.bfloat16, z_override=None):
    """Pure-JAX reference using the same bf16-quantized MXU operands."""
    hi = jax.lax.Precision.HIGHEST
    f32 = jnp.float32
    q = lambda a: a.astype(matmul_dtype).astype(f32)

    h = jnp.maximum(jnp.dot(q(x), q(p["w1"]), precision=hi) + p["b1"], 0.0)
    h = jnp.maximum(jnp.dot(q(h), q(p["w2"]), precision=hi) + p["b2"], 0.0)
    mu = jax.nn.sigmoid(jnp.dot(q(h), q(p["wmu"]), precision=hi) + p["bmu"])
    z = jnp.where(mu > 0.5, 1.0, 0.0) if z_override is None else z_override
    logits = jnp.dot(q(z), q(p["wdec"]), precision=hi) + p["bdec"]
    prob_w = jax.nn.log_softmax(logits, axis=1)
    score_c = jnp.dot(q(z), q(p["wpred"]), precision=hi) + p["bpred"]
    return prob_w, mu, score_c


# ----------------------------------------------------------------------------
if __name__ == "__main__":
    # batch, vocabSize, latentDim, num_classes (small demo shapes)
    B, V, L, C = 32, 1024, 32, 8

    key = jax.random.PRNGKey(0)
    k_x, k_p = jax.random.split(key)
    # doc_mat: bag-of-words style integer counts (exact in bf16)
    x = jnp.floor(jax.random.uniform(k_x, (B, V), jnp.float32, 0.0, 4.0))
    params = init_params(k_p, V, L, C)

    packed, meta = pack_params(params)
    prob_w, mu, score_c = nash_s_forward(x, packed, meta)   # tm=B=32, tk=512
    jax.block_until_ready((prob_w, mu, score_c))

    assert prob_w.shape == (B, V) and mu.shape == (B, L) and score_c.shape == (B, C)

    # Layered correctness check against the pure-JAX reference.
    ref_prob, ref_mu, ref_score = nash_s_reference(x, params)
    # mu is continuous -> robust check (tolerance covers the approx reciprocal
    # in the in-kernel sigmoid).
    assert jnp.allclose(mu, ref_mu, atol=2e-3, rtol=2e-3)

    z_kernel = jnp.where(mu > 0.5, 1.0, 0.0)
    z_ref = jnp.where(ref_mu > 0.5, 1.0, 0.0)
    if bool(jnp.all(z_kernel == z_ref)):
        assert jnp.allclose(prob_w, ref_prob, atol=1e-3, rtol=1e-3)
        assert jnp.allclose(score_c, ref_score, atol=1e-3, rtol=1e-3)
    else:
        # A z bit flipped at the bf16 quantization boundary (mu ~ 0.5), which
        # changes the discrete decoder input; validate the decoder/pred path
        # against the kernel's own binarization instead (documented concern).
        ref_prob2, _, ref_score2 = nash_s_reference(x, params, z_override=z_kernel)
        assert jnp.allclose(prob_w, ref_prob2, atol=1e-3, rtol=1e-3)
        assert jnp.allclose(score_c, ref_score2, atol=1e-3, rtol=1e-3)

    print("KERNEL_OK")
</pallas_src>

<mosaic_0001>
module attributes {stable_mosaic.version = 11 : i64} {
  func.func @_nash_s_kernel(%arg0: i32, %arg1: i32, %arg2: memref<32x512xf32, #tpu.memory_space<vmem>>, %arg3: memref<512x512xbf16, #tpu.memory_space<vmem>>, %arg4: memref<1x512xf32, #tpu.memory_space<vmem>>, %arg5: memref<512x512xbf16, #tpu.memory_space<vmem>>, %arg6: memref<1x512xf32, #tpu.memory_space<vmem>>, %arg7: memref<512x128xbf16, #tpu.memory_space<vmem>>, %arg8: memref<1x128xf32, #tpu.memory_space<vmem>>, %arg9: memref<128x1152xbf16, #tpu.memory_space<vmem>>, %arg10: memref<1x1152xf32, #tpu.memory_space<vmem>>, %arg11: memref<32x1024xf32, #tpu.memory_space<vmem>>, %arg12: memref<32x128xf32, #tpu.memory_space<vmem>>, %arg13: memref<32x128xf32, #tpu.memory_space<vmem>>, %arg14: memref<32x512xf32, #tpu.memory_space<vmem>>) attributes {dimension_semantics = [#tpu.dimension_semantics<parallel>, #tpu.dimension_semantics<arbitrary>], iteration_bounds = array<i64: 1, 2>, scalar_prefetch = 0 : i64, scratch_operands = 1 : i64, tpu.core_type = #tpu.core_type<tc>, window_params = [{pipeline_mode = #tpu.pipeline_mode<double_buffered>, transform_indices = @transform_0, window_bounds = array<i64: 32, 512>}, {pipeline_mode = #tpu.pipeline_mode<double_buffered>, transform_indices = @transform_1, window_bounds = array<i64: 512, 512>}, {pipeline_mode = #tpu.pipeline_mode<synchronous>, transform_indices = @transform_2, window_bounds = array<i64: 1, 512>}, {pipeline_mode = #tpu.pipeline_mode<synchronous>, transform_indices = @transform_3, window_bounds = array<i64: 512, 512>}, {pipeline_mode = #tpu.pipeline_mode<synchronous>, transform_indices = @transform_4, window_bounds = array<i64: 1, 512>}, {pipeline_mode = #tpu.pipeline_mode<synchronous>, transform_indices = @transform_5, window_bounds = array<i64: 512, 128>}, {pipeline_mode = #tpu.pipeline_mode<synchronous>, transform_indices = @transform_6, window_bounds = array<i64: 1, 128>}, {pipeline_mode = #tpu.pipeline_mode<synchronous>, transform_indices = @transform_7, window_bounds = array<i64: 128, 1152>}, {pipeline_mode = #tpu.pipeline_mode<synchronous>, transform_indices = @transform_8, window_bounds = array<i64: 1, 1152>}, {transform_indices = @transform_9, window_bounds = array<i64: 32, 1024>}, {transform_indices = @transform_10, window_bounds = array<i64: 32, 128>}, {transform_indices = @transform_11, window_bounds = array<i64: 32, 128>}]} {
    %c0_i32 = arith.constant 0 : i32
    %0 = arith.cmpi eq, %arg1, %c0_i32 : i32
    %1 = arith.extui %0 : i1 to i32
    %c0_i32_0 = arith.constant 0 : i32
    %2 = arith.cmpi ne, %1, %c0_i32_0 : i32
    scf.if %2 {
      %cst_9 = arith.constant 0.000000e+00 : f32
      %13 = vector.broadcast %cst_9 : f32 to vector<32x512xf32>
      %c0_10 = arith.constant 0 : index
      %c0_11 = arith.constant 0 : index
      %14 = vector.load %arg14[%c0_10, %c0_11] : memref<32x512xf32, #tpu.memory_space<vmem>>, vector<32x512xf32>
      tpu.vector_store %arg14[%c0_10, %c0_11], %13 {strides = array<i32>} : memref<32x512xf32, #tpu.memory_space<vmem>>, vector<32x512xf32>,
    } else {
    }
    %c0 = arith.constant 0 : index
    %c0_1 = arith.constant 0 : index
    %3 = vector.load %arg14[%c0, %c0_1] : memref<32x512xf32, #tpu.memory_space<vmem>>, vector<32x512xf32>
    %c0_2 = arith.constant 0 : index
    %c0_3 = arith.constant 0 : index
    %4 = vector.load %arg2[%c0_2, %c0_3] : memref<32x512xf32, #tpu.memory_space<vmem>>, vector<32x512xf32>
    %5 = arith.truncf %4 : vector<32x512xf32> to vector<32x512xbf16>
    %c0_4 = arith.constant 0 : index
    %c0_5 = arith.constant 0 : index
    %6 = vector.load %arg3[%c0_4, %c0_5] : memref<512x512xbf16, #tpu.memory_space<vmem>>, vector<512x512xbf16>
    %cst = arith.constant dense<0.000000e+00> : vector<32x512xf32>
    %7 = tpu.matmul %5, %6, %cst {dimension_numbers = #tpu.dot_dimension_numbers<[1], [0], [0], [1], [0, 0, 1, 1], [], []>} : vector<32x512xbf16>, vector<512x512xbf16>, vector<32x512xf32> -> vector<32x512xf32>
    %8 = arith.addf %3, %7 : vector<32x512xf32>
    %c0_6 = arith.constant 0 : index
    %c0_7 = arith.constant 0 : index
    %9 = vector.load %arg14[%c0_6, %c0_7] : memref<32x512xf32, #tpu.memory_space<vmem>>, vector<32x512xf32>
    tpu.vector_store %arg14[%c0_6, %c0_7], %8 {strides = array<i32>} : memref<32x512xf32, #tpu.memory_space<vmem>>, vector<32x512xf32>,
    %c1_i32 = arith.constant 1 : i32
    %10 = arith.cmpi eq, %arg1, %c1_i32 : i32
    %11 = arith.extui %10 : i1 to i32
    %c0_i32_8 = arith.constant 0 : i32
    %12 = arith.cmpi ne, %11, %c0_i32_8 : i32
    scf.if %12 {
      %c0_9 = arith.constant 0 : index
      %c0_10 = arith.constant 0 : index
      %13 = vector.load %arg14[%c0_9, %c0_10] : memref<32x512xf32, #tpu.memory_space<vmem>>, vector<32x512xf32>
      %c0_11 = arith.constant 0 : index
      %c0_12 = arith.constant 0 : index
      %14 = vector.load %arg4[%c0_11, %c0_12] : memref<1x512xf32, #tpu.memory_space<vmem>>, vector<1x512xf32>
      %15 = vector.broadcast %14 : vector<1x512xf32> to vector<32x512xf32>
      %16 = arith.addf %13, %15 : vector<32x512xf32>
      %cst_13 = arith.constant 0.000000e+00 : f32
      %17 = vector.broadcast %cst_13 : f32 to vector<32x512xf32>
      %18 = arith.maximumf %16, %17 : vector<32x512xf32>
      %19 = arith.truncf %18 : vector<32x512xf32> to vector<32x512xbf16>
      %c0_14 = arith.constant 0 : index
      %c0_15 = arith.constant 0 : index
      %20 = vector.load %arg5[%c0_14, %c0_15] : memref<512x512xbf16, #tpu.memory_space<vmem>>, vector<512x512xbf16>
      %cst_16 = arith.constant dense<0.000000e+00> : vector<32x512xf32>
      %21 = tpu.matmul %19, %20, %cst_16 {dimension_numbers = #tpu.dot_dimension_numbers<[1], [0], [0], [1], [0, 0, 1, 1], [], []>} : vector<32x512xbf16>, vector<512x512xbf16>, vector<32x512xf32> -> vector<32x512xf32>
      %c0_17 = arith.constant 0 : index
      %c0_18 = arith.constant 0 : index
      %22 = vector.load %arg6[%c0_17, %c0_18] : memref<1x512xf32, #tpu.memory_space<vmem>>, vector<1x512xf32>
      %23 = vector.broadcast %22 : vector<1x512xf32> to vector<32x512xf32>
      %24 = arith.addf %21, %23 : vector<32x512xf32>
      %cst_19 = arith.constant 0.000000e+00 : f32
      %25 = vector.broadcast %cst_19 : f32 to vector<32x512xf32>
      %26 = arith.maximumf %24, %25 : vector<32x512xf32>
      %27 = arith.truncf %26 : vector<32x512xf32> to vector<32x512xbf16>
      %c0_20 = arith.constant 0 : index
      %c0_21 = arith.constant 0 : index
      %28 = vector.load %arg7[%c0_20, %c0_21] : memref<512x128xbf16, #tpu.memory_space<vmem>>, vector<512x128xbf16>
      %cst_22 = arith.constant dense<0.000000e+00> : vector<32x128xf32>
      %29 = tpu.matmul %27, %28, %cst_22 {dimension_numbers = #tpu.dot_dimension_numbers<[1], [0], [0], [1], [0, 0, 1, 1], [], []>} : vector<32x512xbf16>, vector<512x128xbf16>, vector<32x128xf32> -> vector<32x128xf32>
      %c0_23 = arith.constant 0 : index
      %c0_24 = arith.constant 0 : index
      %30 = vector.load %arg8[%c0_23, %c0_24] : memref<1x128xf32, #tpu.memory_space<vmem>>, vector<1x128xf32>
      %31 = vector.broadcast %30 : vector<1x128xf32> to vector<32x128xf32>
      %32 = arith.addf %29, %31 : vector<32x128xf32>
      %cst_25 = arith.constant 0.000000e+00 : f32
      %33 = vector.broadcast %cst_25 : f32 to vector<32x128xf32>
      %34 = arith.subf %33, %32 : vector<32x128xf32>
      %35 = math.exp %34 : vector<32x128xf32>
      %cst_26 = arith.constant 1.000000e+00 : f32
      %36 = vector.broadcast %cst_26 : f32 to vector<32x128xf32>
      %37 = arith.addf %36, %35 : vector<32x128xf32>
      %38 = tpu.reciprocal %37 {approx = true} : vector<32x128xf32> -> vector<32x128xf32>
      %c0_27 = arith.constant 0 : index
      %c0_28 = arith.constant 0 : index
      %39 = vector.load %arg12[%c0_27, %c0_28] : memref<32x128xf32, #tpu.memory_space<vmem>>, vector<32x128xf32>
      tpu.vector_store %arg12[%c0_27, %c0_28], %38 {strides = array<i32>} : memref<32x128xf32, #tpu.memory_space<vmem>>, vector<32x128xf32>,
      %cst_29 = arith.constant 5.000000e-01 : f32
      %40 = vector.broadcast %cst_29 : f32 to vector<32x128xf32>
      %41 = arith.cmpf ogt, %38, %40 : vector<32x128xf32>
      %cst_30 = arith.constant 1.000000e+00 : f32
      %cst_31 = arith.constant 0.000000e+00 : f32
      %42 = vector.broadcast %cst_30 : f32 to vector<32x128xf32>
      %43 = vector.broadcast %cst_31 : f32 to vector<32x128xf32>
      %44 = arith.select %41, %42, %43 : vector<32x128xi1>, vector<32x128xf32>
      %45 = arith.truncf %44 : vector<32x128xf32> to vector<32x128xbf16>
      %c0_32 = arith.constant 0 : index
      %c0_33 = arith.constant 0 : index
      %46 = vector.load %arg9[%c0_32, %c0_33] : memref<128x1152xbf16, #tpu.memory_space<vmem>>, vector<128x1152xbf16>
      %cst_34 = arith.constant dense<0.000000e+00> : vector<32x1152xf32>
      %47 = tpu.matmul %45, %46, %cst_34 {dimension_numbers = #tpu.dot_dimension_numbers<[1], [0], [0], [1], [0, 0, 1, 1], [], []>} : vector<32x128xbf16>, vector<128x1152xbf16>, vector<32x1152xf32> -> vector<32x1152xf32>
      %c0_35 = arith.constant 0 : index
      %c0_36 = arith.constant 0 : index
      %48 = vector.load %arg10[%c0_35, %c0_36] : memref<1x1152xf32, #tpu.memory_space<vmem>>, vector<1x1152xf32>
      %49 = vector.broadcast %48 : vector<1x1152xf32> to vector<32x1152xf32>
      %50 = arith.addf %47, %49 : vector<32x1152xf32>
      %51 = vector.extract_strided_slice %50 {offsets = [0, 0], sizes = [32, 1024], strides = [1, 1]} : vector<32x1152xf32> to vector<32x1024xf32>
      %cst_37 = arith.constant dense<0xFF800000> : vector<32xf32>
      %52 = vector.multi_reduction <maximumf>, %51, %cst_37 [1] : vector<32x1024xf32> to vector<32xf32>
      %53 = vector.shape_cast %52 : vector<32xf32> to vector<32x1xf32>
      %54 = vector.broadcast %53 : vector<32x1xf32> to vector<32x1024xf32>
      %55 = arith.subf %51, %54 : vector<32x1024xf32>
      %56 = math.exp %55 : vector<32x1024xf32>
      %cst_38 = arith.constant dense<0.000000e+00> : vector<32xf32>
      %57 = vector.multi_reduction <add>, %56, %cst_38 [1] : vector<32x1024xf32> to vector<32xf32>
      %58 = vector.shape_cast %57 : vector<32xf32> to vector<32x1xf32>
      %59 = math.log %58 : vector<32x1xf32>
      %60 = arith.addf %53, %59 : vector<32x1xf32>
      %61 = vector.broadcast %60 : vector<32x1xf32> to vector<32x1024xf32>
      %62 = arith.subf %51, %61 : vector<32x1024xf32>
      %c0_39 = arith.constant 0 : index
      %c0_40 = arith.constant 0 : index
      %63 = vector.load %arg11[%c0_39, %c0_40] : memref<32x1024xf32, #tpu.memory_space<vmem>>, vector<32x1024xf32>
      tpu.vector_store %arg11[%c0_39, %c0_40], %62 {strides = array<i32>} : memref<32x1024xf32, #tpu.memory_space<vmem>>, vector<32x1024xf32>,
      %64 = vector.extract_strided_slice %50 {offsets = [0, 1024], sizes = [32, 128], strides = [1, 1]} : vector<32x1152xf32> to vector<32x128xf32>
      %c0_41 = arith.constant 0 : index
      %c0_42 = arith.constant 0 : index
      %65 = vector.load %arg13[%c0_41, %c0_42] : memref<32x128xf32, #tpu.memory_space<vmem>>, vector<32x128xf32>
      tpu.vector_store %arg13[%c0_41, %c0_42], %64 {strides = array<i32>} : memref<32x128xf32, #tpu.memory_space<vmem>>, vector<32x128xf32>,
    } else {
    }
    return
  }
  func.func @transform_0(%arg0: i32, %arg1: i32) -> (i32, i32) {
    %c0_i32 = arith.constant 0 : i32
    return %arg0, %arg1 : i32, i32
  }
  func.func @transform_1(%arg0: i32, %arg1: i32) -> (i32, i32) {
    %c0_i32 = arith.constant 0 : i32
    %c0_i32_0 = arith.constant 0 : i32
    return %arg1, %c0_i32 : i32, i32
  }
  func.func @transform_2(%arg0: i32, %arg1: i32) -> (i32, i32) {
    %c0_i32 = arith.constant 0 : i32
    %c0_i32_0 = arith.constant 0 : i32
    %c0_i32_1 = arith.constant 0 : i32
    return %c0_i32, %c0_i32_0 : i32, i32
  }
  func.func @transform_3(%arg0: i32, %arg1: i32) -> (i32, i32) {
    %c0_i32 = arith.constant 0 : i32
    %c0_i32_0 = arith.constant 0 : i32
    %c0_i32_1 = arith.constant 0 : i32
    return %c0_i32, %c0_i32_0 : i32, i32
  }
  func.func @transform_4(%arg0: i32, %arg1: i32) -> (i32, i32) {
    %c0_i32 = arith.constant 0 : i32
    %c0_i32_0 = arith.constant 0 : i32
    %c0_i32_1 = arith.constant 0 : i32
    return %c0_i32, %c0_i32_0 : i32, i32
  }
  func.func @transform_5(%arg0: i32, %arg1: i32) -> (i32, i32) {
    %c0_i32 = arith.constant 0 : i32
    %c0_i32_0 = arith.constant 0 : i32
    %c0_i32_1 = arith.constant 0 : i32
    return %c0_i32, %c0_i32_0 : i32, i32
  }
  func.func @transform_6(%arg0: i32, %arg1: i32) -> (i32, i32) {
    %c0_i32 = arith.constant 0 : i32
    %c0_i32_0 = arith.constant 0 : i32
    %c0_i32_1 = arith.constant 0 : i32
    return %c0_i32, %c0_i32_0 : i32, i32
  }
  func.func @transform_7(%arg0: i32, %arg1: i32) -> (i32, i32) {
    %c0_i32 = arith.constant 0 : i32
    %c0_i32_0 = arith.constant 0 : i32
    %c0_i32_1 = arith.constant 0 : i32
    return %c0_i32, %c0_i32_0 : i32, i32
  }
  func.func @transform_8(%arg0: i32, %arg1: i32) -> (i32, i32) {
    %c0_i32 = arith.constant 0 : i32
    %c0_i32_0 = arith.constant 0 : i32
    %c0_i32_1 = arith.constant 0 : i32
    return %c0_i32, %c0_i32_0 : i32, i32
  }
  func.func @transform_9(%arg0: i32, %arg1: i32) -> (i32, i32) {
    %c0_i32 = arith.constant 0 : i32
    %c0_i32_0 = arith.constant 0 : i32
    return %arg0, %c0_i32 : i32, i32
  }
  func.func @transform_10(%arg0: i32, %arg1: i32) -> (i32, i32) {
    %c0_i32 = arith.constant 0 : i32
    %c0_i32_0 = arith.constant 0 : i32
    return %arg0, %c0_i32 : i32, i32
  }
  func.func @transform_11(%arg0: i32, %arg1: i32) -> (i32, i32) {
    %c0_i32 = arith.constant 0 : i32
    %c0_i32_0 = arith.constant 0 : i32
    return %arg0, %c0_i32 : i32, i32
  }
}

</mosaic_0001>

<bundles_post_ra>
// kernel: tpu_custom_call.1
= control target key start
LH: loop header
LB: loop body
LE: loop exit
PB: predicated region body
PF: predicated region fallthrough
CT: control target
= control target key end

     0   :  { %s6746_s0 = inlined_call_operand.hbm [shape: f32[32,1024], index: 0, kind: input, shape index: {}]   ;;  %s6747_s1 = inlined_call_operand.hbm [shape: bf16[1024,512], index: 1, kind: input, shape index: {}]   ;;  %s6748_s2 = inlined_call_operand.vmem [shape: f32[1,512], index: 2, kind: input, shape index: {}]   ;;  %s6749_s3 = inlined_call_operand.hbm [shape: bf16[512,512], index: 3, kind: input, shape index: {}]   ;;  %s6750_s4 = inlined_call_operand.vmem [shape: f32[1,512], index: 4, kind: input, shape index: {}]   ;;  %s6751_s5 = inlined_call_operand.hbm [shape: bf16[512,128], index: 5, kind: input, shape index: {}]   ;;  %s6752_s6 = inlined_call_operand.vmem [shape: f32[1,128], index: 6, kind: input, shape index: {}]   ;;  %s6753_s7 = inlined_call_operand.hbm [shape: bf16[128,1152], index: 7, kind: input, shape index: {}]   ;;  %s6754_s8 = inlined_call_operand.vmem [shape: f32[1,1152], index: 8, kind: input, shape index: {}]   ;;  %s6755_s9 = inlined_call_operand.hbm [shape: f32[32,1024], index: 9, kind: output, shape index: {0}]   ;;  %s6756_s10 = inlined_call_operand.hbm [shape: f32[32,128], index: 10, kind: output, shape index: {1}]   ;;  %s6757_s11 = inlined_call_operand.hbm [shape: f32[32,128], index: 11, kind: output, shape index: {2}]  }
   0x1   :  { %6768 = sst [smem:[#allocation22_spill]] %s6746_s0 }
   0x2   :  { %6769 = sst [smem:[#allocation23_spill]] %s6749_s3 }
   0x3   :  { %6770 = sst [smem:[#allocation24_spill]] %s6751_s5 }
   0x4   :  { %6771 = sst [smem:[#allocation25_spill]] %s6752_s6 }
   0x5   :  { %6772 = sst [smem:[#allocation26_spill]] %s6753_s7 }
   0x6   :  { %6773 = sst [smem:[#allocation27_spill]] %s6754_s8 }
   0x7   :  { %6774 = sst [smem:[#allocation28_spill]] %s6755_s9 }
   0x8   :  { %6775 = sst [smem:[#allocation29_spill]] %s6756_s10 }
   0x9   :  { %6776 = sst [smem:[#allocation30_spill]] %s6757_s11 }
   0xa   :  { %17 = vsyncpa [#allocation4], 0 }
   0xb   :  { %19 = vsyncpa [#allocation4 + $0x1], 0 }
   0xc   :  { %20 = vsyncpa [#allocation7], 0 }
   0xd   :  { %22 = vsyncpa [#allocation7 + $0x1], 0 }
   0xe   :  { %23 = vsyncpa [#allocation10], 0 }
   0xf   :  { %24 = vsyncpa [#allocation5], 0 }
  0x10   :  { %25 = vsyncpa [#allocation14], 0  ;;  %s5940_s17 = smov 0   ;;  %s5942_s18 = smov 0  }
  0x11   :  { %s5944_s19 = smov 0   ;;  %s5946_s20 = smov 0  }
  0x12   :  { %s5948_s21 = smov 0   ;;  %s5950_s22 = smov 0  }
  0x13 LB: > { %s5969_s23 = sadd.s32 4294967295, %s5854_s22   ;;  %p59_p0 = scmp.ne.s32.totalorder %s5842_s19, %s5838_s18  ;;  %s5854_s22 = sphi %s5950_s22, %s31_s22   ;;  %s5850_s21 = sphi %s5948_s21, %s6810_s21   ;;  %s5846_s20 = sphi %s5946_s20, %s6809_s20   ;;  %s5842_s19 = sphi %s5944_s19, %s6808_s19   ;;  %s5838_s18 = sphi %s5942_s18, %s6807_s18   ;;  %s5834_s17 = sphi %s5940_s17, %s6806_s17  }
  0x14   : > { %p60_p1 = scmp.eq.s32.totalorder %s5854_s22, 0  ;;  %p65_p2 = scmp.ne.s32.totalorder %s5838_s18, %s5834_s17 }
  0x15   : > { %p6759_p3 = scmp.eq.s32.totalorder %s5969_s23, 0  ;;  %p4279_p5 = scmp.ge.s32.totalorder %s5854_s22, 1 }
  0x16   : > { %p61_p4 = por %p60_p1, %p59_p0  ;;  %p327_p7 = scmp.lt.s32.totalorder %s5854_s22, 3 }
  0x17   : > { %p5980_p6 = por %p6759_p3, %p65_p2  ;;  %s5856_s27 = smov [#allocation8]  }
  0x18   : > { %p5985_p8 = pnand %p4279_p5, %p327_p7  ;;  %s342_s28 = sshll.u32 %s5856_s27, 4  ;;  %s5989_s28 = int_to_ptr.vmem [resolvable:$true] %s342_s28 }
  0x19   : > { %s6777_s25 = scalar_select %p5980_p6, 1, 0 }
  0x1a   : > { %s6778_s26 = scalar_select %p5985_p8, 1, 0 }
  0x1b   : > { %p4854_p9 = pneg %p5985_p8  ;;  %p4874_p10 = scmp.lt.s32.totalorder %s5854_s22, 2 }
  0x1c   : > { %s5857_s12 = smov [#allocation9]   ;;  %s6781_s3 = sld [smem:[#allocation23_spill]] }
  0x1d   : > { %p5996_p11 = pnand %p4854_p9, %p6759_p3  ;;  %p6000_p12 = pnand %p4874_p10, %p61_p4 }
  0x1e   : > { %s358_s13 = sshll.u32 %s5857_s12, 4  ;;  %s6004_s13 = int_to_ptr.vmem [resolvable:$true] %s358_s13 }
  0x1f   : > { %s6780_s30 = scalar_select %p6000_p12, 1, 0 }
  0x20   : > { %p6014_p0 = pneg %p5996_p11 }
  0x22   : > { %s5562_s16 = scalar_lea.hbm %s6781_s3, 16384 }
  0x23   : > { %p5563_p13 = scmp.ne.s32.totalorder %s6781_s3, %s5562_s16  ;;  %p5569_p4 = scmp.lt.u32.totalorder %s5562_s16, %s6781_s3 }
  0x25   : > { %p5565_p1 = pnand %p6014_p0, %p5563_p13 }
  0x27   : > { %p5566_p2 = pneg %p5565_p1 }
  0x29   : > { %p5571_p5 = pnand %p5569_p4, %p5566_p2 }
  0x2b   : > { %5574 = shalt.err (!%p5571_p5)
}
  0x2c   : > { %s5575_s14 = scalar_lea.vmem %s5989_s28, 16384  ;;  %p5583_p3 = scmp.lt.s32.totalorder %s5989_s28, %s5989_s28 }
  0x2d   : > { %p5576_p7 = scmp.ne.s32.totalorder %s5989_s28, %s5575_s14  ;;  %p5584_p6 = scmp.lt.s32.totalorder %s5575_s14, %s5575_s14 }
  0x2f   : > { %p5578_p9 = pnand %p5576_p7, %p6014_p0  ;;  %p5585_p13 = por %p5584_p6, %p5583_p3 }
  0x31   : > { %p5579_p10 = pneg %p5578_p9 }
  0x33   : > { %p5586_p1 = pnand %p5585_p13, %p5579_p10 }
  0x35   : > { %5589 = shalt.err (!%p5586_p1)
}
  0x36   : > { %s6764_s15 = smov 256   ;;  %s6765_s11 = smov 16  }
  0x37   : > { %4857 = dma.hbm_to_vmem [thread:$0]  (!%p5996_p11), %s6781_s3, 16384, %s5989_s28, [#allocation7], %s6764_s15, %s6764_s15, %s6765_s11  }
  0x38   : > { %s6783_s5 = sld [smem:[#allocation24_spill]] }
  0x3e   : > { %s5590_s14 = scalar_lea.hbm %s6783_s5, 4096 }
  0x3f   : > { %p5591_p3 = scmp.ne.s32.totalorder %s6783_s5, %s5590_s14  ;;  %p5597_p4 = scmp.lt.u32.totalorder %s5590_s14, %s6783_s5 }
  0x41   : > { %p5593_p6 = pnand %p5591_p3, %p6014_p0 }
  0x43   : > { %p5594_p2 = pneg %p5593_p6 }
  0x45   : > { %p5599_p5 = pnand %p5597_p4, %p5594_p2 }
  0x47   : > { %5602 = shalt.err (!%p5599_p5)
}
  0x48   : > { %s5603_s28 = scalar_lea.vmem %s6004_s13, 4096  ;;  %p5611_p13 = scmp.lt.s32.totalorder %s6004_s13, %s6004_s13 }
  0x49   : > { %p5604_p7 = scmp.ne.s32.totalorder %s6004_s13, %s5603_s28  ;;  %p5612_p1 = scmp.lt.s32.totalorder %s5603_s28, %s5603_s28 }
  0x4b   : > { %p5606_p9 = pnand %p5604_p7, %p6014_p0  ;;  %p5613_p3 = por %p5612_p1, %p5611_p13 }
  0x4d   : > { %p5607_p10 = pneg %p5606_p9 }
  0x4f   : > { %p5614_p6 = pnand %p5613_p3, %p5607_p10 }
  0x51   : > { %5617 = shalt.err (!%p5614_p6)
}
  0x52   : > { %s5860_s9 = smov 64   ;;  %s5861_s6 = smov 4  }
  0x53   : > { %4860 = dma.hbm_to_vmem [thread:$0]  (!%p5996_p11), %s6783_s5, 4096, %s6004_s13, [#allocation10], %s5860_s9, %s5860_s9, %s5861_s6  }
  0x54   : > { %s5862_s16 = smov [#allocation11]   ;;  %s6784_s7 = sld [smem:[#allocation26_spill]] }
  0x55   : > { %s374_s17 = sshll.u32 %s5862_s16, 4  ;;  %s375_s17 = int_to_ptr.vmem [resolvable:$true] %s374_s17 }
  0x5a   : > { %s5618_s14 = scalar_lea.hbm %s6784_s7, 9216 }
  0x5b   : > { %p5619_p2 = scmp.ne.s32.totalorder %s6784_s7, %s5618_s14  ;;  %p5625_p7 = scmp.lt.u32.totalorder %s5618_s14, %s6784_s7 }
  0x5d   : > { %p5621_p4 = pnand %p5619_p2, %p6014_p0 }
  0x5f   : > { %p5622_p5 = pneg %p5621_p4 }
  0x61   : > { %p5627_p9 = pnand %p5625_p7, %p5622_p5 }
  0x63   : > { %5630 = shalt.err (!%p5627_p9)
}
  0x64   : > { %s5631_s13 = scalar_lea.vmem %s375_s17, 9216  ;;  %p5639_p3 = scmp.lt.s32.totalorder %s375_s17, %s375_s17 }
  0x65   : > { %p5632_p10 = scmp.ne.s32.totalorder %s375_s17, %s5631_s13  ;;  %p5640_p6 = scmp.lt.s32.totalorder %s5631_s13, %s5631_s13 }
  0x67   : > { %p5634_p13 = pnand %p5632_p10, %p6014_p0  ;;  %p5641_p8 = por %p5640_p6, %p5639_p3 }
  0x69   : > { %p5635_p1 = pneg %p5634_p13 }
  0x6b   : > { %p5642_p12 = pnand %p5641_p8, %p5635_p1 }
  0x6d   : > { %5645 = shalt.err (!%p5642_p12)
}
  0x6e   : > { %s5863_s15 = smov 576   ;;  %s5864_s3 = smov 36  }
  0x6f   : > { %4863 = dma.hbm_to_vmem [thread:$0]  (!%p5996_p11), %s6784_s7, 9216, %s375_s17, [#allocation10], %s5863_s15, %s5863_s15, %s5864_s3  }
  0x70   : > { %s6080_s9 = sand.u32 1, %s5842_s19   ;;  %s40_s6 = sadd.s32 1, %s5850_s21 }
  0x71   : > { %s4284_s8 = sshll.u32 %s6080_s9, 7  ;;  %p41_p8 = scmp.ge.s32.totalorder %s40_s6, 2 }
  0x72   : > { %s4689_s10 = sshll.u32 %s5850_s21, 9  ;;  %s395_s16 = scalar_lea.vmem [#allocation3], %s4284_s8 }
  0x73   : > { %s405_s27 = sshll.u32 %s395_s16, 4  ;;  %s6812_s6 = smov (%p41_p8, %s40_s6), 0  ;;  %s6092_s27 = int_to_ptr.vmem [resolvable:$true] %s405_s27 }
  0x74   : > { %s6785_s0 = sld [smem:[#allocation22_spill]]  ;;  %s48_s17 = ssub.s32 %s5850_s21, %s6812_s6 }
  0x75   : > { %p50_p11 = scmp.eq.s32.totalorder %s48_s17, 0  ;;  %s6786_s13 = sadd.s32 1, %s5842_s19 }
  0x76   : > { %s392_s3 = scalar_lea.sflag [#allocation4], %s6080_s9  ;;  %p6787_p0 = scmp.ne.s32.totalorder %s6780_s30, 0 }
  0x77   : > { %s6100_s15 = scalar_select %p50_p11, %s5842_s19, %s6786_s13  }
  0x78   : > { %p5648_p2 = pneg %p6787_p0 }
  0x7a   : > { %s6090_s14 = scalar_lea.hbm %s6785_s0, %s4689_s10  ;;  %s5651_s10 = scalar_lea.hbm %s6785_s0, 4096 }
  0x7b   : > { %s5646_s11 = scalar_lea.hbm %s6090_s14, 2048  ;;  %p5652_p7 = scmp.lt.u32.totalorder %s6090_s14, %s6785_s0 }
  0x7c   : > { %p5647_p12 = scmp.ne.s32.totalorder %s6090_s14, %s5646_s11  ;;  %p5653_p9 = scmp.lt.u32.totalorder %s5651_s10, %s5646_s11 }
  0x7d   : > { %p5655_p13 = scmp.lt.u32.totalorder %s5646_s11, %s6090_s14 }
  0x7e   : > { %p5649_p4 = pnand %p5648_p2, %p5647_p12  ;;  %p5654_p10 = por %p5653_p9, %p5652_p7 }
  0x80   : > { %p5650_p5 = pneg %p5649_p4  ;;  %p5656_p1 = por %p5655_p13, %p5654_p10 }
  0x82   : > { %p5657_p3 = pnand %p5656_p1, %p5650_p5 }
  0x84   : > { %5660 = shalt.err (!%p5657_p3)
}
  0x85   : > { %s5661_s29 = scalar_lea.vmem %s6092_s27, 2048  ;;  %s5865_s17 = smov [#allocation3]  }
  0x86   : > { %p5662_p6 = scmp.ne.s32.totalorder %s6092_s27, %s5661_s29  ;;  %s5666_s13 = sshll.u32 %s5865_s17, 4  ;;  %s5667_s13 = int_to_ptr.vmem [resolvable:$false] %s5666_s13 }
  0x87   : > { %s5668_s24 = scalar_lea.vmem %s5667_s13, 4096  ;;  %p5669_p12 = scmp.lt.s32.totalorder %s6092_s27, %s5667_s13 }
  0x88   : > { %p5664_p8 = pnand %p5662_p6, %p5648_p2  ;;  %p5670_p4 = scmp.lt.s32.totalorder %s5668_s24, %s5661_s29 }
  0x8a   : > { %p5665_p11 = pneg %p5664_p8  ;;  %p5671_p7 = por %p5670_p4, %p5669_p12 }
  0x8c   : > { %p5672_p9 = pnand %p5671_p7, %p5665_p11 }
  0x8e   : > { %5675 = shalt.err (!%p5672_p9)
}
  0x8f   : > { %s5866_s11 = smov 1024   ;;  %s5867_s8 = smov 512  }
  0x90   : > { %s5868_s10 = smov 32   ;;  %s4287_s16 = sshll.u32 %s6080_s9, 10 }
  0x91   : > { %4867 = dma.hbm_to_vmem [thread:$0]  (!%p6787_p0), %s6090_s14, 2048, %s6092_s27, %s392_s3, %s5866_s11, %s5867_s8, %s5868_s10  }
  0x92   : > { %s4691_s12 = sshll.u32 %s5850_s21, 14  ;;  %s419_s24 = scalar_lea.vmem [#allocation6], %s4287_s16 }
  0x93   : > { %s6135_s13 = scalar_lea.hbm %s6747_s1, %s4691_s12  ;;  %s427_s28 = sshll.u32 %s419_s24, 4  ;;  %s6137_s28 = int_to_ptr.vmem [resolvable:$true] %s427_s28 }
  0x94   : > { %s6788_s0 = sand.u32 1, %s5854_s22   ;;  %s5676_s7 = scalar_lea.hbm %s6135_s13, 16384 }
  0x95   : > { %s6141_s5 = scalar_lea.sflag [#allocation7], %s6788_s0  ;;  %p5677_p5 = scmp.ne.s32.totalorder %s6135_s13, %s5676_s7 }
  0x96   : > { %s5681_s14 = scalar_lea.hbm %s6747_s1, 32768  ;;  %p5682_p1 = scmp.lt.u32.totalorder %s6135_s13, %s6747_s1 }
  0x97   : > { %p5679_p10 = pnand %p5677_p5, %p5648_p2  ;;  %p5683_p3 = scmp.lt.u32.totalorder %s5681_s14, %s5676_s7 }
  0x98   : > { %p5685_p8 = scmp.lt.u32.totalorder %s5676_s7, %s6135_s13 }
  0x99   : > { %p5680_p13 = pneg %p5679_p10  ;;  %p5684_p6 = por %p5683_p3, %p5682_p1 }
  0x9b   : > { %p5686_p11 = por %p5685_p8, %p5684_p6 }
  0x9d   : > { %p5687_p12 = pnand %p5686_p11, %p5680_p13 }
  0x9f   : > { %5690 = shalt.err (!%p5687_p12)
}
  0xa0   : > { %s5691_s0 = scalar_lea.vmem %s6137_s28, 16384  ;;  %s5869_s8 = smov [#allocation6]  }
  0xa1   : > { %p5692_p4 = scmp.ne.s32.totalorder %s6137_s28, %s5691_s0  ;;  %s5696_s10 = sshll.u32 %s5869_s8, 4  ;;  %s5697_s10 = int_to_ptr.vmem [resolvable:$false] %s5696_s10 }
  0xa2   : > { %s5698_s16 = scalar_lea.vmem %s5697_s10, 32768  ;;  %p5699_p5 = scmp.lt.s32.totalorder %s6137_s28, %s5697_s10 }
  0xa3   : > { %p5694_p7 = pnand %p5692_p4, %p5648_p2  ;;  %p5700_p10 = scmp.lt.s32.totalorder %s5698_s16, %s5691_s0 }
  0xa5   : > { %p5695_p9 = pneg %p5694_p7  ;;  %p5701_p1 = por %p5700_p10, %p5699_p5 }
  0xa7   : > { %p5702_p3 = pnand %p5701_p1, %p5695_p9 }
  0xa9   : > { %5705 = shalt.err (!%p5702_p3)
}
  0xaa   : > { %s6789_s7 = smov 16   ;;  %s6790_s12 = smov 256  }
  0xab   : > { %4870 = dma.hbm_to_vmem [thread:$0]  (!%p6787_p0), %s6135_s13, 16384, %s6137_s28, %s6141_s5, %s6790_s12, %s6790_s12, %s6789_s7  }
  0xac   : > { %p6791_p2 = scmp.ne.s32.totalorder %s6778_s26, 0 }
  0xad   : > { %s441_s29 = sand.u32 (!%p6791_p2), 1, %s5838_s18   ;;  %p6792_p13 = scmp.ne.s32.totalorder (!%p6791_p2), %s6777_s25, 0 }
  0xae   : > { %439 = sbr.rel (%p6791_p2) target bundleno = 1833 (0x729), region = 56  ;;  %s4292_s17 = sshll.u32 (!%p6791_p2), %s441_s29, 7 }
  0xaf   : > { %s442_s24 = scalar_lea.sflag (!%p6791_p2), [#allocation4], %s441_s29  ;;  %s6173_s9 = scalar_lea.vmem (!%p6791_p2), [#allocation3], %s4292_s17 }
  0xb5   : > { %5809 = dma.done.wait (%p6792_p13), %s442_s24, 2048  }
  0xb6   : > { %5811 = vsyncadd (%p6792_p13), %s442_s24, 4294965248  ;;  %s450_s30 = sand.u32 1, %s5969_s23   ;;  %s4293_s27 = sshll.u32 %s441_s29, 10 }
  0xb7   : > { %s451_s5 = scalar_lea.sflag [#allocation7], %s450_s30  ;;  %s6180_s28 = scalar_lea.vmem [#allocation6], %s4293_s27 }
  0xb8   : > { %5813 = dma.done.wait (%p6792_p13), %s451_s5, 16384  }
  0xb9   : > { %5815 = vsyncadd (%p6792_p13), %s451_s5, 4294950912  ;;  %p6793_p0 = scmp.eq.s32.totalorder %s5969_s23, 0 }
  0xbb   : > { %5817 = dma.done.wait (%p6793_p0), [#allocation7], 16384   ;;  %p6794_p6 = pmov %p6793_p0 }
  0xbc   : > { %p6795_p8 = pmov %p6793_p0 }
  0xbd   : > { %5819 = vsyncadd (%p6794_p6), [#allocation7], 4294950912 }
  0xbe   : > { %5821 = dma.done.wait (%p6795_p8), [#allocation10], 13312   ;;  %p6796_p11 = pmov %p6793_p0 }
  0xbf   : > { %p4297_p12 = scmp.ne.s32.totalorder %s5846_s20, 0 }
  0xc0   : > { %5823 = vsyncadd (%p6796_p11), [#allocation10], 4294953984  ;;  %v5870_v0 = vmov (!%p4297_p12), 0.0  }
  0xc1   : > { %515 = sbr.rel (%p4297_p12) target bundleno = 201 (0xc9), region = 80  ;;  %516 = vst [vmem:[#allocation2] sm:$0xff] (!%p4297_p12), %v5870_v0  ;;  %517 = vst [vmem:[#allocation2 + $0x8] sm:$0xff] (!%p4297_p12), %v5870_v0 }
  0xc2   : > { %518 = vst [vmem:[#allocation2 + $0x10] sm:$0xff] (!%p4297_p12), %v5870_v0  ;;  %519 = vst [vmem:[#allocation2 + $0x18] sm:$0xff] (!%p4297_p12), %v5870_v0 }
  0xc3   : > { %520 = vst [vmem:[#allocation2 + $0x20] sm:$0xff] (!%p4297_p12), %v5870_v0  ;;  %521 = vst [vmem:[#allocation2 + $0x28] sm:$0xff] (!%p4297_p12), %v5870_v0 }
  0xc4   : > { %522 = vst [vmem:[#allocation2 + $0x30] sm:$0xff] (!%p4297_p12), %v5870_v0  ;;  %523 = vst [vmem:[#allocation2 + $0x38] sm:$0xff] (!%p4297_p12), %v5870_v0 }
  0xc5   : > { %524 = vst [vmem:[#allocation2 + $0x40] sm:$0xff] (!%p4297_p12), %v5870_v0  ;;  %525 = vst [vmem:[#allocation2 + $0x48] sm:$0xff] (!%p4297_p12), %v5870_v0 }
  0xc6   : > { %526 = vst [vmem:[#allocation2 + $0x50] sm:$0xff] (!%p4297_p12), %v5870_v0  ;;  %527 = vst [vmem:[#allocation2 + $0x58] sm:$0xff] (!%p4297_p12), %v5870_v0 }
  0xc7   : > { %528 = vst [vmem:[#allocation2 + $0x60] sm:$0xff] (!%p4297_p12), %v5870_v0  ;;  %529 = vst [vmem:[#allocation2 + $0x68] sm:$0xff] (!%p4297_p12), %v5870_v0 }
  0xc8   : > { %530 = vst [vmem:[#allocation2 + $0x70] sm:$0xff] %v5870_v0  ;;  %531 = vst [vmem:[#allocation2 + $0x78] sm:$0xff] %v5870_v0 }
  0xc9 PF: > { %v4954_v1 = vld [vmem:[%s6180_s28 + $0x4] ss:$16 sps:$4 sm:$0xff]   ;;  %v4956_v2 = vld [vmem:[%s6180_s28 + $0xc] ss:$16 sps:$4 sm:$0xff]   ;;  %v4958_v3 = vld [vmem:[%s6180_s28] ss:$16 sps:$4 sm:$0xff]  }
  0xca   : > { %1340 = vmatprep.subr.bf16.mxu0 %v4954_v1  ;;  %v4959_v4 = vld [vmem:[%s6180_s28 + $0x8] ss:$16 sps:$4 sm:$0xff]   ;;  %1446 = vmatprep.subr.bf16.mxu1 %v4956_v2  ;;  %v4960_v5 = vld [vmem:[%s6180_s28 + $0x24] ss:$16 sps:$4 sm:$0xff]   ;;  %v4962_v6 = vld [vmem:[%s6180_s28 + $0x2c] ss:$16 sps:$4 sm:$0xff]  }
  0xcb   : > { %1341 = vmatpush1.bf16.msra.mxu0 %v4958_v3  ;;  %1447 = vmatpush1.bf16.msra.mxu1 %v4959_v4  ;;  %v4964_v7 = vld [vmem:[%s6180_s28 + $0x20] ss:$16 sps:$4 sm:$0xff]   ;;  %v4965_v8 = vld [vmem:[%s6180_s28 + $0x28] ss:$16 sps:$4 sm:$0xff]   ;;  %v4966_v9 = vld [vmem:[%s6180_s28 + $0x44] ss:$16 sps:$4 sm:$0xff]  }
  0xcc   : > { %1342 = vmatprep.subr.bf16.mxu0 %v4960_v5  ;;  %1448 = vmatprep.subr.bf16.mxu1 %v4962_v6  ;;  %v4968_v10 = vld [vmem:[%s6180_s28 + $0x4c] ss:$16 sps:$4 sm:$0xff]   ;;  %v4970_v11 = vld [vmem:[%s6180_s28 + $0x40] ss:$16 sps:$4 sm:$0xff]   ;;  %v4971_v12 = vld [vmem:[%s6180_s28 + $0x48] ss:$16 sps:$4 sm:$0xff]  }
  0xcd   : > { %v4972_v13 = vld [vmem:[%s6180_s28 + $0x64] ss:$16 sps:$4 sm:$0xff]   ;;  %v4974_v14 = vld [vmem:[%s6180_s28 + $0x6c] ss:$16 sps:$4 sm:$0xff]   ;;  %v4976_v15 = vld [vmem:[%s6180_s28 + $0x60] ss:$16 sps:$4 sm:$0xff]  }
  0xce   : > { %v4977_v16 = vld [vmem:[%s6180_s28 + $0x68] ss:$16 sps:$4 sm:$0xff]   ;;  %v4978_v17 = vld [vmem:[%s6180_s28 + $0x84] ss:$16 sps:$4 sm:$0xff]   ;;  %v4980_v18 = vld [vmem:[%s6180_s28 + $0x8c] ss:$16 sps:$4 sm:$0xff]  }
  0xcf   : > { %1343 = vmatpush1.bf16.msra.mxu0 %v4964_v7  ;;  %1449 = vmatpush1.bf16.msra.mxu1 %v4965_v8  ;;  %v4982_v19 = vld [vmem:[%s6180_s28 + $0x80] ss:$16 sps:$4 sm:$0xff]   ;;  %v4983_v20 = vld [vmem:[%s6180_s28 + $0x88] ss:$16 sps:$4 sm:$0xff]   ;;  %v4984_v21 = vld [vmem:[%s6180_s28 + $0xa4] ss:$16 sps:$4 sm:$0xff]  }
  0xd0   : > { %1344 = vmatprep.subr.bf16.mxu0 %v4966_v9  ;;  %1450 = vmatprep.subr.bf16.mxu1 %v4968_v10  ;;  %v4986_v22 = vld [vmem:[%s6180_s28 + $0xac] ss:$16 sps:$4 sm:$0xff]   ;;  %v4988_v23 = vld [vmem:[%s6180_s28 + $0xa0] ss:$16 sps:$4 sm:$0xff]   ;;  %v4989_v24 = vld [vmem:[%s6180_s28 + $0xa8] ss:$16 sps:$4 sm:$0xff]  }
  0xd1   : > { %v4990_v25 = vld [vmem:[%s6180_s28 + $0xc4] ss:$16 sps:$4 sm:$0xff]   ;;  %v4992_v26 = vld [vmem:[%s6180_s28 + $0xcc] ss:$16 sps:$4 sm:$0xff]   ;;  %v4994_v27 = vld [vmem:[%s6180_s28 + $0xc0] ss:$16 sps:$4 sm:$0xff]  }
  0xd2   : > { %v4995_v28 = vld [vmem:[%s6180_s28 + $0xc8] ss:$16 sps:$4 sm:$0xff]   ;;  %v4996_v29 = vld [vmem:[%s6180_s28 + $0xe4] ss:$16 sps:$4 sm:$0xff]   ;;  %v4998_v30 = vld [vmem:[%s6180_s28 + $0xec] ss:$16 sps:$4 sm:$0xff]  }
  0xd3   : > { %1345 = vmatpush1.bf16.msra.mxu0 %v4970_v11  ;;  %1451 = vmatpush1.bf16.msra.mxu1 %v4971_v12  ;;  %v5000_v31 = vld [vmem:[%s6180_s28 + $0xe0] ss:$16 sps:$4 sm:$0xff]   ;;  %v5001_v32 = vld [vmem:[%s6180_s28 + $0xe8] ss:$16 sps:$4 sm:$0xff]   ;;  %v5002_v33 = vld [vmem:[%s6180_s28 + $0x104] ss:$16 sps:$4 sm:$0xff]  }
  0xd4   : > { %1346 = vmatprep.subr.bf16.mxu0 %v4972_v13  ;;  %1452 = vmatprep.subr.bf16.mxu1 %v4974_v14  ;;  %v5004_v34 = vld [vmem:[%s6180_s28 + $0x10c] ss:$16 sps:$4 sm:$0xff]   ;;  %v5006_v35 = vld [vmem:[%s6180_s28 + $0x100] ss:$16 sps:$4 sm:$0xff]   ;;  %v5007_v36 = vld [vmem:[%s6180_s28 + $0x108] ss:$16 sps:$4 sm:$0xff]  }
  0xd5   : > { %v5008_v37 = vld [vmem:[%s6180_s28 + $0x124] ss:$16 sps:$4 sm:$0xff]   ;;  %v5010_v38 = vld [vmem:[%s6180_s28 + $0x12c] ss:$16 sps:$4 sm:$0xff]   ;;  %v5012_v39 = vld [vmem:[%s6180_s28 + $0x120] ss:$16 sps:$4 sm:$0xff]  }
  0xd6   : > { %v5013_v40 = vld [vmem:[%s6180_s28 + $0x128] ss:$16 sps:$4 sm:$0xff]   ;;  %v5014_v41 = vld [vmem:[%s6180_s28 + $0x144] ss:$16 sps:$4 sm:$0xff]   ;;  %v5016_v42 = vld [vmem:[%s6180_s28 + $0x14c] ss:$16 sps:$4 sm:$0xff]  }
  0xd7   : > { %1347 = vmatpush1.bf16.msra.mxu0 %v4976_v15  ;;  %1453 = vmatpush1.bf16.msra.mxu1 %v4977_v16  ;;  %v5018_v43 = vld [vmem:[%s6180_s28 + $0x140] ss:$16 sps:$4 sm:$0xff]   ;;  %v5019_v44 = vld [vmem:[%s6180_s28 + $0x148] ss:$16 sps:$4 sm:$0xff]   ;;  %v5020_v45 = vld [vmem:[%s6180_s28 + $0x164] ss:$16 sps:$4 sm:$0xff]  }
  0xd8   : > { %1348 = vmatprep.subr.bf16.mxu0 %v4978_v17  ;;  %1454 = vmatprep.subr.bf16.mxu1 %v4980_v18  ;;  %v5022_v46 = vld [vmem:[%s6180_s28 + $0x16c] ss:$16 sps:$4 sm:$0xff]   ;;  %v5024_v49 = vld [vmem:[%s6180_s28 + $0x160] ss:$16 sps:$4 sm:$0xff]   ;;  %v5025_v50 = vld [vmem:[%s6180_s28 + $0x168] ss:$16 sps:$4 sm:$0xff]  }
  0xd9   : > { %v549_v47 = vld [vmem:[%s6173_s9 + $0x8] sm:$0xff]  ;;  %v5026_v52 = vld [vmem:[%s6180_s28 + $0x184] ss:$16 sps:$4 sm:$0xff]   ;;  %v5030_v54 = vld [vmem:[%s6180_s28 + $0x180] ss:$16 sps:$4 sm:$0xff]   ;;  %p4426_p4 = scmp.ne.s32.totalorder %s5846_s20, 1 }
  0xda   : > { %v553_v48 = vld [vmem:[%s6173_s9 + $0x28] sm:$0xff]  ;;  %v5032_v56 = vld [vmem:[%s6180_s28 + $0x1a4] ss:$16 sps:$4 sm:$0xff]   ;;  %v5036_v58 = vld [vmem:[%s6180_s28 + $0x1a0] ss:$16 sps:$4 sm:$0xff]   ;;  %s6797_s11 = sld [smem:[#allocation25_spill]] (!%p4426_p4) }
  0xdb   : > { %1349 = vmatpush1.bf16.msra.mxu0 %v4982_v19  ;;  %1455 = vmatpush1.bf16.msra.mxu1 %v4983_v20  ;;  %v565_v51 = vpack.c.bf16 %v553_v48, %v549_v47  ;;  %v5028_v53 = vld [vmem:[%s6180_s28 + $0x18c] ss:$16 sps:$4 sm:$0xff]   ;;  %v5031_v55 = vld [vmem:[%s6180_s28 + $0x188] ss:$16 sps:$4 sm:$0xff]   ;;  %v5038_v60 = vld [vmem:[%s6180_s28 + $0x1c4] ss:$16 sps:$4 sm:$0xff]  }
  0xdc   : > { %1350 = vmatprep.subr.bf16.mxu0 %v4984_v21  ;;  %1456 = vmatprep.subr.bf16.mxu1 %v4986_v22  ;;  %v5034_v57 = vld [vmem:[%s6180_s28 + $0x1ac] ss:$16 sps:$4 sm:$0xff]   ;;  %v5037_v59 = vld [vmem:[%s6180_s28 + $0x1a8] ss:$16 sps:$4 sm:$0xff]   ;;  %v5042_v62 = vld [vmem:[%s6180_s28 + $0x1c0] ss:$16 sps:$4 sm:$0xff]  }
  0xdd   : > { %1372 = vmatprep.mubr.bf16.mxu0 %v565_v51  ;;  %1478 = vmatprep.mubr.bf16.mxu1 %v565_v51  ;;  %v5040_v61 = vld [vmem:[%s6180_s28 + $0x1cc] ss:$16 sps:$4 sm:$0xff]   ;;  %v5043_v63 = vld [vmem:[%s6180_s28 + $0x1c8] ss:$16 sps:$4 sm:$0xff]   ;;  %v5044_v0 = vld [vmem:[%s6180_s28 + $0x1e4] ss:$16 sps:$4 sm:$0xff]  }
  0xde   : > { %v5046_v1 = vld [vmem:[%s6180_s28 + $0x1ec] ss:$16 sps:$4 sm:$0xff]   ;;  %v5048_v2 = vld [vmem:[%s6180_s28 + $0x1e0] ss:$16 sps:$4 sm:$0xff]   ;;  %v5049_v3 = vld [vmem:[%s6180_s28 + $0x1e8] ss:$16 sps:$4 sm:$0xff]  }
  0xdf   : > { %1351 = vmatpush1.bf16.msra.mxu0 %v4988_v23  ;;  %1457 = vmatpush1.bf16.msra.mxu1 %v4989_v24  ;;  %v5052_v4 = vld [vmem:[%s6180_s28 + $0x204] ss:$16 sps:$4 sm:$0xff]   ;;  %v5055_v7 = vld [vmem:[%s6180_s28 + $0x20c] ss:$16 sps:$4 sm:$0xff]   ;;  %v5050_v8 = vld [vmem:[%s6180_s28 + $0x200] ss:$16 sps:$4 sm:$0xff]  }
  0xe0   : > { %1352 = vmatprep.subr.bf16.mxu0 %v4990_v25  ;;  %1458 = vmatprep.subr.bf16.mxu1 %v4992_v26  ;;  %v548_v5 = vld [vmem:[%s6173_s9] sm:$0xff]  ;;  %v5053_v9 = vld [vmem:[%s6180_s28 + $0x208] ss:$16 sps:$4 sm:$0xff]   ;;  %v5061_v12 = vld [vmem:[%s6180_s28 + $0x22c] ss:$16 sps:$4 sm:$0xff]   ;;  %s6802_s10 = sld [smem:[#allocation27_spill]] (!%p4426_p4) }
  0xe1   : > { %v552_v6 = vld [vmem:[%s6173_s9 + $0x20] sm:$0xff]  ;;  %v5059_v14 = vld [vmem:[%s6180_s28 + $0x228] ss:$16 sps:$4 sm:$0xff]   ;;  %v5067_v16 = vld [vmem:[%s6180_s28 + $0x24c] ss:$16 sps:$4 sm:$0xff]  }
  0xe2   : > { %v564_v10 = vpack.c.bf16 %v552_v6, %v548_v5  ;;  %v5058_v11 = vld [vmem:[%s6180_s28 + $0x224] ss:$16 sps:$4 sm:$0xff]   ;;  %v5056_v13 = vld [vmem:[%s6180_s28 + $0x220] ss:$16 sps:$4 sm:$0xff]   ;;  %v5065_v18 = vld [vmem:[%s6180_s28 + $0x248] ss:$16 sps:$4 sm:$0xff]  }
  0xe3   : > { %1353 = vmatpush1.bf16.msra.mxu0 %v4994_v27  ;;  %1459 = vmatpush1.bf16.msra.mxu1 %v4995_v28  ;;  %v5064_v15 = vld [vmem:[%s6180_s28 + $0x244] ss:$16 sps:$4 sm:$0xff]   ;;  %v5062_v17 = vld [vmem:[%s6180_s28 + $0x240] ss:$16 sps:$4 sm:$0xff]   ;;  %v5073_v20 = vld [vmem:[%s6180_s28 + $0x26c] ss:$16 sps:$4 sm:$0xff]  }
  0xe4   : > { %1354 = vmatprep.subr.bf16.mxu0 %v4996_v29  ;;  %1460 = vmatprep.subr.bf16.mxu1 %v4998_v30  ;;  %v5070_v19 = vld [vmem:[%s6180_s28 + $0x264] ss:$16 sps:$4 sm:$0xff]   ;;  %v5068_v21 = vld [vmem:[%s6180_s28 + $0x260] ss:$16 sps:$4 sm:$0xff]   ;;  %v5071_v22 = vld [vmem:[%s6180_s28 + $0x268] ss:$16 sps:$4 sm:$0xff]  }
  0xe5   : > { %v5076_v23 = vld [vmem:[%s6180_s28 + $0x284] ss:$16 sps:$4 sm:$0xff]   ;;  %v5079_v24 = vld [vmem:[%s6180_s28 + $0x28c] ss:$16 sps:$4 sm:$0xff]   ;;  %v5074_v25 = vld [vmem:[%s6180_s28 + $0x280] ss:$16 sps:$4 sm:$0xff]  }
  0xe6   : > { %v5077_v26 = vld [vmem:[%s6180_s28 + $0x288] ss:$16 sps:$4 sm:$0xff]   ;;  %v5082_v27 = vld [vmem:[%s6180_s28 + $0x2a4] ss:$16 sps:$4 sm:$0xff]   ;;  %v5085_v28 = vld [vmem:[%s6180_s28 + $0x2ac] ss:$16 sps:$4 sm:$0xff]  }
  0xe7   : > { %1355 = vmatpush1.bf16.msra.mxu0 %v5000_v31  ;;  %1461 = vmatpush1.bf16.msra.mxu1 %v5001_v32  ;;  %v557_v29 = vld [vmem:[%s6173_s9 + $0x48] sm:$0xff]  ;;  %v556_v32 = vld [vmem:[%s6173_s9 + $0x40] sm:$0xff] }
  0xe8   : > { %1356 = vmatprep.subr.bf16.mxu0 %v5002_v33  ;;  %1462 = vmatprep.subr.bf16.mxu1 %v5004_v34  ;;  %v561_v30 = vld [vmem:[%s6173_s9 + $0x68] sm:$0xff]  ;;  %v560_v33 = vld [vmem:[%s6173_s9 + $0x60] sm:$0xff] }
  0xe9   : > { %v569_v31 = vpack.c.bf16 %v561_v30, %v557_v29  ;;  %v5080_v34 = vld [vmem:[%s6180_s28 + $0x2a0] ss:$16 sps:$4 sm:$0xff]   ;;  %v5095_v47 = vld [vmem:[%s6180_s28 + $0x2e8] ss:$16 sps:$4 sm:$0xff]   ;;  %v5100_v48 = vld [vmem:[%s6180_s28 + $0x304] ss:$16 sps:$4 sm:$0xff]  }
  0xea   : > { %v5101_v51 = vld [vmem:[%s6180_s28 + $0x308] ss:$16 sps:$4 sm:$0xff]   ;;  %v5133_v5 = vld [vmem:[%s6180_s28 + $0x3ac] ss:$16 sps:$4 sm:$0xff]   ;;  %v5128_v6 = vld [vmem:[%s6180_s28 + $0x3a0] ss:$16 sps:$4 sm:$0xff]  }
  0xeb   : > { %1357 = vmatpush1.bf16.msra.mxu0 %v5006_v35  ;;  %1463 = vmatpush1.bf16.msra.mxu1 %v5007_v36  ;;  %v5083_v35 = vld [vmem:[%s6180_s28 + $0x2a8] ss:$16 sps:$4 sm:$0xff]   ;;  %v568_v36 = vpack.c.bf16 %v560_v33, %v556_v32  ;;  %v538_v32 = vld [vmem:[#allocation2 + $0x30] sm:$0xff] }
  0xec   : > { %1358 = vmatprep.subr.bf16.mxu0 %v5008_v37  ;;  %1464 = vmatprep.subr.bf16.mxu1 %v5010_v38  ;;  %v5088_v37 = vld [vmem:[%s6180_s28 + $0x2c4] ss:$16 sps:$4 sm:$0xff]   ;;  %v5091_v38 = vld [vmem:[%s6180_s28 + $0x2cc] ss:$16 sps:$4 sm:$0xff]  }
  0xef   : > { %1359 = vmatpush1.bf16.msra.mxu0 %v5012_v39  ;;  %1465 = vmatpush1.bf16.msra.mxu1 %v5013_v40  ;;  %v5086_v39 = vld [vmem:[%s6180_s28 + $0x2c0] ss:$16 sps:$4 sm:$0xff]   ;;  %v5089_v40 = vld [vmem:[%s6180_s28 + $0x2c8] ss:$16 sps:$4 sm:$0xff]  }
  0xf0   : > { %1360 = vmatprep.subr.bf16.mxu0 %v5014_v41  ;;  %1466 = vmatprep.subr.bf16.mxu1 %v5016_v42  ;;  %v551_v41 = vld [vmem:[%s6173_s9 + $0x18] sm:$0xff] }
  0xf1   : > { %v555_v42 = vld [vmem:[%s6173_s9 + $0x38] sm:$0xff] }
  0xf3   : > { %1361 = vmatpush1.bf16.msra.mxu0 %v5018_v43  ;;  %1467 = vmatpush1.bf16.msra.mxu1 %v5019_v44  ;;  %v5094_v43 = vld [vmem:[%s6180_s28 + $0x2e4] ss:$16 sps:$4 sm:$0xff]   ;;  %v5097_v44 = vld [vmem:[%s6180_s28 + $0x2ec] ss:$16 sps:$4 sm:$0xff]  }
  0xf4   : > { %1362 = vmatprep.subr.bf16.mxu0 %v5020_v45  ;;  %1468 = vmatprep.subr.bf16.mxu1 %v5022_v46  ;;  %v567_v45 = vpack.c.bf16 %v555_v42, %v551_v41  ;;  %v5092_v46 = vld [vmem:[%s6180_s28 + $0x2e0] ss:$16 sps:$4 sm:$0xff]  }
  0xf7   : > { %1363 = vmatpush1.bf16.msra.mxu0 %v5024_v49  ;;  %1469 = vmatpush1.bf16.msra.mxu1 %v5025_v50  ;;  %v5103_v49 = vld [vmem:[%s6180_s28 + $0x30c] ss:$16 sps:$4 sm:$0xff]   ;;  %v5098_v50 = vld [vmem:[%s6180_s28 + $0x300] ss:$16 sps:$4 sm:$0xff]  }
  0xf8   : > { %1364 = vmatprep.subr.bf16.mxu0 %v5026_v52  ;;  %1470 = vmatprep.subr.bf16.mxu1 %v5028_v53  ;;  %v5106_v52 = vld [vmem:[%s6180_s28 + $0x324] ss:$16 sps:$4 sm:$0xff]   ;;  %v5109_v53 = vld [vmem:[%s6180_s28 + $0x32c] ss:$16 sps:$4 sm:$0xff]  }
  0xfb   : > { %1365 = vmatpush1.bf16.msra.mxu0 %v5030_v54  ;;  %1471 = vmatpush1.bf16.msra.mxu1 %v5031_v55  ;;  %v5104_v54 = vld [vmem:[%s6180_s28 + $0x320] ss:$16 sps:$4 sm:$0xff]   ;;  %v5107_v55 = vld [vmem:[%s6180_s28 + $0x328] ss:$16 sps:$4 sm:$0xff]  }
  0xfc   : > { %1366 = vmatprep.subr.bf16.mxu0 %v5032_v56  ;;  %1472 = vmatprep.subr.bf16.mxu1 %v5034_v57  ;;  %v5112_v56 = vld [vmem:[%s6180_s28 + $0x344] ss:$16 sps:$4 sm:$0xff]   ;;  %v5115_v57 = vld [vmem:[%s6180_s28 + $0x34c] ss:$16 sps:$4 sm:$0xff]  }
  0xff   : > { %1367 = vmatpush1.bf16.msra.mxu0 %v5036_v58  ;;  %1473 = vmatpush1.bf16.msra.mxu1 %v5037_v59  ;;  %v5110_v58 = vld [vmem:[%s6180_s28 + $0x340] ss:$16 sps:$4 sm:$0xff]   ;;  %v5113_v59 = vld [vmem:[%s6180_s28 + $0x348] ss:$16 sps:$4 sm:$0xff]  }
 0x100   : > { %1368 = vmatprep.subr.bf16.mxu0 %v5038_v60  ;;  %1474 = vmatprep.subr.bf16.mxu1 %v5040_v61  ;;  %v5118_v60 = vld [vmem:[%s6180_s28 + $0x364] ss:$16 sps:$4 sm:$0xff]   ;;  %v5121_v61 = vld [vmem:[%s6180_s28 + $0x36c] ss:$16 sps:$4 sm:$0xff]  }
 0x103   : > { %1369 = vmatpush1.bf16.msra.mxu0 %v5042_v62  ;;  %1475 = vmatpush1.bf16.msra.mxu1 %v5043_v63  ;;  %v5116_v62 = vld [vmem:[%s6180_s28 + $0x360] ss:$16 sps:$4 sm:$0xff]   ;;  %v5119_v63 = vld [vmem:[%s6180_s28 + $0x368] ss:$16 sps:$4 sm:$0xff]  }
 0x104   : > { %1370 = vmatprep.subr.bf16.mxu0 %v5044_v0  ;;  %1476 = vmatprep.subr.bf16.mxu1 %v5046_v1  ;;  %v5124_v0 = vld [vmem:[%s6180_s28 + $0x384] ss:$16 sps:$4 sm:$0xff]   ;;  %v5127_v1 = vld [vmem:[%s6180_s28 + $0x38c] ss:$16 sps:$4 sm:$0xff]  }
 0x107   : > { %1371 = vmatpush1.bf16.msra.mxu0 %v5048_v2  ;;  %1477 = vmatpush1.bf16.msra.mxu1 %v5049_v3  ;;  %v5122_v2 = vld [vmem:[%s6180_s28 + $0x380] ss:$16 sps:$4 sm:$0xff]   ;;  %v5125_v3 = vld [vmem:[%s6180_s28 + $0x388] ss:$16 sps:$4 sm:$0xff]  }
 0x108   : > { %1393 = vmatprep.subr.bf16.mxu0 %v5052_v4  ;;  %1499 = vmatprep.subr.bf16.mxu1 %v5055_v7  ;;  %v5130_v4 = vld [vmem:[%s6180_s28 + $0x3a4] ss:$16 sps:$4 sm:$0xff]   ;;  %v5131_v7 = vld [vmem:[%s6180_s28 + $0x3a8] ss:$16 sps:$4 sm:$0xff]  }
 0x10a   : > { %1373 = vmatmul.mubr.bf16.vlgmr.msra.gmra.mrb[0].mxu0 %v564_v10  ;;  %1479 = vmatmul.mubr.bf16.vlgmr.msra.gmra.mrb[0].mxu1 %v564_v10  ;;  %v5134_v10 = vld [vmem:[%s6180_s28 + $0x3c0] ss:$16 sps:$4 sm:$0xff]  }
 0x10b   : > { %1394 = vmatpush1.bf16.msra.mxu0 %v5050_v8  ;;  %1500 = vmatpush1.bf16.msra.mxu1 %v5053_v9  ;;  %v5136_v8 = vld [vmem:[%s6180_s28 + $0x3c4] ss:$16 sps:$4 sm:$0xff]   ;;  %v5139_v9 = vld [vmem:[%s6180_s28 + $0x3cc] ss:$16 sps:$4 sm:$0xff]  }
 0x10c   : > { %1395 = vmatprep.subr.bf16.mxu0 %v5058_v11  ;;  %1501 = vmatprep.subr.bf16.mxu1 %v5061_v12  ;;  %v5137_v11 = vld [vmem:[%s6180_s28 + $0x3c8] ss:$16 sps:$4 sm:$0xff]   ;;  %v5142_v12 = vld [vmem:[%s6180_s28 + $0x3e4] ss:$16 sps:$4 sm:$0xff]  }
 0x10d   : > { %1382 = vmatprep.mubr.bf16.mxu0 %v569_v31  ;;  %1488 = vmatprep.mubr.bf16.mxu1 %v569_v31  ;;  %v536_v31 = vld [vmem:[#allocation2 + $0x20] sm:$0xff] }
 0x10f   : > { %1396 = vmatpush1.bf16.msra.mxu0 %v5056_v13  ;;  %1502 = vmatpush1.bf16.msra.mxu1 %v5059_v14  ;;  %v5145_v13 = vld [vmem:[%s6180_s28 + $0x3ec] ss:$16 sps:$4 sm:$0xff]   ;;  %v5140_v14 = vld [vmem:[%s6180_s28 + $0x3e0] ss:$16 sps:$4 sm:$0xff]  }
 0x110   : > { %1397 = vmatprep.subr.bf16.mxu0 %v5064_v15  ;;  %1503 = vmatprep.subr.bf16.mxu1 %v5067_v16  ;;  %v5143_v15 = vld [vmem:[%s6180_s28 + $0x3e8] ss:$16 sps:$4 sm:$0xff]   ;;  %v550_v16 = vld [vmem:[%s6173_s9 + $0x10] sm:$0xff] }
 0x112   : > { %1383 = vmatmul.mubr.bf16.gmra.mrb[4].mxu0 %v568_v36  ;;  %1489 = vmatmul.mubr.bf16.gmra.mrb[4].mxu1 %v568_v36 }
 0x113   : > { %1398 = vmatpush1.bf16.msra.mxu0 %v5062_v17  ;;  %1504 = vmatpush1.bf16.msra.mxu1 %v5065_v18  ;;  %v554_v17 = vld [vmem:[%s6173_s9 + $0x30] sm:$0xff]  ;;  %v559_v18 = vld [vmem:[%s6173_s9 + $0x58] sm:$0xff] }
 0x114   : > { %1399 = vmatprep.subr.bf16.mxu0 %v5070_v19  ;;  %1505 = vmatprep.subr.bf16.mxu1 %v5073_v20  ;;  %v563_v19 = vld [vmem:[%s6173_s9 + $0x78] sm:$0xff]  ;;  %v566_v20 = vpack.c.bf16 %v554_v17, %v550_v16  ;;  %v5158_v17 = vld [vmem:[#allocation8 + $0x44] ss:$16 sps:$4 sm:$0xff] (!%p4426_p4)  }
 0x115   : > { %1425 = vmatprep.mubr.bf16.mxu0 %v567_v45  ;;  %1531 = vmatprep.mubr.bf16.mxu1 %v567_v45  ;;  %v5157_v16 = vld [vmem:[#allocation8 + $0x28] ss:$16 sps:$4 sm:$0xff] (!%p4426_p4)  }
 0x117   : > { %1400 = vmatpush1.bf16.msra.mxu0 %v5068_v21  ;;  %1506 = vmatpush1.bf16.msra.mxu1 %v5071_v22  ;;  %v571_v21 = vpack.c.bf16 %v563_v19, %v559_v18  ;;  %v558_v22 = vld [vmem:[%s6173_s9 + $0x50] sm:$0xff]  ;;  %v5160_v18 = vld [vmem:[#allocation8 + $0x4c] ss:$16 sps:$4 sm:$0xff] (!%p4426_p4)  }
 0x118   : > { %1401 = vmatprep.subr.bf16.mxu0 %v5076_v23  ;;  %1507 = vmatprep.subr.bf16.mxu1 %v5079_v24  ;;  %v562_v23 = vld [vmem:[%s6173_s9 + $0x70] sm:$0xff] }
 0x119   : > { %v570_v24 = vpack.c.bf16 %v562_v23, %v558_v22  ;;  %v5162_v19 = vld [vmem:[#allocation8 + $0x40] ss:$16 sps:$4 sm:$0xff] (!%p4426_p4)   ;;  %v5166_v22 = vld [vmem:[#allocation8 + $0x6c] ss:$16 sps:$4 sm:$0xff] (!%p4426_p4)  }
 0x11a   : > { %v5168_v23 = vld [vmem:[#allocation8 + $0x60] ss:$16 sps:$4 sm:$0xff] (!%p4426_p4)  }
 0x11b   : > { %1402 = vmatpush1.bf16.msra.mxu0 %v5074_v25  ;;  %1508 = vmatpush1.bf16.msra.mxu1 %v5077_v26  ;;  %v532_v25 = vld [vmem:[#allocation2] sm:$0xff]  ;;  %v534_v26 = vld [vmem:[#allocation2 + $0x10] sm:$0xff] }
 0x11c   : > { %1403 = vmatprep.subr.bf16.mxu0 %v5082_v27  ;;  %1509 = vmatprep.subr.bf16.mxu1 %v5085_v28  ;;  %v533_v27 = vld [vmem:[#allocation2 + $0x8] sm:$0xff]  ;;  %v535_v28 = vld [vmem:[#allocation2 + $0x18] sm:$0xff] }
 0x11f   : > { %1404 = vmatpush1.bf16.msra.mxu0 %v5080_v34  ;;  %1510 = vmatpush1.bf16.msra.mxu1 %v5083_v35 }
 0x120   : > { %1405 = vmatprep.subr.bf16.mxu0 %v5088_v37  ;;  %1511 = vmatprep.subr.bf16.mxu1 %v5091_v38  ;;  %v537_v37 = vld [vmem:[#allocation2 + $0x28] sm:$0xff]  ;;  %v539_v38 = vld [vmem:[#allocation2 + $0x38] sm:$0xff] }
 0x123   : > { %1406 = vmatpush1.bf16.msra.mxu0 %v5086_v39  ;;  %1512 = vmatpush1.bf16.msra.mxu1 %v5089_v40 }
 0x124   : > { %1407 = vmatprep.subr.bf16.mxu0 %v5094_v43  ;;  %1513 = vmatprep.subr.bf16.mxu1 %v5097_v44 }
 0x127   : > { %1408 = vmatpush1.bf16.msra.mxu0 %v5092_v46  ;;  %1514 = vmatpush1.bf16.msra.mxu1 %v5095_v47 }
 0x128   : > { %1409 = vmatprep.subr.bf16.mxu0 %v5100_v48  ;;  %1515 = vmatprep.subr.bf16.mxu1 %v5103_v49  ;;  %v540_v49 = vld [vmem:[#allocation2 + $0x40] sm:$0xff] }
 0x12b   : > { %1410 = vmatpush1.bf16.msra.mxu0 %v5098_v50  ;;  %1516 = vmatpush1.bf16.msra.mxu1 %v5101_v51  ;;  %v542_v50 = vld [vmem:[#allocation2 + $0x50] sm:$0xff]  ;;  %v541_v51 = vld [vmem:[#allocation2 + $0x48] sm:$0xff] }
 0x12c   : > { %1411 = vmatprep.subr.bf16.mxu0 %v5106_v52  ;;  %1517 = vmatprep.subr.bf16.mxu1 %v5109_v53  ;;  %v543_v52 = vld [vmem:[#allocation2 + $0x58] sm:$0xff] }
 0x12f   : > { %1412 = vmatpush1.bf16.msra.mxu0 %v5104_v54  ;;  %1518 = vmatpush1.bf16.msra.mxu1 %v5107_v55  ;;  %v544_v55 = vld [vmem:[#allocation2 + $0x60] sm:$0xff] }
 0x130   : > { %1413 = vmatprep.subr.bf16.mxu0 %v5112_v56  ;;  %1519 = vmatprep.subr.bf16.mxu1 %v5115_v57  ;;  %v546_v56 = vld [vmem:[#allocation2 + $0x70] sm:$0xff] }
 0x133   : > { %1414 = vmatpush1.bf16.msra.mxu0 %v5110_v58  ;;  %1520 = vmatpush1.bf16.msra.mxu1 %v5113_v59 }
 0x134   : > { %1415 = vmatprep.subr.bf16.mxu0 %v5118_v60  ;;  %1521 = vmatprep.subr.bf16.mxu1 %v5121_v61  ;;  %v545_v61 = vld [vmem:[#allocation2 + $0x68] sm:$0xff] }
 0x137   : > { %1416 = vmatpush1.bf16.msra.mxu0 %v5116_v62  ;;  %1522 = vmatpush1.bf16.msra.mxu1 %v5119_v63  ;;  %v547_v62 = vld [vmem:[#allocation2 + $0x78] sm:$0xff] }
 0x138   : > { %1417 = vmatprep.subr.bf16.mxu0 %v5124_v0  ;;  %1523 = vmatprep.subr.bf16.mxu1 %v5127_v1 }
 0x13b   : > { %1418 = vmatpush1.bf16.msra.mxu0 %v5122_v2  ;;  %1524 = vmatpush1.bf16.msra.mxu1 %v5125_v3 }
 0x13c   : > { %1419 = vmatprep.subr.bf16.mxu0 %v5130_v4  ;;  %1525 = vmatprep.subr.bf16.mxu1 %v5133_v5 }
 0x13f   : > { %1420 = vmatpush1.bf16.msra.mxu0 %v5128_v6  ;;  %1526 = vmatpush1.bf16.msra.mxu1 %v5131_v7 }
 0x140   : > { %1421 = vmatprep.subr.bf16.mxu0 %v5136_v8  ;;  %1527 = vmatprep.subr.bf16.mxu1 %v5139_v9  ;;  %v5146_v9 = vld [vmem:[#allocation8 + $0x4] ss:$16 sps:$4 sm:$0xff] (!%p4426_p4)  }
 0x143   : > { %1422 = vmatpush1.bf16.msra.mxu0 %v5134_v10  ;;  %1528 = vmatpush1.bf16.msra.mxu1 %v5137_v11  ;;  %v5148_v10 = vld [vmem:[#allocation8 + $0xc] ss:$16 sps:$4 sm:$0xff] (!%p4426_p4)   ;;  %v5150_v11 = vld [vmem:[#allocation8] ss:$16 sps:$4 sm:$0xff] (!%p4426_p4)  }
 0x144   : > { %1423 = vmatprep.subr.bf16.mxu0 %v5142_v12  ;;  %1529 = vmatprep.subr.bf16.mxu1 %v5145_v13  ;;  %v5151_v12 = vld [vmem:[#allocation8 + $0x8] ss:$16 sps:$4 sm:$0xff] (!%p4426_p4)   ;;  %v5152_v13 = vld [vmem:[#allocation8 + $0x24] ss:$16 sps:$4 sm:$0xff] (!%p4426_p4)  }
 0x147   : > { %1424 = vmatpush1.bf16.msra.mxu0 %v5140_v14  ;;  %1530 = vmatpush1.bf16.msra.mxu1 %v5143_v15  ;;  %v5154_v14 = vld [vmem:[#allocation8 + $0x2c] ss:$16 sps:$4 sm:$0xff] (!%p4426_p4)   ;;  %v5156_v15 = vld [vmem:[#allocation8 + $0x20] ss:$16 sps:$4 sm:$0xff] (!%p4426_p4)  }
 0x148   : > { %2456 = vmatprep.subr.bf16.mxu0 (!%p4426_p4), %v5146_v9  ;;  %2562 = vmatprep.subr.bf16.mxu1 (!%p4426_p4), %v5148_v10  ;;  %v5224_v9 = vld [vmem:[#allocation8 + $0x1a4] ss:$16 sps:$4 sm:$0xff] (!%p4426_p4)   ;;  %v5226_v10 = vld [vmem:[#allocation8 + $0x1ac] ss:$16 sps:$4 sm:$0xff] (!%p4426_p4)  }
 0x14a   : > { %1426 = vmatmul.mubr.bf16.vlgmr.msra.gmra.mrb[0].mxu0 %v566_v20  ;;  %1532 = vmatmul.mubr.bf16.vlgmr.msra.gmra.mrb[0].mxu1 %v566_v20  ;;  %v5163_v20 = vld [vmem:[#allocation8 + $0x48] ss:$16 sps:$4 sm:$0xff] (!%p4426_p4)  }
 0x14b   : > { %1435 = vmatprep.mubr.bf16.mxu0 %v571_v21  ;;  %1541 = vmatprep.mubr.bf16.mxu1 %v571_v21  ;;  %v5164_v21 = vld [vmem:[#allocation8 + $0x64] ss:$16 sps:$4 sm:$0xff] (!%p4426_p4)  }
 0x14c   : > { %2457 = vmatpush1.bf16.msra.mxu0 (!%p4426_p4), %v5150_v11  ;;  %2563 = vmatpush1.bf16.msra.mxu1 (!%p4426_p4), %v5151_v12  ;;  %v5228_v11 = vld [vmem:[#allocation8 + $0x1a0] ss:$16 sps:$4 sm:$0xff] (!%p4426_p4)  }
 0x14d   : > { %2458 = vmatprep.subr.bf16.mxu0 (!%p4426_p4), %v5152_v13  ;;  %2564 = vmatprep.subr.bf16.mxu1 (!%p4426_p4), %v5154_v14  ;;  %v5229_v13 = vld [vmem:[#allocation8 + $0x1a8] ss:$16 sps:$4 sm:$0xff] (!%p4426_p4)  }
 0x150   : > { %2459 = vmatpush1.bf16.msra.mxu0 (!%p4426_p4), %v5156_v15  ;;  %2565 = vmatpush1.bf16.msra.mxu1 (!%p4426_p4), %v5157_v16 }
 0x151   : > { %2460 = vmatprep.subr.bf16.mxu0 (!%p4426_p4), %v5158_v17  ;;  %2566 = vmatprep.subr.bf16.mxu1 (!%p4426_p4), %v5160_v18  ;;  %v5230_v17 = vld [vmem:[#allocation8 + $0x1c4] ss:$16 sps:$4 sm:$0xff] (!%p4426_p4)   ;;  %v5232_v18 = vld [vmem:[#allocation8 + $0x1cc] ss:$16 sps:$4 sm:$0xff] (!%p4426_p4)  }
 0x152   : > { %1436 = vmatmul.mubr.bf16.gmra.mrb[4].mxu0 %v570_v24  ;;  %1542 = vmatmul.mubr.bf16.gmra.mrb[4].mxu1 %v570_v24  ;;  %v5169_v24 = vld [vmem:[#allocation8 + $0x68] ss:$16 sps:$4 sm:$0xff] (!%p4426_p4)  }
 0x154   : > { %2461 = vmatpush1.bf16.msra.mxu0 (!%p4426_p4), %v5162_v19  ;;  %2567 = vmatpush1.bf16.msra.mxu1 (!%p4426_p4), %v5163_v20 }
 0x155   : > { %2462 = vmatprep.subr.bf16.mxu0 (!%p4426_p4), %v5164_v21  ;;  %2568 = vmatprep.subr.bf16.mxu1 (!%p4426_p4), %v5166_v22  ;;  %v5234_v21 = vld [vmem:[#allocation8 + $0x1c0] ss:$16 sps:$4 sm:$0xff] (!%p4426_p4)   ;;  %v5235_v22 = vld [vmem:[#allocation8 + $0x1c8] ss:$16 sps:$4 sm:$0xff] (!%p4426_p4)  }
 0x158   : > { %2463 = vmatpush1.bf16.msra.mxu0 (!%p4426_p4), %v5168_v23  ;;  %2569 = vmatpush1.bf16.msra.mxu1 (!%p4426_p4), %v5169_v24  ;;  %v5236_v23 = vld [vmem:[#allocation8 + $0x1e4] ss:$16 sps:$4 sm:$0xff] (!%p4426_p4)   ;;  %v5238_v24 = vld [vmem:[#allocation8 + $0x1ec] ss:$16 sps:$4 sm:$0xff] (!%p4426_p4)  }
 0x21d   : > { %v1427_v29 = vpop.f32.mrb[0].mxu0  ;;  %v1533_v30 = vpop.f32.mrb[0].mxu1 }
 0x21e   : > { %v1552_v33 = vadd.f32 %v1427_v29, %v532_v25  ;;  %v1554_v34 = vadd.f32 %v1533_v30, %v534_v26  ;;  %v1429_v35 = vpop.f32.mrb[1].mxu0  ;;  %v1535_v36 = vpop.f32.mrb[1].mxu1  ;;  %v5170_v25 = vld [vmem:[#allocation8 + $0x84] ss:$16 sps:$4 sm:$0xff] (!%p4426_p4)   ;;  %v5172_v26 = vld [vmem:[#allocation8 + $0x8c] ss:$16 sps:$4 sm:$0xff] (!%p4426_p4)  }
 0x21f   : > { %v1553_v39 = vadd.f32 %v1429_v35, %v533_v27  ;;  %v1555_v40 = vadd.f32 %v1535_v36, %v535_v28  ;;  %v1431_v41 = vpop.f32.mrb[2].mxu0  ;;  %v1537_v42 = vpop.f32.mrb[2].mxu1  ;;  %v5174_v27 = vld [vmem:[#allocation8 + $0x80] ss:$16 sps:$4 sm:$0xff] (!%p4426_p4)   ;;  %v5175_v28 = vld [vmem:[#allocation8 + $0x88] ss:$16 sps:$4 sm:$0xff] (!%p4426_p4)   ;;  %2464 = vmatprep.subr.bf16.mxu0 (!%p4426_p4), %v5170_v25  ;;  %2570 = vmatprep.subr.bf16.mxu1 (!%p4426_p4), %v5172_v26 }
 0x220   : > { %1568 = vst [vmem:[#allocation2] sm:$0xff] %v1552_v33  ;;  %1570 = vst [vmem:[#allocation2 + $0x10] sm:$0xff] %v1554_v34  ;;  %v1556_v43 = vadd.f32 %v1431_v41, %v536_v31  ;;  %v1558_v44 = vadd.f32 %v1537_v42, %v538_v32  ;;  %v1433_v45 = vpop.f32.mrb[3].mxu0  ;;  %v1539_v46 = vpop.f32.mrb[3].mxu1  ;;  %v5176_v29 = vld [vmem:[#allocation8 + $0xa4] ss:$16 sps:$4 sm:$0xff] (!%p4426_p4)   ;;  %2465 = vmatpush1.bf16.msra.mxu0 (!%p4426_p4), %v5174_v27  ;;  %2571 = vmatpush1.bf16.msra.mxu1 (!%p4426_p4), %v5175_v28 }
 0x221   : > { %1569 = vst [vmem:[#allocation2 + $0x8] sm:$0xff] %v1553_v39  ;;  %1571 = vst [vmem:[#allocation2 + $0x18] sm:$0xff] %v1555_v40  ;;  %v1557_v47 = vadd.f32 %v1433_v45, %v537_v37  ;;  %v1559_v48 = vadd.f32 %v1539_v46, %v539_v38  ;;  %v5178_v30 = vld [vmem:[#allocation8 + $0xac] ss:$16 sps:$4 sm:$0xff] (!%p4426_p4)   ;;  %v5180_v31 = vld [vmem:[#allocation8 + $0xa0] ss:$16 sps:$4 sm:$0xff] (!%p4426_p4)   ;;  %2466 = vmatprep.subr.bf16.mxu0 (!%p4426_p4), %v5176_v29  ;;  %v1606_v46 = vlaneseq (!%p4426_p4) }
 0x222   : > { %1572 = vst [vmem:[#allocation2 + $0x20] sm:$0xff] %v1556_v43  ;;  %1574 = vst [vmem:[#allocation2 + $0x30] sm:$0xff] %v1558_v44  ;;  %v5181_v32 = vld [vmem:[#allocation8 + $0xa8] ss:$16 sps:$4 sm:$0xff] (!%p4426_p4)   ;;  %v5182_v33 = vld [vmem:[#allocation8 + $0xc4] ss:$16 sps:$4 sm:$0xff] (!%p4426_p4)   ;;  %2572 = vmatprep.subr.bf16.mxu1 (!%p4426_p4), %v5178_v30 }
 0x223   : > { %1573 = vst [vmem:[#allocation2 + $0x28] sm:$0xff] %v1557_v47  ;;  %1575 = vst [vmem:[#allocation2 + $0x38] sm:$0xff] %v1559_v48  ;;  %v5184_v34 = vld [vmem:[#allocation8 + $0xcc] ss:$16 sps:$4 sm:$0xff] (!%p4426_p4)   ;;  %v5186_v35 = vld [vmem:[#allocation8 + $0xc0] ss:$16 sps:$4 sm:$0xff] (!%p4426_p4)  }
 0x224   : > { %v5187_v36 = vld [vmem:[#allocation8 + $0xc8] ss:$16 sps:$4 sm:$0xff] (!%p4426_p4)   ;;  %2467 = vmatpush1.bf16.msra.mxu0 (!%p4426_p4), %v5180_v31  ;;  %2573 = vmatpush1.bf16.msra.mxu1 (!%p4426_p4), %v5181_v32  ;;  %v5188_v37 = vld [vmem:[#allocation8 + $0xe4] ss:$16 sps:$4 sm:$0xff] (!%p4426_p4)   ;;  %v5190_v38 = vld [vmem:[#allocation8 + $0xec] ss:$16 sps:$4 sm:$0xff] (!%p4426_p4)  }
 0x225   : > { %v1437_v53 = vpop.f32.mrb[4].mxu0  ;;  %v1543_v54 = vpop.f32.mrb[4].mxu1  ;;  %1587 = sbr.rel (%p4426_p4) target bundleno = 1740 (0x6cc), region = 84  ;;  %2468 = vmatprep.subr.bf16.mxu0 (!%p4426_p4), %v5182_v33  ;;  %2574 = vmatprep.subr.bf16.mxu1 (!%p4426_p4), %v5184_v34  ;;  %v5192_v39 = vld [vmem:[#allocation8 + $0xe0] ss:$16 sps:$4 sm:$0xff] (!%p4426_p4)  }
 0x226   : > { %v1560_v57 = vadd.f32 %v1437_v53, %v540_v49  ;;  %v1562_v58 = vadd.f32 %v1543_v54, %v542_v50  ;;  %v1439_v59 = vpop.f32.mrb[5].mxu0  ;;  %v1545_v60 = vpop.f32.mrb[5].mxu1  ;;  %v5193_v40 = vld [vmem:[#allocation8 + $0xe8] ss:$16 sps:$4 sm:$0xff] (!%p4426_p4)   ;;  %v5194_v41 = vld [vmem:[#allocation8 + $0x104] ss:$16 sps:$4 sm:$0xff] (!%p4426_p4)  }
 0x227   : > { %v1561_v63 = vadd.f32 %v1439_v59, %v541_v51  ;;  %v1563_v0 = vadd.f32 %v1545_v60, %v543_v52  ;;  %v1441_v1 = vpop.f32.mrb[6].mxu0  ;;  %v1547_v2 = vpop.f32.mrb[6].mxu1  ;;  %v5196_v42 = vld [vmem:[#allocation8 + $0x10c] ss:$16 sps:$4 sm:$0xff] (!%p4426_p4)   ;;  %v5198_v43 = vld [vmem:[#allocation8 + $0x100] ss:$16 sps:$4 sm:$0xff] (!%p4426_p4)  }
 0x228   : > { %1576 = vst [vmem:[#allocation2 + $0x40] sm:$0xff] %v1560_v57  ;;  %1578 = vst [vmem:[#allocation2 + $0x50] sm:$0xff] %v1562_v58  ;;  %v1564_v3 = vadd.f32 %v1441_v1, %v544_v55  ;;  %v1566_v4 = vadd.f32 %v1547_v2, %v546_v56  ;;  %v1443_v5 = vpop.f32.mrb[7].mxu0  ;;  %v1549_v6 = vpop.f32.mrb[7].mxu1  ;;  %2469 = vmatpush1.bf16.msra.mxu0 (!%p4426_p4), %v5186_v35  ;;  %2575 = vmatpush1.bf16.msra.mxu1 (!%p4426_p4), %v5187_v36  ;;  %v5199_v44 = vld [vmem:[#allocation8 + $0x108] ss:$16 sps:$4 sm:$0xff] (!%p4426_p4)  }
 0x229   : > { %1577 = vst [vmem:[#allocation2 + $0x48] sm:$0xff] %v1561_v63  ;;  %1579 = vst [vmem:[#allocation2 + $0x58] sm:$0xff] %v1563_v0  ;;  %v1565_v7 = vadd.f32 %v1443_v5, %v545_v61  ;;  %v1567_v8 = vadd.f32 %v1549_v6, %v547_v62  ;;  %2470 = vmatprep.subr.bf16.mxu0 (!%p4426_p4), %v5188_v37  ;;  %2576 = vmatprep.subr.bf16.mxu1 (!%p4426_p4), %v5190_v38  ;;  %v5200_v45 = vld [vmem:[#allocation8 + $0x124] ss:$16 sps:$4 sm:$0xff] (!%p4426_p4)   ;;  %v5202_v47 = vld [vmem:[#allocation8 + $0x12c] ss:$16 sps:$4 sm:$0xff] (!%p4426_p4)  }
 0x22a   : > { %1580 = vst [vmem:[#allocation2 + $0x60] sm:$0xff] %v1564_v3  ;;  %1582 = vst [vmem:[#allocation2 + $0x70] sm:$0xff] %v1566_v4  ;;  %v5204_v48 = vld [vmem:[#allocation8 + $0x120] ss:$16 sps:$4 sm:$0xff] (!%p4426_p4)   ;;  %v5205_v49 = vld [vmem:[#allocation8 + $0x128] ss:$16 sps:$4 sm:$0xff] (!%p4426_p4)  }
 0x22b   : > { %1581 = vst [vmem:[#allocation2 + $0x68] sm:$0xff] %v1565_v7  ;;  %1583 = vst [vmem:[#allocation2 + $0x78] sm:$0xff] %v1567_v8  ;;  %v5206_v50 = vld [vmem:[#allocation8 + $0x144] ss:$16 sps:$4 sm:$0xff] (!%p4426_p4)   ;;  %v6340_v51 = vshrl.u32 (!%p4426_p4), %v1606_v46, 7  ;;  %v1589_v59 = vld [vmem:[#allocation2 + $0x8] sm:$0xff] (!%p4426_p4) }
 0x22c   : > { %2471 = vmatpush1.bf16.msra.mxu0 %v5192_v39  ;;  %2577 = vmatpush1.bf16.msra.mxu1 %v5193_v40  ;;  %v5208_v52 = vld [vmem:[#allocation8 + $0x14c] ss:$16 sps:$4 sm:$0xff]   ;;  %v5210_v53 = vld [vmem:[#allocation8 + $0x140] ss:$16 sps:$4 sm:$0xff]   ;;  %v5211_v54 = vld [vmem:[#allocation8 + $0x148] ss:$16 sps:$4 sm:$0xff]  }
 0x22d   : > { %2472 = vmatprep.subr.bf16.mxu0 %v5194_v41  ;;  %2578 = vmatprep.subr.bf16.mxu1 %v5196_v42  ;;  %v5212_v55 = vld [vmem:[#allocation8 + $0x164] ss:$16 sps:$4 sm:$0xff]   ;;  %v6343_v56 = vsub.s32 1, %v6340_v51  ;;  %v5214_v57 = vld [vmem:[#allocation8 + $0x16c] ss:$16 sps:$4 sm:$0xff]   ;;  %v6357_v5 = vsub.s32 0, %v6340_v51 }
 0x22e   : > { %v5216_v58 = vld [vmem:[#allocation8 + $0x160] ss:$16 sps:$4 sm:$0xff]   ;;  %v1593_v60 = vld [vmem:[#allocation2 + $0x28] sm:$0xff]  ;;  %v5218_v63 = vld [vmem:[#allocation8 + $0x184] ss:$16 sps:$4 sm:$0xff]  }
 0x22f   : > { %v6348_v61 = vld [vmem:[%s6748_s2] sm:$0xf]  ;;  %v5217_v62 = vld [vmem:[#allocation8 + $0x168] ss:$16 sps:$4 sm:$0xff]   ;;  %v5220_v1 = vld [vmem:[#allocation8 + $0x18c] ss:$16 sps:$4 sm:$0xff]  }
 0x230   : > { %2473 = vmatpush1.bf16.msra.mxu0 %v5198_v43  ;;  %2579 = vmatpush1.bf16.msra.mxu1 %v5199_v44  ;;  %v6352_v0 = vrot.slane %v6348_v61, %v6343_v56  ;;  %v5222_v4 = vld [vmem:[#allocation8 + $0x180] ss:$16 sps:$4 sm:$0xff]   ;;  %v5223_v6 = vld [vmem:[#allocation8 + $0x188] ss:$16 sps:$4 sm:$0xff]   ;;  %v6361_v14 = vrot.slane %v6348_v61, %v6357_v5  ;;  %v5244_v29 = vld [vmem:[#allocation8 + $0x204] ss:$16 sps:$4 sm:$0xff]  }
 0x231   : > { %2474 = vmatprep.subr.bf16.mxu0 %v5200_v45  ;;  %2580 = vmatprep.subr.bf16.mxu1 %v5202_v47  ;;  %v1588_v15 = vld [vmem:[#allocation2] sm:$0xff]  ;;  %v5241_v28 = vld [vmem:[#allocation8 + $0x1e8] ss:$16 sps:$4 sm:$0xff]   ;;  %v5247_v30 = vld [vmem:[#allocation8 + $0x20c] ss:$16 sps:$4 sm:$0xff]  }
 0x232   : > { %v1627_v2 = vadd.f32 %v6352_v0, %v1589_v59  ;;  %v1631_v3 = vadd.f32 %v6352_v0, %v1593_v60  ;;  %v1592_v16 = vld [vmem:[#allocation2 + $0x20] sm:$0xff]  ;;  %v1626_v19 = vadd.f32 %v6361_v14, %v1588_v15  ;;  %v5245_v33 = vld [vmem:[#allocation8 + $0x208] ss:$16 sps:$4 sm:$0xff]   ;;  %v5253_v35 = vld [vmem:[#allocation8 + $0x22c] ss:$16 sps:$4 sm:$0xff]  }
 0x233   : > { %v1630_v20 = vadd.f32 %v6361_v14, %v1592_v16  ;;  %v5240_v27 = vld [vmem:[#allocation8 + $0x1e0] ss:$16 sps:$4 sm:$0xff]   ;;  %v5250_v34 = vld [vmem:[#allocation8 + $0x224] ss:$16 sps:$4 sm:$0xff]   ;;  %v5251_v37 = vld [vmem:[#allocation8 + $0x228] ss:$16 sps:$4 sm:$0xff]  }
 0x234   : > { %2475 = vmatpush1.bf16.msra.mxu0 %v5204_v48  ;;  %2581 = vmatpush1.bf16.msra.mxu1 %v5205_v49  ;;  %v1643_v7 = vmax.f32 %v1627_v2, 0.0  ;;  %v1647_v8 = vmax.f32 %v1631_v3, 0.0  ;;  %v1642_v25 = vmax.f32 %v1626_v19, 0.0  ;;  %v5242_v32 = vld [vmem:[#allocation8 + $0x200] ss:$16 sps:$4 sm:$0xff]   ;;  %v1591_v16 = vld [vmem:[#allocation2 + $0x18] sm:$0xff] }
 0x235   : > { %2476 = vmatprep.subr.bf16.mxu0 %v5206_v50  ;;  %2582 = vmatprep.subr.bf16.mxu1 %v5208_v52  ;;  %v1646_v26 = vmax.f32 %v1630_v20, 0.0  ;;  %v5248_v36 = vld [vmem:[#allocation8 + $0x220] ss:$16 sps:$4 sm:$0xff]   ;;  %v5256_v38 = vld [vmem:[#allocation8 + $0x244] ss:$16 sps:$4 sm:$0xff]   ;;  %v6379_v20 = vsub.s32 2, %v6340_v51 }
 0x236   : > { %v1659_v12 = vpack.c.bf16 %v1647_v8, %v1643_v7  ;;  %v5259_v39 = vld [vmem:[#allocation8 + $0x24c] ss:$16 sps:$4 sm:$0xff]   ;;  %v5254_v40 = vld [vmem:[#allocation8 + $0x240] ss:$16 sps:$4 sm:$0xff]   ;;  %v5257_v41 = vld [vmem:[#allocation8 + $0x248] ss:$16 sps:$4 sm:$0xff]  }
 0x237   : > { %v1658_v31 = vpack.c.bf16 %v1646_v26, %v1642_v25  ;;  %v5262_v42 = vld [vmem:[#allocation8 + $0x264] ss:$16 sps:$4 sm:$0xff]   ;;  %v5265_v43 = vld [vmem:[#allocation8 + $0x26c] ss:$16 sps:$4 sm:$0xff]   ;;  %v5260_v44 = vld [vmem:[#allocation8 + $0x260] ss:$16 sps:$4 sm:$0xff]  }
 0x238   : > { %2477 = vmatpush1.bf16.msra.mxu0 %v5210_v53  ;;  %2583 = vmatpush1.bf16.msra.mxu1 %v5211_v54  ;;  %v5263_v45 = vld [vmem:[#allocation8 + $0x268] ss:$16 sps:$4 sm:$0xff]   ;;  %v5268_v46 = vld [vmem:[#allocation8 + $0x284] ss:$16 sps:$4 sm:$0xff]   ;;  %v5271_v47 = vld [vmem:[#allocation8 + $0x28c] ss:$16 sps:$4 sm:$0xff]  }
 0x239   : > { %2478 = vmatprep.subr.bf16.mxu0 %v5212_v55  ;;  %2584 = vmatprep.subr.bf16.mxu1 %v5214_v57  ;;  %v5266_v48 = vld [vmem:[#allocation8 + $0x280] ss:$16 sps:$4 sm:$0xff]   ;;  %v5269_v49 = vld [vmem:[#allocation8 + $0x288] ss:$16 sps:$4 sm:$0xff]   ;;  %v5274_v50 = vld [vmem:[#allocation8 + $0x2a4] ss:$16 sps:$4 sm:$0xff]  }
 0x23a   : > { %2488 = vmatprep.mubr.bf16.mxu0 %v1659_v12  ;;  %2594 = vmatprep.mubr.bf16.mxu1 %v1659_v12  ;;  %v5277_v52 = vld [vmem:[#allocation8 + $0x2ac] ss:$16 sps:$4 sm:$0xff]   ;;  %v5272_v53 = vld [vmem:[#allocation8 + $0x2a0] ss:$16 sps:$4 sm:$0xff]   ;;  %v5280_v2 = vld [vmem:[#allocation8 + $0x2c4] ss:$16 sps:$4 sm:$0xff]  }
 0x23b   : > { %v1597_v54 = vld [vmem:[#allocation2 + $0x48] sm:$0xff]  ;;  %v1596_v57 = vld [vmem:[#allocation2 + $0x40] sm:$0xff] }
 0x23c   : > { %2479 = vmatpush1.bf16.msra.mxu0 %v5216_v58  ;;  %2585 = vmatpush1.bf16.msra.mxu1 %v5217_v62  ;;  %v1601_v55 = vld [vmem:[#allocation2 + $0x68] sm:$0xff]  ;;  %v6366_v58 = vsub.s32 3, %v6340_v51  ;;  %v1635_v59 = vadd.f32 %v6352_v0, %v1597_v54  ;;  %v1600_v62 = vld [vmem:[#allocation2 + $0x60] sm:$0xff] }
 0x23d   : > { %2480 = vmatprep.subr.bf16.mxu0 %v5218_v63  ;;  %2586 = vmatprep.subr.bf16.mxu1 %v5220_v1  ;;  %v1639_v60 = vadd.f32 %v6352_v0, %v1601_v55  ;;  %v1634_v63 = vadd.f32 %v6361_v14, %v1596_v57  ;;  %v5275_v1 = vld [vmem:[#allocation8 + $0x2a8] ss:$16 sps:$4 sm:$0xff]   ;;  %v1638_v3 = vadd.f32 %v6361_v14, %v1600_v62  ;;  %v5278_v0 = vld [vmem:[#allocation8 + $0x2c0] ss:$16 sps:$4 sm:$0xff]   ;;  %v5289_v14 = vld [vmem:[#allocation8 + $0x2ec] ss:$16 sps:$4 sm:$0xff]  }
 0x23e   : > { %v5281_v12 = vld [vmem:[#allocation8 + $0x2c8] ss:$16 sps:$4 sm:$0xff]   ;;  %v5292_v25 = vld [vmem:[#allocation8 + $0x304] ss:$16 sps:$4 sm:$0xff]   ;;  %v5295_v26 = vld [vmem:[#allocation8 + $0x30c] ss:$16 sps:$4 sm:$0xff]  }
 0x23f   : > { %v1655_v7 = vmax.f32 %v1639_v60, 0.0  ;;  %v1650_v8 = vmax.f32 %v1634_v63, 0.0  ;;  %v5328_v54 = vld [vmem:[#allocation8 + $0x3c4] ss:$16 sps:$4 sm:$0xff]   ;;  %v5331_v55 = vld [vmem:[#allocation8 + $0x3cc] ss:$16 sps:$4 sm:$0xff]  }
 0x240   : > { %2481 = vmatpush1.bf16.msra.mxu0 %v5222_v4  ;;  %2587 = vmatpush1.bf16.msra.mxu1 %v5223_v6  ;;  %v5283_v4 = vld [vmem:[#allocation8 + $0x2cc] ss:$16 sps:$4 sm:$0xff]   ;;  %v1651_v6 = vmax.f32 %v1635_v59, 0.0  ;;  %v5326_v60 = vld [vmem:[#allocation8 + $0x3c0] ss:$16 sps:$4 sm:$0xff]  }
 0x241   : > { %2482 = vmatprep.subr.bf16.mxu0 %v5224_v9  ;;  %2588 = vmatprep.subr.bf16.mxu1 %v5226_v10  ;;  %v1654_v9 = vmax.f32 %v1638_v3, 0.0  ;;  %v6374_v10 = vrot.slane %v6348_v61, %v6366_v58  ;;  %v1599_v57 = vld [vmem:[#allocation2 + $0x58] sm:$0xff]  ;;  %v5334_v63 = vld [vmem:[#allocation8 + $0x3e4] ss:$16 sps:$4 sm:$0xff]  }
 0x242   : > { %v1603_v59 = vld [vmem:[#allocation2 + $0x78] sm:$0xff] }
 0x243   : > { %v1662_v15 = vpack.c.bf16 %v1654_v9, %v1650_v8  ;;  %v5329_v62 = vld [vmem:[#allocation8 + $0x3c8] ss:$16 sps:$4 sm:$0xff]   ;;  %v1598_v8 = vld [vmem:[#allocation2 + $0x50] sm:$0xff] }
 0x244   : > { %2483 = vmatpush1.bf16.msra.mxu0 %v5228_v11  ;;  %2589 = vmatpush1.bf16.msra.mxu1 %v5229_v13  ;;  %v1663_v11 = vpack.c.bf16 %v1655_v7, %v1651_v6  ;;  %v5286_v13 = vld [vmem:[#allocation8 + $0x2e4] ss:$16 sps:$4 sm:$0xff]   ;;  %v5332_v6 = vld [vmem:[#allocation8 + $0x3e0] ss:$16 sps:$4 sm:$0xff]   ;;  %v5335_v7 = vld [vmem:[#allocation8 + $0x3e8] ss:$16 sps:$4 sm:$0xff]  }
 0x245   : > { %2484 = vmatprep.subr.bf16.mxu0 %v5230_v17  ;;  %2590 = vmatprep.subr.bf16.mxu1 %v5232_v18  ;;  %v1595_v17 = vld [vmem:[#allocation2 + $0x38] sm:$0xff]  ;;  %v1629_v18 = vadd.f32 %v6374_v10, %v1591_v16  ;;  %v1602_v9 = vld [vmem:[#allocation2 + $0x70] sm:$0xff] }
 0x246   : > { %v1633_v19 = vadd.f32 %v6374_v10, %v1595_v17 }
 0x248   : > { %2485 = vmatpush1.bf16.msra.mxu0 %v5234_v21  ;;  %2591 = vmatpush1.bf16.msra.mxu1 %v5235_v22  ;;  %v5284_v21 = vld [vmem:[#allocation8 + $0x2e0] ss:$16 sps:$4 sm:$0xff]   ;;  %v5287_v22 = vld [vmem:[#allocation8 + $0x2e8] ss:$16 sps:$4 sm:$0xff]  }
 0x249   : > { %2486 = vmatprep.subr.bf16.mxu0 %v5236_v23  ;;  %2592 = vmatprep.subr.bf16.mxu1 %v5238_v24  ;;  %v1645_v23 = vmax.f32 %v1629_v18, 0.0  ;;  %v1649_v24 = vmax.f32 %v1633_v19, 0.0  ;;  %v5341_v19 = vld [vmem:[#allocation9 + $0x80] sm:$0xff]  }
 0x24c   : > { %2487 = vmatpush1.bf16.msra.mxu0 %v5240_v27  ;;  %2593 = vmatpush1.bf16.msra.mxu1 %v5241_v28  ;;  %v5290_v27 = vld [vmem:[#allocation8 + $0x300] ss:$16 sps:$4 sm:$0xff]   ;;  %v5293_v28 = vld [vmem:[#allocation8 + $0x308] ss:$16 sps:$4 sm:$0xff]  }
 0x24d   : > { %2509 = vmatprep.subr.bf16.mxu0 %v5244_v29  ;;  %2615 = vmatprep.subr.bf16.mxu1 %v5247_v30  ;;  %v1661_v29 = vpack.c.bf16 %v1649_v24, %v1645_v23  ;;  %v5298_v30 = vld [vmem:[#allocation8 + $0x324] ss:$16 sps:$4 sm:$0xff]   ;;  %v5343_v23 = vld [vmem:[#allocation9 + $0xc8] sm:$0xff]  }
 0x24f   : > { %2489 = vmatmul.mubr.bf16.vlgmr.msra.gmra.mrb[0].mxu0 %v1658_v31  ;;  %2595 = vmatmul.mubr.bf16.vlgmr.msra.gmra.mrb[0].mxu1 %v1658_v31  ;;  %v5301_v31 = vld [vmem:[#allocation8 + $0x32c] ss:$16 sps:$4 sm:$0xff]  }
 0x250   : > { %2510 = vmatpush1.bf16.msra.mxu0 %v5242_v32  ;;  %2616 = vmatpush1.bf16.msra.mxu1 %v5245_v33  ;;  %v5296_v32 = vld [vmem:[#allocation8 + $0x320] ss:$16 sps:$4 sm:$0xff]   ;;  %v5299_v33 = vld [vmem:[#allocation8 + $0x328] ss:$16 sps:$4 sm:$0xff]  }
 0x251   : > { %2511 = vmatprep.subr.bf16.mxu0 %v5250_v34  ;;  %2617 = vmatprep.subr.bf16.mxu1 %v5253_v35  ;;  %v5304_v34 = vld [vmem:[#allocation8 + $0x344] ss:$16 sps:$4 sm:$0xff]   ;;  %v5307_v35 = vld [vmem:[#allocation8 + $0x34c] ss:$16 sps:$4 sm:$0xff]  }
 0x252   : > { %2498 = vmatprep.mubr.bf16.mxu0 %v1663_v11  ;;  %2604 = vmatprep.mubr.bf16.mxu1 %v1663_v11 }
 0x254   : > { %2512 = vmatpush1.bf16.msra.mxu0 %v5248_v36  ;;  %2618 = vmatpush1.bf16.msra.mxu1 %v5251_v37  ;;  %v5302_v36 = vld [vmem:[#allocation8 + $0x340] ss:$16 sps:$4 sm:$0xff]   ;;  %v5305_v37 = vld [vmem:[#allocation8 + $0x348] ss:$16 sps:$4 sm:$0xff]  }
 0x255   : > { %2513 = vmatprep.subr.bf16.mxu0 %v5256_v38  ;;  %2619 = vmatprep.subr.bf16.mxu1 %v5259_v39  ;;  %v5310_v38 = vld [vmem:[#allocation8 + $0x364] ss:$16 sps:$4 sm:$0xff]   ;;  %v5313_v39 = vld [vmem:[#allocation8 + $0x36c] ss:$16 sps:$4 sm:$0xff]  }
 0x257   : > { %2499 = vmatmul.mubr.bf16.gmra.mrb[4].mxu0 %v1662_v15  ;;  %2605 = vmatmul.mubr.bf16.gmra.mrb[4].mxu1 %v1662_v15 }
 0x258   : > { %2514 = vmatpush1.bf16.msra.mxu0 %v5254_v40  ;;  %2620 = vmatpush1.bf16.msra.mxu1 %v5257_v41  ;;  %v5308_v40 = vld [vmem:[#allocation8 + $0x360] ss:$16 sps:$4 sm:$0xff]   ;;  %v5311_v41 = vld [vmem:[#allocation8 + $0x368] ss:$16 sps:$4 sm:$0xff]  }
 0x259   : > { %2515 = vmatprep.subr.bf16.mxu0 %v5262_v42  ;;  %2621 = vmatprep.subr.bf16.mxu1 %v5265_v43  ;;  %v5316_v42 = vld [vmem:[#allocation8 + $0x384] ss:$16 sps:$4 sm:$0xff]   ;;  %v5319_v43 = vld [vmem:[#allocation8 + $0x38c] ss:$16 sps:$4 sm:$0xff]  }
 0x25a   : > { %2541 = vmatprep.mubr.bf16.mxu0 %v1661_v29  ;;  %2647 = vmatprep.mubr.bf16.mxu1 %v1661_v29  ;;  %v5347_v29 = vld [vmem:[#allocation9 + $0xd0] sm:$0xff]  }
 0x25c   : > { %2516 = vmatpush1.bf16.msra.mxu0 %v5260_v44  ;;  %2622 = vmatpush1.bf16.msra.mxu1 %v5263_v45  ;;  %v5314_v44 = vld [vmem:[#allocation8 + $0x380] ss:$16 sps:$4 sm:$0xff]   ;;  %v5317_v45 = vld [vmem:[#allocation8 + $0x388] ss:$16 sps:$4 sm:$0xff]  }
 0x25d   : > { %2517 = vmatprep.subr.bf16.mxu0 %v5268_v46  ;;  %2623 = vmatprep.subr.bf16.mxu1 %v5271_v47  ;;  %v5322_v46 = vld [vmem:[#allocation8 + $0x3a4] ss:$16 sps:$4 sm:$0xff]   ;;  %v5325_v47 = vld [vmem:[#allocation8 + $0x3ac] ss:$16 sps:$4 sm:$0xff]  }
 0x260   : > { %2518 = vmatpush1.bf16.msra.mxu0 %v5266_v48  ;;  %2624 = vmatpush1.bf16.msra.mxu1 %v5269_v49  ;;  %v5320_v48 = vld [vmem:[#allocation8 + $0x3a0] ss:$16 sps:$4 sm:$0xff]   ;;  %v5323_v49 = vld [vmem:[#allocation8 + $0x3a8] ss:$16 sps:$4 sm:$0xff]  }
 0x261   : > { %2519 = vmatprep.subr.bf16.mxu0 %v5274_v50  ;;  %2625 = vmatprep.subr.bf16.mxu1 %v5277_v52  ;;  %v1590_v50 = vld [vmem:[#allocation2 + $0x10] sm:$0xff] }
 0x262   : > { %v1594_v52 = vld [vmem:[#allocation2 + $0x30] sm:$0xff] }
 0x264   : > { %2520 = vmatpush1.bf16.msra.mxu0 %v5272_v53  ;;  %2626 = vmatpush1.bf16.msra.mxu1 %v5275_v1  ;;  %v1617_v53 = vrot.slane %v6348_v61, %v6379_v20  ;;  %v5337_v1 = vld [vmem:[#allocation8 + $0x3ec] ss:$16 sps:$4 sm:$0xff]   ;;  %v1641_v61 = vadd.f32 %v6374_v10, %v1603_v59 }
 0x265   : > { %2521 = vmatprep.subr.bf16.mxu0 %v5280_v2  ;;  %2627 = vmatprep.subr.bf16.mxu1 %v5283_v4  ;;  %v1637_v4 = vadd.f32 %v6374_v10, %v1599_v57  ;;  %v5340_v10 = vld [vmem:[#allocation9] sm:$0xff]  }
 0x266   : > { %v1628_v2 = vadd.f32 %v1617_v53, %v1590_v50  ;;  %v1632_v3 = vadd.f32 %v1617_v53, %v1594_v52  ;;  %v1636_v17 = vadd.f32 %v1617_v53, %v1598_v8  ;;  %v1640_v18 = vadd.f32 %v1617_v53, %v1602_v9  ;;  %v5367_v50 = vld [vmem:[#allocation9 + $0xf8] sm:$0xff]  }
 0x267   : > { %v1653_v15 = vmax.f32 %v1637_v4, 0.0  ;;  %v5368_v52 = vld [vmem:[#allocation9 + $0x38] sm:$0xff]  }
 0x268   : > { %2522 = vmatpush1.bf16.msra.mxu0 %v5278_v0  ;;  %2628 = vmatpush1.bf16.msra.mxu1 %v5281_v12  ;;  %v1644_v0 = vmax.f32 %v1628_v2, 0.0  ;;  %v1648_v11 = vmax.f32 %v1632_v3, 0.0  ;;  %v5338_v12 = vld [vmem:[#allocation9 + $0x40] sm:$0xff]   ;;  %v1652_v24 = vmax.f32 %v1636_v17, 0.0  ;;  %v5369_v53 = vld [vmem:[#allocation9 + $0xb8] sm:$0xff]  }
 0x269   : > { %2523 = vmatprep.subr.bf16.mxu0 %v5286_v13  ;;  %2629 = vmatprep.subr.bf16.mxu1 %v5289_v14  ;;  %v5339_v13 = vld [vmem:[#allocation9 + $0xc0] sm:$0xff]   ;;  %v1657_v14 = vmax.f32 %v1641_v61, 0.0 }
 0x26a   : > { %v1660_v16 = vpack.c.bf16 %v1648_v11, %v1644_v0 }
 0x26c   : > { %2524 = vmatpush1.bf16.msra.mxu0 %v5284_v21  ;;  %2630 = vmatpush1.bf16.msra.mxu1 %v5287_v22  ;;  %v1665_v21 = vpack.c.bf16 %v1657_v14, %v1653_v15  ;;  %v5342_v22 = vld [vmem:[#allocation9 + $0x48] sm:$0xff]  }
 0x26d   : > { %2525 = vmatprep.subr.bf16.mxu0 %v5292_v25  ;;  %2631 = vmatprep.subr.bf16.mxu1 %v5295_v26  ;;  %v1656_v25 = vmax.f32 %v1640_v18, 0.0  ;;  %v5344_v26 = vld [vmem:[#allocation9 + $0x8] sm:$0xff]  }
 0x270   : > { %2526 = vmatpush1.bf16.msra.mxu0 %v5290_v27  ;;  %2632 = vmatpush1.bf16.msra.mxu1 %v5293_v28  ;;  %v5345_v27 = vld [vmem:[#allocation9 + $0x88] sm:$0xff]   ;;  %v5346_v28 = vld [vmem:[#allocation9 + $0x50] sm:$0xff]  }
 0x271   : > { %2527 = vmatprep.subr.bf16.mxu0 %v5298_v30  ;;  %2633 = vmatprep.subr.bf16.mxu1 %v5301_v31  ;;  %v1664_v30 = vpack.c.bf16 %v1656_v25, %v1652_v24  ;;  %v5348_v31 = vld [vmem:[#allocation9 + $0x10] sm:$0xff]  }
 0x274   : > { %2528 = vmatpush1.bf16.msra.mxu0 %v5296_v32  ;;  %2634 = vmatpush1.bf16.msra.mxu1 %v5299_v33  ;;  %v5349_v32 = vld [vmem:[#allocation9 + $0x90] sm:$0xff]   ;;  %v5350_v33 = vld [vmem:[#allocation9 + $0x58] sm:$0xff]  }
 0x275   : > { %2529 = vmatprep.subr.bf16.mxu0 %v5304_v34  ;;  %2635 = vmatprep.subr.bf16.mxu1 %v5307_v35  ;;  %v5351_v34 = vld [vmem:[#allocation9 + $0xd8] sm:$0xff]  }
 0x276   : > { %v5352_v35 = vld [vmem:[#allocation9 + $0x18] sm:$0xff]  }
 0x278   : > { %2530 = vmatpush1.bf16.msra.mxu0 %v5302_v36  ;;  %2636 = vmatpush1.bf16.msra.mxu1 %v5305_v37  ;;  %v5353_v36 = vld [vmem:[#allocation9 + $0x98] sm:$0xff]   ;;  %v5354_v37 = vld [vmem:[#allocation9 + $0x60] sm:$0xff]  }
 0x279   : > { %2531 = vmatprep.subr.bf16.mxu0 %v5310_v38  ;;  %2637 = vmatprep.subr.bf16.mxu1 %v5313_v39  ;;  %v5355_v38 = vld [vmem:[#allocation9 + $0xe0] sm:$0xff]  }
 0x27a   : > { %v5356_v39 = vld [vmem:[#allocation9 + $0x20] sm:$0xff]  }
 0x27c   : > { %2532 = vmatpush1.bf16.msra.mxu0 %v5308_v40  ;;  %2638 = vmatpush1.bf16.msra.mxu1 %v5311_v41  ;;  %v5357_v40 = vld [vmem:[#allocation9 + $0xa0] sm:$0xff]   ;;  %v5358_v41 = vld [vmem:[#allocation9 + $0x68] sm:$0xff]  }
 0x27d   : > { %2533 = vmatprep.subr.bf16.mxu0 %v5316_v42  ;;  %2639 = vmatprep.subr.bf16.mxu1 %v5319_v43  ;;  %v5359_v42 = vld [vmem:[#allocation9 + $0xe8] sm:$0xff]  }
 0x27e   : > { %v5360_v43 = vld [vmem:[#allocation9 + $0x28] sm:$0xff]  }
 0x280   : > { %2534 = vmatpush1.bf16.msra.mxu0 %v5314_v44  ;;  %2640 = vmatpush1.bf16.msra.mxu1 %v5317_v45  ;;  %v5361_v44 = vld [vmem:[#allocation9 + $0xa8] sm:$0xff]   ;;  %v5362_v45 = vld [vmem:[#allocation9 + $0x70] sm:$0xff]  }
 0x281   : > { %2535 = vmatprep.subr.bf16.mxu0 %v5322_v46  ;;  %2641 = vmatprep.subr.bf16.mxu1 %v5325_v47  ;;  %v5363_v46 = vld [vmem:[#allocation9 + $0xf0] sm:$0xff]  }
 0x282   : > { %v5364_v47 = vld [vmem:[#allocation9 + $0x30] sm:$0xff]  }
 0x284   : > { %2536 = vmatpush1.bf16.msra.mxu0 %v5320_v48  ;;  %2642 = vmatpush1.bf16.msra.mxu1 %v5323_v49  ;;  %v5365_v48 = vld [vmem:[#allocation9 + $0xb0] sm:$0xff]   ;;  %v5366_v49 = vld [vmem:[#allocation9 + $0x78] sm:$0xff]  }
 0x285   : > { %2537 = vmatprep.subr.bf16.mxu0 %v5328_v54  ;;  %2643 = vmatprep.subr.bf16.mxu1 %v5331_v55  ;;  %v1794_v54 = vld [vmem:[%s6750_s4] sm:$0xf] }
 0x286   : > { %v1799_v55 = vrot.slane %v1794_v54, %v6357_v5  ;;  %v1807_v57 = vrot.slane %v1794_v54, %v6379_v20  ;;  %v1803_v59 = vrot.slane %v1794_v54, %v6343_v56 }
 0x288   : > { %2538 = vmatpush1.bf16.msra.mxu0 %v5326_v60  ;;  %2644 = vmatpush1.bf16.msra.mxu1 %v5329_v62  ;;  %v1811_v60 = vrot.slane %v1794_v54, %v6366_v58 }
 0x289   : > { %2539 = vmatprep.subr.bf16.mxu0 %v5334_v63  ;;  %2645 = vmatprep.subr.bf16.mxu1 %v5337_v1 }
 0x28c   : > { %2540 = vmatpush1.bf16.msra.mxu0 %v5332_v6  ;;  %2646 = vmatpush1.bf16.msra.mxu1 %v5335_v7 }
 0x28d   : > { %4692 = vmatprep.subr.bf16.mxu0 %v5338_v12  ;;  %4720 = vmatprep.subr.bf16.mxu1 %v5339_v13 }
 0x28f   : > { %2542 = vmatmul.mubr.bf16.vlgmr.msra.gmra.mrb[0].mxu0 %v1660_v16  ;;  %2648 = vmatmul.mubr.bf16.vlgmr.msra.gmra.mrb[0].mxu1 %v1660_v16 }
 0x290   : > { %2551 = vmatprep.mubr.bf16.mxu0 %v1665_v21  ;;  %2657 = vmatprep.mubr.bf16.mxu1 %v1665_v21 }
 0x291   : > { %4693 = vmatpush3.bf16.msra.mxu0 %v5340_v10  ;;  %4721 = vmatpush3.bf16.msra.mxu1 %v5341_v19 }
 0x292   : > { %4694 = vmatprep.subr.bf16.mxu0 %v5342_v22  ;;  %4722 = vmatprep.subr.bf16.mxu1 %v5343_v23 }
 0x295   : > { %4695 = vmatpush3.bf16.msra.mxu0 %v5344_v26  ;;  %4723 = vmatpush3.bf16.msra.mxu1 %v5345_v27 }
 0x296   : > { %4696 = vmatprep.subr.bf16.mxu0 %v5346_v28  ;;  %4724 = vmatprep.subr.bf16.mxu1 %v5347_v29 }
 0x297   : > { %2552 = vmatmul.mubr.bf16.gmra.mrb[4].mxu0 %v1664_v30  ;;  %2658 = vmatmul.mubr.bf16.gmra.mrb[4].mxu1 %v1664_v30 }
 0x299   : > { %4697 = vmatpush3.bf16.msra.mxu0 %v5348_v31  ;;  %4725 = vmatpush3.bf16.msra.mxu1 %v5349_v32 }
 0x29a   : > { %4698 = vmatprep.subr.bf16.mxu0 %v5350_v33  ;;  %4726 = vmatprep.subr.bf16.mxu1 %v5351_v34 }
 0x29d   : > { %4699 = vmatpush3.bf16.msra.mxu0 %v5352_v35  ;;  %4727 = vmatpush3.bf16.msra.mxu1 %v5353_v36 }
 0x29e   : > { %4700 = vmatprep.subr.bf16.mxu0 %v5354_v37  ;;  %4728 = vmatprep.subr.bf16.mxu1 %v5355_v38 }
 0x2a1   : > { %4701 = vmatpush3.bf16.msra.mxu0 %v5356_v39  ;;  %4729 = vmatpush3.bf16.msra.mxu1 %v5357_v40 }
 0x2a2   : > { %4702 = vmatprep.subr.bf16.mxu0 %v5358_v41  ;;  %4730 = vmatprep.subr.bf16.mxu1 %v5359_v42 }
 0x2a5   : > { %4703 = vmatpush3.bf16.msra.mxu0 %v5360_v43  ;;  %4731 = vmatpush3.bf16.msra.mxu1 %v5361_v44 }
 0x2a6   : > { %4704 = vmatprep.subr.bf16.mxu0 %v5362_v45  ;;  %4732 = vmatprep.subr.bf16.mxu1 %v5363_v46 }
 0x2a9   : > { %4705 = vmatpush3.bf16.msra.mxu0 %v5364_v47  ;;  %4733 = vmatpush3.bf16.msra.mxu1 %v5365_v48 }
 0x2aa   : > { %4706 = vmatprep.subr.bf16.mxu0 %v5366_v49  ;;  %4734 = vmatprep.subr.bf16.mxu1 %v5367_v50 }
 0x2ad   : > { %4707 = vmatpush3.bf16.msra.mxu0 %v5368_v52  ;;  %4735 = vmatpush3.bf16.msra.mxu1 %v5369_v53 }
 0x362   : > { %v2543_v62 = vpop.f32.mrb[0].mxu0  ;;  %v2649_v63 = vpop.f32.mrb[0].mxu1 }
 0x363   : > { %v4794_v1 = vadd.f32 %v2543_v62, %v1799_v55  ;;  %v4802_v2 = vadd.f32 %v2649_v63, %v1807_v57  ;;  %v2545_v3 = vpop.f32.mrb[1].mxu0  ;;  %v2651_v4 = vpop.f32.mrb[1].mxu1  ;;  %v5378_v63 = vld [vmem:[#allocation11 + $0x4c] ss:$36 sps:$4 sm:$0xff]  }
 0x364   : > { %v4795_v61 = vadd.f32 %v2545_v3, %v1803_v59  ;;  %v4803_v6 = vadd.f32 %v2651_v4, %v1811_v60  ;;  %v2547_v7 = vpop.f32.mrb[2].mxu0  ;;  %v2653_v8 = vpop.f32.mrb[2].mxu1  ;;  %v5379_v3 = vld [vmem:[#allocation11 + $0x50] ss:$36 sps:$4 sm:$0xff]  }
 0x365   : > { %v4796_v9 = vadd.f32 %v2547_v7, %v1799_v55  ;;  %v4804_v0 = vadd.f32 %v2653_v8, %v1807_v57  ;;  %v2549_v11 = vpop.f32.mrb[3].mxu0  ;;  %v2655_v12 = vpop.f32.mrb[3].mxu1  ;;  %v2668_v14 = vmax.f32 %v4794_v1, 0.0  ;;  %v2670_v16 = vmax.f32 %v4802_v2, 0.0  ;;  %v5381_v1 = vld [vmem:[#allocation11 + $0x54] ss:$36 sps:$4 sm:$0xff]  }
 0x366   : > { %v4797_v13 = vadd.f32 %v2549_v11, %v1803_v59  ;;  %v4805_v15 = vadd.f32 %v2655_v12, %v1811_v60  ;;  %v2669_v10 = vmax.f32 %v4795_v61, 0.0  ;;  %v2671_v19 = vmax.f32 %v4803_v6, 0.0  ;;  %v5376_v2 = vld [vmem:[#allocation11 + $0x48] ss:$36 sps:$4 sm:$0xff]   ;;  %v5384_v4 = vld [vmem:[#allocation11 + $0x94] ss:$36 sps:$4 sm:$0xff]  }
 0x367   : > { %v2672_v17 = vmax.f32 %v4796_v9, 0.0  ;;  %v2674_v18 = vmax.f32 %v4804_v0, 0.0  ;;  %v5387_v61 = vld [vmem:[#allocation11 + $0x9c] ss:$36 sps:$4 sm:$0xff]   ;;  %v5382_v6 = vld [vmem:[#allocation11 + $0x90] ss:$36 sps:$4 sm:$0xff]  }
 0x368   : > { %v2673_v21 = vmax.f32 %v4797_v13, 0.0  ;;  %v2675_v22 = vmax.f32 %v4805_v15, 0.0  ;;  %v5385_v7 = vld [vmem:[#allocation11 + $0x98] ss:$36 sps:$4 sm:$0xff]   ;;  %v5393_v9 = vld [vmem:[#allocation11 + $0xe4] ss:$36 sps:$4 sm:$0xff]  }
 0x369   : > { %v2684_v23 = vpack.c.bf16 %v2672_v17, %v2668_v14  ;;  %v2686_v24 = vpack.c.bf16 %v2674_v18, %v2670_v16  ;;  %v5390_v8 = vld [vmem:[#allocation11 + $0xdc] ss:$36 sps:$4 sm:$0xff]   ;;  %v5396_v12 = vld [vmem:[#allocation11 + $0x124] ss:$36 sps:$4 sm:$0xff]   ;;  %v5399_v13 = vld [vmem:[#allocation11 + $0x12c] ss:$36 sps:$4 sm:$0xff]  }
 0x36a   : > { %v2685_v25 = vpack.c.bf16 %v2673_v21, %v2669_v10  ;;  %v2687_v26 = vpack.c.bf16 %v2675_v22, %v2671_v19  ;;  %v2553_v27 = vpop.f32.mrb[4].mxu0  ;;  %v2659_v28 = vpop.f32.mrb[4].mxu1  ;;  %v5388_v0 = vld [vmem:[#allocation11 + $0xd8] ss:$36 sps:$4 sm:$0xff]   ;;  %v5391_v11 = vld [vmem:[#allocation11 + $0xe0] ss:$36 sps:$4 sm:$0xff]  }
 0x36b   : > { %v4798_v29 = vadd.f32 %v2553_v27, %v1799_v55  ;;  %v4806_v30 = vadd.f32 %v2659_v28, %v1807_v57  ;;  %v2555_v31 = vpop.f32.mrb[5].mxu0  ;;  %v2661_v32 = vpop.f32.mrb[5].mxu1  ;;  %v5394_v15 = vld [vmem:[#allocation11 + $0x120] ss:$36 sps:$4 sm:$0xff]   ;;  %v5397_v14 = vld [vmem:[#allocation11 + $0x128] ss:$36 sps:$4 sm:$0xff]  }
 0x36c   : > { %v4799_v33 = vadd.f32 %v2555_v31, %v1803_v59  ;;  %v4807_v34 = vadd.f32 %v2661_v32, %v1811_v60  ;;  %v2557_v35 = vpop.f32.mrb[6].mxu0  ;;  %v2663_v36 = vpop.f32.mrb[6].mxu1  ;;  %2987 = vmatprep.mubr.bf16.mxu0 %v2685_v25  ;;  %3036 = vmatprep.mubr.bf16.mxu1 %v2687_v26  ;;  %v5402_v16 = vld [vmem:[#allocation11 + $0x16c] ss:$36 sps:$4 sm:$0xff]   ;;  %v5405_v17 = vld [vmem:[#allocation11 + $0x174] ss:$36 sps:$4 sm:$0xff]  }
 0x36d   : > { %v4800_v37 = vadd.f32 %v2557_v35, %v1799_v55  ;;  %v4808_v38 = vadd.f32 %v2663_v36, %v1807_v57  ;;  %v2559_v39 = vpop.f32.mrb[7].mxu0  ;;  %v2665_v40 = vpop.f32.mrb[7].mxu1  ;;  %2988 = vmatmul.mubr.bf16.vlgmr.msra.gmra.mrb[8].mxu0 %v2684_v23  ;;  %3037 = vmatmul.mubr.bf16.vlgmr.msra.gmra.mrb[8].mxu1 %v2686_v24  ;;  %v2676_v43 = vmax.f32 %v4798_v29, 0.0  ;;  %v2678_v44 = vmax.f32 %v4806_v30, 0.0  ;;  %v5372_v55 = vld [vmem:[#allocation11 + $0x4] ss:$36 sps:$4 sm:$0xff]  }
 0x36e   : > { %v4801_v41 = vadd.f32 %v2559_v39, %v1803_v59  ;;  %v4809_v42 = vadd.f32 %v2665_v40, %v1811_v60  ;;  %v2677_v47 = vmax.f32 %v4799_v33, 0.0  ;;  %v2679_v48 = vmax.f32 %v4807_v34, 0.0  ;;  %v5375_v57 = vld [vmem:[#allocation11 + $0xc] ss:$36 sps:$4 sm:$0xff]   ;;  %v5370_v59 = vld [vmem:[#allocation11] ss:$36 sps:$4 sm:$0xff]   ;;  %3584 = vmatprep.subr.bf16.mxu0 %v5372_v55 }
 0x36f   : > { %v2680_v45 = vmax.f32 %v4800_v37, 0.0  ;;  %v2682_v46 = vmax.f32 %v4808_v38, 0.0  ;;  %v5373_v60 = vld [vmem:[#allocation11 + $0x8] ss:$36 sps:$4 sm:$0xff]   ;;  %3637 = vmatprep.subr.bf16.mxu1 %v5375_v57  ;;  %3585 = vmatpush1.bf16.msra.mxu0 %v5370_v59  ;;  %v5403_v10 = vld [vmem:[#allocation11 + $0x170] ss:$36 sps:$4 sm:$0xff]  }
 0x370   : > { %v2681_v49 = vmax.f32 %v4801_v41, 0.0  ;;  %v2683_v50 = vmax.f32 %v4809_v42, 0.0  ;;  %3638 = vmatpush1.bf16.msra.mxu1 %v5373_v60  ;;  %3586 = vmatprep.subr.bf16.mxu0 %v5378_v63  ;;  %v5400_v18 = vld [vmem:[#allocation11 + $0x168] ss:$36 sps:$4 sm:$0xff]   ;;  %v5408_v19 = vld [vmem:[#allocation11 + $0x1b4] ss:$36 sps:$4 sm:$0xff]  }
 0x371   : > { %v2688_v52 = vpack.c.bf16 %v2680_v45, %v2676_v43  ;;  %v2690_v53 = vpack.c.bf16 %v2682_v46, %v2678_v44  ;;  %3639 = vmatprep.subr.bf16.mxu1 %v5381_v1  ;;  %v5411_v21 = vld [vmem:[#allocation11 + $0x1bc] ss:$36 sps:$4 sm:$0xff]   ;;  %v5406_v22 = vld [vmem:[#allocation11 + $0x1b0] ss:$36 sps:$4 sm:$0xff]   ;;  %v5417_v25 = vld [vmem:[#allocation11 + $0x204] ss:$36 sps:$4 sm:$0xff]  }
 0x372   : > { %v2689_v54 = vpack.c.bf16 %v2681_v49, %v2677_v47  ;;  %v2691_v62 = vpack.c.bf16 %v2683_v50, %v2679_v48  ;;  %v5409_v23 = vld [vmem:[#allocation11 + $0x1b8] ss:$36 sps:$4 sm:$0xff]   ;;  %v5415_v27 = vld [vmem:[#allocation11 + $0x200] ss:$36 sps:$4 sm:$0xff]   ;;  %v5871_v30 = vmov 0  }
 0x373   : > { %3587 = vmatpush1.bf16.msra.mxu0 %v5376_v2  ;;  %v5414_v24 = vld [vmem:[#allocation11 + $0x1fc] ss:$36 sps:$4 sm:$0xff]   ;;  %v5420_v28 = vld [vmem:[#allocation11 + $0x14] ss:$36 sps:$4 sm:$0xff]  }
 0x374   : > { %2995 = vmatprep.mubr.bf16.mxu0 %v2689_v54  ;;  %3044 = vmatprep.mubr.bf16.mxu1 %v2691_v62  ;;  %v5412_v26 = vld [vmem:[#allocation11 + $0x1f8] ss:$36 sps:$4 sm:$0xff]   ;;  %v4555_v33 = vld [vmem:[%s6797_s11] ss:$0 sm:$0xff] }
 0x375   : > { %2996 = vmatmul.mubr.bf16.gmra.mrb[12].mxu0 %v2688_v52  ;;  %3045 = vmatmul.mubr.bf16.gmra.mrb[12].mxu1 %v2690_v53  ;;  %v5423_v29 = vld [vmem:[#allocation11 + $0x1c] ss:$36 sps:$4 sm:$0xff]  }
 0x376   : > { %3640 = vmatpush1.bf16.msra.mxu1 %v5379_v3  ;;  %3588 = vmatprep.subr.bf16.mxu0 %v5384_v4 }
 0x377   : > { %3641 = vmatprep.subr.bf16.mxu1 %v5387_v61  ;;  %3589 = vmatpush1.bf16.msra.mxu0 %v5382_v6 }
 0x378   : > { %3590 = vmatprep.subr.bf16.mxu0 %v5390_v8  ;;  %3616 = vmatprep.mubr.bf16.mxu0 %v5871_v30 }
 0x379   : > { %3669 = vmatprep.mubr.bf16.mxu1 %v5871_v30 }
 0x37a   : > { %3642 = vmatpush1.bf16.msra.mxu1 %v5385_v7 }
 0x37b   : > { %3643 = vmatprep.subr.bf16.mxu1 %v5393_v9  ;;  %3591 = vmatpush1.bf16.msra.mxu0 %v5388_v0 }
 0x37c   : > { %3592 = vmatprep.subr.bf16.mxu0 %v5396_v12 }
 0x37e   : > { %3644 = vmatpush1.bf16.msra.mxu1 %v5391_v11 }
 0x37f   : > { %3645 = vmatprep.subr.bf16.mxu1 %v5399_v13  ;;  %3593 = vmatpush1.bf16.msra.mxu0 %v5394_v15 }
 0x380   : > { %3594 = vmatprep.subr.bf16.mxu0 %v5402_v16 }
 0x382   : > { %3646 = vmatpush1.bf16.msra.mxu1 %v5397_v14 }
 0x383   : > { %3647 = vmatprep.subr.bf16.mxu1 %v5405_v17  ;;  %3595 = vmatpush1.bf16.msra.mxu0 %v5400_v18 }
 0x384   : > { %3596 = vmatprep.subr.bf16.mxu0 %v5408_v19 }
 0x386   : > { %3648 = vmatpush1.bf16.msra.mxu1 %v5403_v10 }
 0x387   : > { %3649 = vmatprep.subr.bf16.mxu1 %v5411_v21  ;;  %3597 = vmatpush1.bf16.msra.mxu0 %v5406_v22 }
 0x388   : > { %3598 = vmatprep.subr.bf16.mxu0 %v5414_v24  ;;  %v5421_v24 = vld [vmem:[#allocation11 + $0x18] ss:$36 sps:$4 sm:$0xff]  }
 0x38a   : > { %3650 = vmatpush1.bf16.msra.mxu1 %v5409_v23  ;;  %v5418_v23 = vld [vmem:[#allocation11 + $0x10] ss:$36 sps:$4 sm:$0xff]  }
 0x38b   : > { %3651 = vmatprep.subr.bf16.mxu1 %v5417_v25  ;;  %3599 = vmatpush1.bf16.msra.mxu0 %v5412_v26  ;;  %v5426_v25 = vld [vmem:[#allocation11 + $0x5c] ss:$36 sps:$4 sm:$0xff]   ;;  %v5429_v26 = vld [vmem:[#allocation11 + $0x64] ss:$36 sps:$4 sm:$0xff]  }
 0x38c   : > { %3690 = vmatprep.subr.bf16.mxu0 %v5420_v28  ;;  %v5872_v28 = vmov 1.0|1.0  }
 0x38e   : > { %3652 = vmatpush1.bf16.msra.mxu1 %v5415_v27 }
 0x38f   : > { %3743 = vmatprep.subr.bf16.mxu1 %v5423_v29  ;;  %v5424_v29 = vld [vmem:[#allocation11 + $0x58] ss:$36 sps:$4 sm:$0xff]  }
 0x440   : > { %v4708_v31 = vpop.f32.mrb[8].mxu0  ;;  %v4736_v32 = vpop.f32.mrb[8].mxu1 }
 0x441   : > { %v4709_v34 = vpop.f32.mrb[9].mxu0  ;;  %v4737_v35 = vpop.f32.mrb[9].mxu1 }
 0x442   : > { %v4710_v36 = vadd.f32 %v4709_v34, %v4708_v31  ;;  %v4738_v37 = vadd.f32 %v4737_v35, %v4736_v32  ;;  %v4711_v38 = vpop.f32.mrb[10].mxu0  ;;  %v4739_v39 = vpop.f32.mrb[10].mxu1  ;;  %v5427_v31 = vld [vmem:[#allocation11 + $0x60] ss:$36 sps:$4 sm:$0xff]  }
 0x443   : > { %v4712_v40 = vpop.f32.mrb[11].mxu0  ;;  %v4740_v41 = vpop.f32.mrb[11].mxu1  ;;  %v5432_v32 = vld [vmem:[#allocation11 + $0xa4] ss:$36 sps:$4 sm:$0xff]  }
 0x444   : > { %v2990_v42 = vadd.f32 %v4710_v36, %v4555_v33  ;;  %v4713_v43 = vadd.f32 %v4712_v40, %v4711_v38  ;;  %v4741_v44 = vadd.f32 %v4740_v41, %v4739_v39  ;;  %v5430_v36 = vld [vmem:[#allocation11 + $0xa0] ss:$36 sps:$4 sm:$0xff]   ;;  %v5438_v38 = vld [vmem:[#allocation11 + $0xec] ss:$36 sps:$4 sm:$0xff]   ;;  %v5441_v39 = vld [vmem:[#allocation11 + $0xf4] ss:$36 sps:$4 sm:$0xff]  }
 0x445   : > { %v5436_v41 = vld [vmem:[#allocation11 + $0xe8] ss:$36 sps:$4 sm:$0xff]  }
 0x446   : > { %v3039_v45 = vadd.f32 %v4738_v37, %v2990_v42  ;;  %v2993_v46 = vadd.f32 %v4713_v43, %v4555_v33  ;;  %v5433_v37 = vld [vmem:[#allocation11 + $0xa8] ss:$36 sps:$4 sm:$0xff]   ;;  %v5439_v42 = vld [vmem:[#allocation11 + $0xf0] ss:$36 sps:$4 sm:$0xff]  }
 0x447   : > { %v5444_v43 = vld [vmem:[#allocation11 + $0x134] ss:$36 sps:$4 sm:$0xff]  }
 0x448   : > { %v3053_v47 = vsub.f32 0.0, %v3039_v45  ;;  %v3042_v48 = vadd.f32 %v4741_v44, %v2993_v46  ;;  %v4714_v49 = vpop.f32.mrb[12].mxu0  ;;  %v4742_v50 = vpop.f32.mrb[12].mxu1  ;;  %v5447_v44 = vld [vmem:[#allocation11 + $0x13c] ss:$36 sps:$4 sm:$0xff]  }
 0x449   : > { %v4715_v52 = vpop.f32.mrb[13].mxu0  ;;  %v4743_v53 = vpop.f32.mrb[13].mxu1  ;;  %v5442_v45 = vld [vmem:[#allocation11 + $0x130] ss:$36 sps:$4 sm:$0xff]   ;;  %v5445_v46 = vld [vmem:[#allocation11 + $0x138] ss:$36 sps:$4 sm:$0xff]  }
 0x44a   : > { %v3057_v54 = vmul.f32 1.442695, %v3053_v47  ;;  %v3054_v62 = vsub.f32 0.0, %v3042_v48  ;;  %v4716_v55 = vadd.f32 %v4715_v52, %v4714_v49  ;;  %v4744_v57 = vadd.f32 %v4743_v53, %v4742_v50  ;;  %v4717_v59 = vpop.f32.mrb[14].mxu0  ;;  %v4745_v60 = vpop.f32.mrb[14].mxu1 }
 0x44b   : > { %v4718_v63 = vpop.f32.mrb[15].mxu0  ;;  %v4746_v1 = vpop.f32.mrb[15].mxu1  ;;  %v5450_v47 = vld [vmem:[#allocation11 + $0x17c] ss:$36 sps:$4 sm:$0xff]   ;;  %v5453_v48 = vld [vmem:[#allocation11 + $0x184] ss:$36 sps:$4 sm:$0xff]  }
 0x44c   : > { %5474 = vpow2.f32 %v3057_v54  ;;  %v3059_v2 = vmul.f32 1.442695, %v3054_v62  ;;  %v2998_v3 = vadd.f32 %v4716_v55, %v4555_v33  ;;  %v4719_v4 = vadd.f32 %v4718_v63, %v4717_v59  ;;  %v5448_v49 = vld [vmem:[#allocation11 + $0x178] ss:$36 sps:$4 sm:$0xff]   ;;  %v5451_v50 = vld [vmem:[#allocation11 + $0x180] ss:$36 sps:$4 sm:$0xff]  }
 0x44d   : > { %v4747_v61 = vadd.f32 %v4746_v1, %v4745_v60  ;;  %v5456_v52 = vld [vmem:[#allocation11 + $0x1c4] ss:$36 sps:$4 sm:$0xff]   ;;  %v5459_v53 = vld [vmem:[#allocation11 + $0x1cc] ss:$36 sps:$4 sm:$0xff]  }
 0x44e   : > { %5476 = vpow2.f32 %v3059_v2  ;;  %v3047_v6 = vadd.f32 %v4744_v57, %v2998_v3  ;;  %v3001_v7 = vadd.f32 %v4719_v4, %v4555_v33  ;;  %v5435_v33 = vld [vmem:[#allocation11 + $0xac] ss:$36 sps:$4 sm:$0xff]   ;;  %v5454_v54 = vld [vmem:[#allocation11 + $0x1c0] ss:$36 sps:$4 sm:$0xff]   ;;  %v5465_v57 = vld [vmem:[#allocation11 + $0x214] ss:$36 sps:$4 sm:$0xff]  }
 0x44f   : > { %v5457_v62 = vld [vmem:[#allocation11 + $0x1c8] ss:$36 sps:$4 sm:$0xff]   ;;  %v5463_v60 = vld [vmem:[#allocation11 + $0x210] ss:$36 sps:$4 sm:$0xff]   ;;  %v5466_v63 = vld [vmem:[#allocation11 + $0x20] ss:$36 sps:$4 sm:$0xff]  }
 0x450   : > { %v3055_v8 = vsub.f32 0.0, %v3047_v6  ;;  %v3050_v9 = vadd.f32 %v4747_v61, %v3001_v7  ;;  %v5462_v55 = vld [vmem:[#allocation11 + $0x20c] ss:$36 sps:$4 sm:$0xff]   ;;  %v5469_v3 = vld [vmem:[#allocation11 + $0xf8] ss:$36 sps:$4 sm:$0xff]  }
 0x451   : > { %v5460_v59 = vld [vmem:[#allocation11 + $0x208] ss:$36 sps:$4 sm:$0xff]   ;;  %v5468_v2 = vld [vmem:[#allocation11 + $0xb0] ss:$36 sps:$4 sm:$0xff]   ;;  %v5470_v4 = vld [vmem:[#allocation11 + $0x140] ss:$36 sps:$4 sm:$0xff]  }
 0x452   : > { %v3061_v0 = vmul.f32 1.442695, %v3055_v8  ;;  %v3056_v11 = vsub.f32 0.0, %v3050_v9  ;;  %v5467_v1 = vld [vmem:[#allocation11 + $0x68] ss:$36 sps:$4 sm:$0xff]  }
 0x453   : > { %v5472_v61 = vld [vmem:[#allocation11 + $0x1d0] ss:$36 sps:$4 sm:$0xff]   ;;  %v5473_v6 = vld [vmem:[#allocation11 + $0x218] ss:$36 sps:$4 sm:$0xff]  }
 0x454   : > { %5478 = vpow2.f32 %v3061_v0  ;;  %v3063_v12 = vmul.f32 1.442695, %v3056_v11 }
 0x456   : > { %v5475_v13 = vpop.eup %5474  ;;  %5480 = vpow2.f32 %v3063_v12 }
 0x457   : > { %v3065_v15 = vadd.f32 1.0, %v5475_v13 }
 0x458   : > { %v5477_v14 = vpop.eup %5476 }
 0x459   : > { %5482 = vrcp.f32 %v3065_v15  ;;  %v3066_v16 = vadd.f32 1.0, %v5477_v14 }
 0x45b   : > { %5484 = vrcp.f32 %v3066_v16 }
 0x45e   : > { %v5479_v17 = vpop.eup %5478 }
 0x45f   : > { %v3067_v18 = vadd.f32 1.0, %v5479_v17 }
 0x460   : > { %v5481_v10 = vpop.eup %5480 }
 0x461   : > { %5486 = vrcp.f32 %v3067_v18  ;;  %v3068_v19 = vadd.f32 1.0, %v5481_v10 }
 0x463   : > { %v5483_v21 = vpop.eup %5482  ;;  %5488 = vrcp.f32 %v3068_v19 }
 0x464   : > { %3073 = vst [vmem:[#allocation13] sm:$0xff] %v5483_v21  ;;  %vm3077_vm0 = vcmp.gt.f32.partialorder %v5483_v21, 0.5 }
 0x465   : > { %v5485_v22 = vpop.eup %5484 }
 0x466   : > { %3074 = vst [vmem:[#allocation13 + $0x8] sm:$0xff] %v5485_v22  ;;  %vm3078_vm1 = vcmp.gt.f32.partialorder %v5485_v22, 0.5 }
 0x467   : > { %vm6397_vm2 = vmpackc.low %vm3078_vm1, %vm3077_vm0 }
 0x468   : > { %4662 = vmatmul.mubr.msk.bf16.vlgmr.msra.gmra.mrb[16].mxu0 %vm6397_vm2, %v5872_v28  ;;  %4666 = vmatmul.mubr.msk.bf16.vlgmr.msra.gmra.mrb[16].mxu1 %vm6397_vm2, %v5872_v28 }
 0x469   : > { %3691 = vmatpush1.bf16.msra.mxu0 %v5418_v23  ;;  %3744 = vmatpush1.bf16.msra.mxu1 %v5421_v24  ;;  %v3167_v23 = vld [vmem:[%s6802_s10] sm:$0xff] }
 0x46a   : > { %3692 = vmatprep.subr.bf16.mxu0 %v5426_v25  ;;  %3745 = vmatprep.subr.bf16.mxu1 %v5429_v26  ;;  %v3174_v24 = vrot.slane %v3167_v23, %v6357_v5  ;;  %v3178_v25 = vrot.slane %v3167_v23, %v6343_v56  ;;  %v3186_v56 = vrot.slane %v3167_v23, %v6366_v58  ;;  %v3201_v58 = vsub.s32 7, %v6340_v51 }
 0x46b   : > { %v5487_v34 = vpop.eup %5486  ;;  %3626 = vmatprep.mubr.bf16.mxu0 %v5871_v30  ;;  %3679 = vmatprep.mubr.bf16.mxu1 %v5871_v30 }
 0x46c   : > { %3075 = vst [vmem:[#allocation13 + $0x10] sm:$0xff] %v5487_v34  ;;  %vm3079_vm3 = vcmp.gt.f32.partialorder %v5487_v34, 0.5  ;;  %v3193_v34 = vsub.s32 5, %v6340_v51 }
 0x46d   : > { %v5489_v35 = vpop.eup %5488  ;;  %3693 = vmatpush1.bf16.msra.mxu0 %v5424_v29  ;;  %3746 = vmatpush1.bf16.msra.mxu1 %v5427_v31 }
 0x46e   : > { %3076 = vst [vmem:[#allocation13 + $0x18] sm:$0xff] %v5489_v35  ;;  %3694 = vmatprep.subr.bf16.mxu0 %v5432_v32  ;;  %3747 = vmatprep.subr.bf16.mxu1 %v5435_v33  ;;  %vm3080_vm4 = vcmp.gt.f32.partialorder %v5489_v35, 0.5  ;;  %v3189_v32 = vsub.s32 4, %v6340_v51 }
 0x46f   : > { %vm6409_vm5 = vmpackc.low %vm3080_vm4, %vm3079_vm3 }
 0x470   : > { %4664 = vmatmul.mubr.msk.bf16.gmra.mrb[20].mxu0 %vm6409_vm5, %v5872_v28  ;;  %4668 = vmatmul.mubr.msk.bf16.gmra.mrb[20].mxu1 %vm6409_vm5, %v5872_v28 }
 0x471   : > { %3695 = vmatpush1.bf16.msra.mxu0 %v5430_v36  ;;  %3748 = vmatpush1.bf16.msra.mxu1 %v5433_v37  ;;  %v3190_v36 = vrot.slane %v3167_v23, %v3189_v32 }
 0x472   : > { %3696 = vmatprep.subr.bf16.mxu0 %v5438_v38  ;;  %3749 = vmatprep.subr.bf16.mxu1 %v5441_v39 }
 0x473   : > { %3722 = vmatprep.mubr.bf16.mxu0 %v5871_v30  ;;  %3775 = vmatprep.mubr.bf16.mxu1 %v5871_v30 }
 0x475   : > { %3697 = vmatpush1.bf16.msra.mxu0 %v5436_v41  ;;  %3750 = vmatpush1.bf16.msra.mxu1 %v5439_v42 }
 0x476   : > { %3698 = vmatprep.subr.bf16.mxu0 %v5444_v43  ;;  %3751 = vmatprep.subr.bf16.mxu1 %v5447_v44  ;;  %v3194_v43 = vrot.slane %v3167_v23, %v3193_v34 }
 0x479   : > { %3699 = vmatpush1.bf16.msra.mxu0 %v5442_v45  ;;  %3752 = vmatpush1.bf16.msra.mxu1 %v5445_v46 }
 0x47a   : > { %3700 = vmatprep.subr.bf16.mxu0 %v5450_v47  ;;  %3753 = vmatprep.subr.bf16.mxu1 %v5453_v48 }
 0x47d   : > { %3701 = vmatpush1.bf16.msra.mxu0 %v5448_v49  ;;  %3754 = vmatpush1.bf16.msra.mxu1 %v5451_v50 }
 0x47e   : > { %3702 = vmatprep.subr.bf16.mxu0 %v5456_v52  ;;  %3755 = vmatprep.subr.bf16.mxu1 %v5459_v53 }
 0x481   : > { %3703 = vmatpush1.bf16.msra.mxu0 %v5454_v54  ;;  %3756 = vmatpush1.bf16.msra.mxu1 %v5457_v62 }
 0x482   : > { %3704 = vmatprep.subr.bf16.mxu0 %v5462_v55  ;;  %3757 = vmatprep.subr.bf16.mxu1 %v5465_v57  ;;  %v3202_v57 = vrot.slane %v3167_v23, %v3201_v58 }
 0x485   : > { %3705 = vmatpush1.bf16.msra.mxu0 %v5460_v59  ;;  %3758 = vmatpush1.bf16.msra.mxu1 %v5463_v60 }
 0x486   : > { %4758 = vmatprep.subr.bf16.mxu0 %v5466_v63 }
 0x488   : > { %4670 = vmatmul.mubr.msk.bf16.vlgmr.msra.gmra.mrb[24].mxu0 %vm6397_vm2, %v5872_v28  ;;  %4674 = vmatmul.mubr.msk.bf16.vlgmr.msra.gmra.mrb[24].mxu1 %vm6397_vm2, %v5872_v28 }
 0x489   : > { %4759 = vmatpush3.bf16.msra.mxu0 %v5466_v63  ;;  %3732 = vmatprep.mubr.bf16.mxu0 %v5871_v30 }
 0x48a   : > { %4760 = vmatprep.subr.bf16.mxu0 %v5467_v1  ;;  %3785 = vmatprep.mubr.bf16.mxu1 %v5871_v30  ;;  %v5471_v30 = vld [vmem:[#allocation11 + $0x188] ss:$36 sps:$4 sm:$0xff]  }
 0x48d   : > { %4761 = vmatpush3.bf16.msra.mxu0 %v5467_v1 }
 0x48e   : > { %4762 = vmatprep.subr.bf16.mxu0 %v5468_v2 }
 0x490   : > { %4672 = vmatmul.mubr.msk.bf16.gmra.mrb[28].mxu0 %vm6409_vm5, %v5872_v28  ;;  %4676 = vmatmul.mubr.msk.bf16.gmra.mrb[28].mxu1 %vm6409_vm5, %v5872_v28 }
 0x491   : > { %4763 = vmatpush3.bf16.msra.mxu0 %v5468_v2  ;;  %4774 = vmatprep.mubr.msk.bf16.mxu0 %vm6397_vm2, %v5872_v28 }
 0x492   : > { %4764 = vmatprep.subr.bf16.mxu0 %v5469_v3 }
 0x495   : > { %4765 = vmatpush3.bf16.msra.mxu0 %v5469_v3 }
 0x496   : > { %4766 = vmatprep.subr.bf16.mxu0 %v5470_v4 }
 0x499   : > { %4767 = vmatpush3.bf16.msra.mxu0 %v5470_v4 }
 0x49a   : > { %4768 = vmatprep.subr.bf16.mxu0 %v5471_v30 }
 0x49d   : > { %4769 = vmatpush3.bf16.msra.mxu0 %v5471_v30 }
 0x49e   : > { %4770 = vmatprep.subr.bf16.mxu0 %v5472_v61 }
 0x4a1   : > { %4771 = vmatpush3.bf16.msra.mxu0 %v5472_v61 }
 0x4a2   : > { %4772 = vmatprep.subr.bf16.mxu0 %v5473_v6 }
 0x4a5   : > { %4773 = vmatpush3.bf16.msra.mxu0 %v5473_v6 }
 0x4a8   : > { %4775 = vmatmul.mubr.msk.bf16.vlgmr.msra.gmra.mrb[32].mxu0 %vm6409_vm5, %v5872_v28  ;;  %v3182_v28 = vrot.slane %v3167_v23, %v6379_v20  ;;  %v3197_v20 = vsub.s32 6, %v6340_v51 }
 0x4aa   : > { %v3198_v47 = vrot.slane %v3167_v23, %v3197_v20 }
 0x53b   : > { %v3618_v7 = vpop.f32.mrb[16].mxu0  ;;  %v3671_v8 = vpop.f32.mrb[16].mxu1 }
 0x53c   : > { %v3620_v9 = vpop.f32.mrb[17].mxu0  ;;  %v3673_v0 = vpop.f32.mrb[17].mxu1  ;;  %v6446_v26 = vadd.f32 %v3618_v7, %v3174_v24  ;;  %v6459_v5 = vadd.f32 %v3671_v8, %v3182_v28 }
 0x53d   : > { %v3622_v11 = vpop.f32.mrb[18].mxu0  ;;  %v3675_v12 = vpop.f32.mrb[18].mxu1  ;;  %v6448_v27 = vadd.f32 %v3620_v9, %v3178_v25  ;;  %v6477_v44 = vadd.f32 %v3673_v0, %v3186_v56 }
 0x53e   : > { %v3624_v13 = vpop.f32.mrb[19].mxu0  ;;  %v3677_v15 = vpop.f32.mrb[19].mxu1  ;;  %v6451_v29 = vadd.f32 %v3622_v11, %v3174_v24  ;;  %v6466_v38 = vadd.f32 %v3675_v12, %v3182_v28 }
 0x53f   : > { %v6453_v31 = vadd.f32 %v3624_v13, %v3178_v25  ;;  %v3845_v33 = vmax.f32 %v6446_v26, %v6448_v27  ;;  %v6481_v50 = vadd.f32 %v3677_v15, %v3186_v56 }
 0x541   : > { %v3854_v35 = vmax.f32 %v6451_v29, %v6453_v31  ;;  %v3846_v37 = vmax.f32 %v3845_v33, %v6459_v5 }
 0x543   : > { %v3628_v14 = vpop.f32.mrb[20].mxu0  ;;  %v3681_v16 = vpop.f32.mrb[20].mxu1  ;;  %v3855_v45 = vmax.f32 %v3854_v35, %v6466_v38  ;;  %v3847_v49 = vmax.f32 %v3846_v37, %v6477_v44 }
 0x544   : > { %v3630_v17 = vpop.f32.mrb[21].mxu0  ;;  %v3683_v18 = vpop.f32.mrb[21].mxu1  ;;  %v6468_v39 = vadd.f32 %v3628_v14, %v3174_v24  ;;  %v6492_v1 = vadd.f32 %v3681_v16, %v3182_v28 }
 0x545   : > { %v3632_v10 = vpop.f32.mrb[22].mxu0  ;;  %v3685_v19 = vpop.f32.mrb[22].mxu1  ;;  %v6470_v40 = vadd.f32 %v3630_v17, %v3178_v25  ;;  %v3856_v63 = vmax.f32 %v3855_v45, %v6481_v50  ;;  %v6506_v11 = vadd.f32 %v3683_v18, %v3186_v56 }
 0x546   : > { %v3634_v21 = vpop.f32.mrb[23].mxu0  ;;  %v3687_v22 = vpop.f32.mrb[23].mxu1  ;;  %v6472_v41 = vadd.f32 %v3632_v10, %v3174_v24  ;;  %v6497_v61 = vadd.f32 %v3685_v19, %v3182_v28 }
 0x547   : > { %v6474_v42 = vadd.f32 %v3634_v21, %v3178_v25  ;;  %v3863_v52 = vmax.f32 %v6468_v39, %v6470_v40  ;;  %v6515_v17 = vadd.f32 %v3687_v22, %v3186_v56 }
 0x549   : > { %v3872_v51 = vmax.f32 %v6472_v41, %v6474_v42  ;;  %v3864_v7 = vmax.f32 %v3863_v52, %v6492_v1 }
 0x54b   : > { %v3873_v12 = vmax.f32 %v3872_v51, %v6497_v61  ;;  %v3865_v21 = vmax.f32 %v3864_v7, %v6506_v11 }
 0x54d   : > { %v3874_v35 = vmax.f32 %v3873_v12, %v6515_v17 }
 0x55b   : > { %v3724_v46 = vpop.f32.mrb[24].mxu0  ;;  %v3777_v48 = vpop.f32.mrb[24].mxu1 }
 0x55c   : > { %v6485_v53 = vadd.f32 %v3724_v46, %v3190_v36  ;;  %v3726_v54 = vpop.f32.mrb[25].mxu0  ;;  %v3779_v62 = vpop.f32.mrb[25].mxu1  ;;  %v6502_v8 = vadd.f32 %v3777_v48, %v3198_v47 }
 0x55d   : > { %v6489_v55 = vadd.f32 %v3726_v54, %v3194_v43  ;;  %v3728_v59 = vpop.f32.mrb[26].mxu0  ;;  %v3781_v60 = vpop.f32.mrb[26].mxu1  ;;  %v6509_v13 = vadd.f32 %v3779_v62, %v3202_v57 }
 0x55e   : > { %v3848_v2 = vmax.f32 %v3847_v49, %v6485_v53  ;;  %v6495_v3 = vadd.f32 %v3728_v59, %v3190_v36  ;;  %v3730_v4 = vpop.f32.mrb[27].mxu0  ;;  %v3783_v30 = vpop.f32.mrb[27].mxu1  ;;  %v6511_v15 = vadd.f32 %v3781_v60, %v3198_v47 }
 0x55f   : > { %v6499_v6 = vadd.f32 %v3730_v4, %v3194_v43  ;;  %v6525_v22 = vadd.f32 %v3783_v30, %v3202_v57 }
 0x560   : > { %v3857_v9 = vmax.f32 %v3856_v63, %v6495_v3  ;;  %v3849_v0 = vmax.f32 %v3848_v2, %v6489_v55 }
 0x562   : > { %v3858_v14 = vmax.f32 %v3857_v9, %v6499_v6  ;;  %v3850_v16 = vmax.f32 %v3849_v0, %v6502_v8 }
 0x563   : > { %v3734_v10 = vpop.f32.mrb[28].mxu0  ;;  %v3787_v19 = vpop.f32.mrb[28].mxu1 }
 0x564   : > { %v6518_v23 = vadd.f32 %v3734_v10, %v3190_v36  ;;  %v3736_v18 = vpop.f32.mrb[29].mxu0  ;;  %v3789_v24 = vpop.f32.mrb[29].mxu1  ;;  %v3851_v25 = vmax.f32 %v3850_v16, %v6509_v13  ;;  %v3859_v28 = vmax.f32 %v3858_v14, %v6511_v15  ;;  %v6532_v46 = vadd.f32 %v3787_v19, %v3198_v47 }
 0x565   : > { %v6522_v32 = vadd.f32 %v3736_v18, %v3194_v43  ;;  %v3738_v33 = vpop.f32.mrb[30].mxu0  ;;  %v3791_v34 = vpop.f32.mrb[30].mxu1  ;;  %v6537_v54 = vadd.f32 %v3789_v24, %v3202_v57 }
 0x566   : > { %v3866_v56 = vmax.f32 %v3865_v21, %v6518_v23  ;;  %v6528_v20 = vadd.f32 %v3738_v33, %v3190_v36  ;;  %v3740_v37 = vpop.f32.mrb[31].mxu0  ;;  %v3793_v58 = vpop.f32.mrb[31].mxu1  ;;  %3852 = vmax.xlane.f32.xlu0 %v3851_v25  ;;  %v3860_v49 = vmax.f32 %v3859_v28, %v6525_v22  ;;  %v6539_v62 = vadd.f32 %v3791_v34, %v3198_v47  ;;  %v4588_v47 = vld [vmem:[%s6802_s10 + $0x8] ss:$0 sm:$0xff] }
 0x567   : > { %v6530_v45 = vadd.f32 %v3740_v37, %v3194_v43  ;;  %v6545_v60 = vadd.f32 %v3793_v58, %v3202_v57 }
 0x568   : > { %v3875_v48 = vmax.f32 %v3874_v35, %v6528_v20  ;;  %v3867_v52 = vmax.f32 %v3866_v56, %v6522_v32 }
 0x56a   : > { %v3876_v36 = vmax.f32 %v3875_v48, %v6530_v45  ;;  %3861 = vmax.xlane.f32.xlu0 %v3860_v49  ;;  %v3868_v51 = vmax.f32 %v3867_v52, %v6532_v46 }
 0x56c   : > { %v3869_v43 = vmax.f32 %v3868_v51, %v6537_v54  ;;  %v3877_v59 = vmax.f32 %v3876_v36, %v6539_v62 }
 0x56e   : > { %3870 = vmax.xlane.f32.xlu1 %v3869_v43  ;;  %v3878_v63 = vmax.f32 %v3877_v59, %v6545_v60 }
 0x572   : > { %3879 = vmax.xlane.f32.xlu1 %v3878_v63 }
 0x57b   : > { %v4776_v2 = vpop.f32.mrb[32].mxu0 }
 0x57c   : > { %v3839_v4 = vadd.f32 %v4776_v2, %v4588_v47  ;;  %v3830_v30 = vpop.f32.mrb[33].mxu0 }
 0x57d   : > { %v3831_v7 = vadd.f32 %v4588_v47, %v3830_v30  ;;  %v4777_v9 = vpop.f32.mrb[34].mxu0 }
 0x57e   : > { %4091 = vst [vmem:[#allocation15 + $0x10] sm:$0xff] %v3839_v4  ;;  %v3842_v0 = vadd.f32 %v4777_v9, %v4588_v47  ;;  %v3833_v12 = vpop.f32.mrb[35].mxu0 }
 0x57f   : > { %4089 = vst [vmem:[#allocation15] sm:$0xff] %v3831_v7  ;;  %v3834_v14 = vadd.f32 %v4588_v47, %v3833_v12 }
 0x580   : > { %4092 = vst [vmem:[#allocation15 + $0x18] sm:$0xff] %v3842_v0 }
 0x581   : > { %4090 = vst [vmem:[#allocation15 + $0x8] sm:$0xff] %v3834_v14 }
 0x5f3   : > { %v6551_v57 = vpop.xlane.xlu0 %3852 }
 0x5f4   : > { %v3881_v16 = vsub.f32 %v6446_v26, %v6551_v57  ;;  %v3882_v10 = vsub.f32 %v6448_v27, %v6551_v57  ;;  %v3883_v19 = vsub.f32 %v6459_v5, %v6551_v57  ;;  %v3884_v21 = vsub.f32 %v6477_v44, %v6551_v57 }
 0x5f5   : > { %v3885_v18 = vsub.f32 %v6485_v53, %v6551_v57  ;;  %v3886_v33 = vsub.f32 %v6489_v55, %v6551_v57  ;;  %v3887_v58 = vsub.f32 %v6502_v8, %v6551_v57  ;;  %v3888_v36 = vsub.f32 %v6509_v13, %v6551_v57 }
 0x5f6   : > { %v3913_v24 = vmul.f32 1.442695, %v3881_v16  ;;  %v3915_v25 = vmul.f32 1.442695, %v3882_v10  ;;  %v3917_v34 = vmul.f32 1.442695, %v3883_v19 }
 0x5f7   : > { %v6563_v28 = vpop.xlane.xlu0 %3861  ;;  %v3919_v37 = vmul.f32 1.442695, %v3884_v21  ;;  %v3921_v48 = vmul.f32 1.442695, %v3885_v18  ;;  %v3923_v49 = vmul.f32 1.442695, %v3886_v33 }
 0x5f8   : > { %v3889_v35 = vsub.f32 %v6451_v29, %v6563_v28  ;;  %5490 = vpow2.f32 %v3913_v24  ;;  %v3890_v56 = vsub.f32 %v6453_v31, %v6563_v28  ;;  %v3891_v52 = vsub.f32 %v6466_v38, %v6563_v28 }
 0x5f9   : > { %5492 = vpow2.f32 %v3915_v25  ;;  %v3892_v59 = vsub.f32 %v6481_v50, %v6563_v28  ;;  %v3925_v47 = vmul.f32 1.442695, %v3887_v58  ;;  %v3893_v2 = vsub.f32 %v6495_v3, %v6563_v28 }
 0x5fa   : > { %5494 = vpow2.f32 %v3917_v34  ;;  %v3929_v51 = vmul.f32 1.442695, %v3889_v35  ;;  %v3931_v63 = vmul.f32 1.442695, %v3890_v56  ;;  %v3894_v4 = vsub.f32 %v6499_v6, %v6563_v28 }
 0x5fb   : > { %v6577_v43 = vpop.xlane.xlu1 %3870  ;;  %5496 = vpow2.f32 %v3919_v37  ;;  %v3933_v30 = vmul.f32 1.442695, %v3891_v52  ;;  %v3927_v9 = vmul.f32 1.442695, %v3888_v36  ;;  %v3935_v12 = vmul.f32 1.442695, %v3892_v59 }
 0x5fc   : > { %5498 = vpow2.f32 %v3921_v48  ;;  %v3897_v7 = vsub.f32 %v6468_v39, %v6577_v43  ;;  %v3898_v0 = vsub.f32 %v6470_v40, %v6577_v43  ;;  %v3895_v16 = vsub.f32 %v6511_v15, %v6563_v28 }
 0x5fd   : > { %5500 = vpow2.f32 %v3923_v49  ;;  %v3937_v10 = vmul.f32 1.442695, %v3893_v2  ;;  %v3939_v21 = vmul.f32 1.442695, %v3894_v4  ;;  %v3899_v18 = vsub.f32 %v6492_v1, %v6577_v43 }
 0x5fe   : > { %5502 = vpow2.f32 %v3929_v51  ;;  %v3896_v25 = vsub.f32 %v6525_v22, %v6563_v28  ;;  %v3945_v33 = vmul.f32 1.442695, %v3897_v7  ;;  %v3900_v56 = vsub.f32 %v6506_v11, %v6577_v43 }
 0x5ff   : > { %5504 = vpow2.f32 %v3931_v63  ;;  %v6595_v35 = vpop.xlane.xlu1 %3879  ;;  %v3947_v37 = vmul.f32 1.442695, %v3898_v0  ;;  %v3941_v48 = vmul.f32 1.442695, %v3895_v16  ;;  %v3901_v49 = vsub.f32 %v6518_v23, %v6577_v43 }
 0x600   : > { %5506 = vpow2.f32 %v3925_v47  ;;  %v3902_v36 = vsub.f32 %v6522_v32, %v6577_v43  ;;  %v3949_v51 = vmul.f32 1.442695, %v3899_v18  ;;  %v3905_v63 = vsub.f32 %v6472_v41, %v6595_v35 }
 0x601   : > { %5508 = vpow2.f32 %v3933_v30  ;;  %v3943_v2 = vmul.f32 1.442695, %v3896_v25  ;;  %v3906_v30 = vsub.f32 %v6474_v42, %v6595_v35  ;;  %v3951_v7 = vmul.f32 1.442695, %v3900_v56 }
 0x602   : > { %v5491_v14 = vpop.eup %5490  ;;  %5510 = vpow2.f32 %v3927_v9  ;;  %v3908_v56 = vsub.f32 %v6515_v17, %v6595_v35 }
 0x603   : > { %v5493_v19 = vpop.eup %5492  ;;  %5512 = vpow2.f32 %v3935_v12  ;;  %v3903_v12 = vsub.f32 %v6532_v46, %v6577_v43 }
 0x604   : > { %v3977_v24 = vadd.f32 %v5493_v19, %v5491_v14  ;;  %v5495_v34 = vpop.eup %5494  ;;  %5514 = vpow2.f32 %v3937_v10  ;;  %v3953_v14 = vmul.f32 1.442695, %v3901_v49  ;;  %v3904_v10 = vsub.f32 %v6537_v54, %v6577_v43 }
 0x605   : > { %v5497_v52 = vpop.eup %5496  ;;  %5516 = vpow2.f32 %v3939_v21  ;;  %v3955_v19 = vmul.f32 1.442695, %v3902_v36  ;;  %v3907_v21 = vsub.f32 %v6497_v61, %v6595_v35 }
 0x606   : > { %v3978_v58 = vadd.f32 %v5495_v34, %v3977_v24  ;;  %v5499_v59 = vpop.eup %5498  ;;  %5518 = vpow2.f32 %v3945_v33  ;;  %v3961_v33 = vmul.f32 1.442695, %v3905_v63 }
 0x607   : > { %v5501_v4 = vpop.eup %5500  ;;  %5520 = vpow2.f32 %v3947_v37  ;;  %v3963_v37 = vmul.f32 1.442695, %v3906_v30  ;;  %v3910_v30 = vsub.f32 %v6530_v45, %v6595_v35 }
 0x608   : > { %v3979_v47 = vadd.f32 %v5497_v52, %v3978_v58  ;;  %v5503_v9 = vpop.eup %5502  ;;  %5522 = vpow2.f32 %v3941_v48  ;;  %v3957_v52 = vmul.f32 1.442695, %v3903_v12 }
 0x609   : > { %v5505_v16 = vpop.eup %5504  ;;  %5524 = vpow2.f32 %v3949_v51  ;;  %v3909_v51 = vsub.f32 %v6528_v20, %v6595_v35 }
 0x60a   : > { %v3980_v0 = vadd.f32 %v5499_v59, %v3979_v47  ;;  %v5507_v18 = vpop.eup %5506  ;;  %5526 = vpow2.f32 %v3943_v2  ;;  %v3986_v25 = vadd.f32 %v5505_v16, %v5503_v9  ;;  %v3965_v59 = vmul.f32 1.442695, %v3907_v21 }
 0x60b   : > { %v5509_v34 = vpop.eup %5508  ;;  %5528 = vpow2.f32 %v3951_v7  ;;  %v3967_v9 = vmul.f32 1.442695, %v3908_v56  ;;  %v3911_v16 = vsub.f32 %v6539_v62, %v6595_v35 }
 0x60c   : > { %v3981_v24 = vadd.f32 %v5501_v4, %v3980_v0  ;;  %v5511_v58 = vpop.eup %5510  ;;  %v3987_v49 = vadd.f32 %v5509_v34, %v3986_v25  ;;  %5530 = vpow2.f32 %v3953_v14  ;;  %v3959_v4 = vmul.f32 1.442695, %v3904_v10 }
 0x60d   : > { %v5513_v36 = vpop.eup %5512  ;;  %5532 = vpow2.f32 %v3955_v19  ;;  %v3969_v19 = vmul.f32 1.442695, %v3909_v51  ;;  %v3912_v25 = vsub.f32 %v6545_v60, %v6595_v35 }
 0x60e   : > { %v3982_v48 = vadd.f32 %v5507_v18, %v3981_v24  ;;  %v5515_v47 = vpop.eup %5514  ;;  %v3988_v63 = vadd.f32 %v5513_v36, %v3987_v49  ;;  %5534 = vpow2.f32 %v3961_v33  ;;  %v3971_v33 = vmul.f32 1.442695, %v3910_v30 }
 0x60f   : > { %v5517_v7 = vpop.eup %5516  ;;  %5536 = vpow2.f32 %v3963_v37 }
 0x610   : > { %v3983_v2 = vadd.f32 %v5511_v58, %v3982_v48  ;;  %v5519_v0 = vpop.eup %5518  ;;  %v3989_v12 = vadd.f32 %v5515_v47, %v3988_v63  ;;  %5538 = vpow2.f32 %v3957_v52  ;;  %v3973_v48 = vmul.f32 1.442695, %v3911_v16 }
 0x611   : > { %v5521_v14 = vpop.eup %5520  ;;  %5540 = vpow2.f32 %v3965_v59  ;;  %v3975_v59 = vmul.f32 1.442695, %v3912_v25 }
 0x612   : > { %3984 = vadd.xlane.f32.xlu0 %v3983_v2  ;;  %v5523_v21 = vpop.eup %5522  ;;  %v3990_v18 = vadd.f32 %v5517_v7, %v3989_v12  ;;  %5542 = vpow2.f32 %v3959_v4  ;;  %v3995_v10 = vadd.f32 %v5521_v14, %v5519_v0 }
 0x613   : > { %v5525_v24 = vpop.eup %5524  ;;  %5544 = vpow2.f32 %v3967_v9 }
 0x614   : > { %v5527_v34 = vpop.eup %5526  ;;  %v3991_v56 = vadd.f32 %v5523_v21, %v3990_v18  ;;  %v3996_v37 = vadd.f32 %v5525_v24, %v3995_v10  ;;  %5546 = vpow2.f32 %v3969_v19 }
 0x615   : > { %v5529_v58 = vpop.eup %5528  ;;  %5548 = vpow2.f32 %v3971_v33 }
 0x616   : > { %v5531_v49 = vpop.eup %5530  ;;  %v3992_v52 = vadd.f32 %v5527_v34, %v3991_v56  ;;  %v3997_v36 = vadd.f32 %v5529_v58, %v3996_v37  ;;  %5550 = vpow2.f32 %v3973_v48 }
 0x617   : > { %v5533_v51 = vpop.eup %5532  ;;  %5552 = vpow2.f32 %v3975_v59 }
 0x618   : > { %v5535_v47 = vpop.eup %5534  ;;  %3993 = vadd.xlane.f32.xlu1 %v3992_v52  ;;  %v3998_v2 = vadd.f32 %v5531_v49, %v3997_v36 }
 0x619   : > { %v5537_v63 = vpop.eup %5536 }
 0x61a   : > { %v5539_v4 = vpop.eup %5538  ;;  %v3999_v7 = vadd.f32 %v5533_v51, %v3998_v2  ;;  %v4004_v30 = vadd.f32 %v5537_v63, %v5535_v47 }
 0x61b   : > { %v5541_v9 = vpop.eup %5540 }
 0x61c   : > { %v5543_v0 = vpop.eup %5542  ;;  %v4000_v12 = vadd.f32 %v5539_v4, %v3999_v7  ;;  %v4005_v14 = vadd.f32 %v5541_v9, %v4004_v30 }
 0x61d   : > { %v5545_v16 = vpop.eup %5544 }
 0x61e   : > { %v4001_v19 = vadd.f32 %v5543_v0, %v4000_v12  ;;  %v4006_v21 = vadd.f32 %v5545_v16, %v4005_v14  ;;  %v5547_v18 = vpop.eup %5546 }
 0x61f   : > { %v5549_v24 = vpop.eup %5548 }
 0x620   : > { %4002 = vadd.xlane.f32.xlu0 %v4001_v19  ;;  %v4007_v10 = vadd.f32 %v5547_v18, %v4006_v21  ;;  %v5551_v33 = vpop.eup %5550 }
 0x621   : > { %v5553_v56 = vpop.eup %5552 }
 0x622   : > { %v4008_v25 = vadd.f32 %v5549_v24, %v4007_v10 }
 0x624   : > { %v4009_v34 = vadd.f32 %v5551_v33, %v4008_v25 }
 0x626   : > { %v4010_v37 = vadd.f32 %v5553_v56, %v4009_v34 }
 0x628   : > { %4011 = vadd.xlane.f32.xlu1 %v4010_v37 }
 0x69f   : > { %v3985_v58 = vpop.xlane.xlu0 %3984 }
 0x6a0   : > { %5554 = vlog2.f32 %v3985_v58 }
 0x6a5   : > { %v3994_v48 = vpop.xlane.xlu1 %3993 }
 0x6a6   : > { %5556 = vlog2.f32 %v3994_v48 }
 0x6aa   : > { %v5555_v49 = vpop.eup %5554 }
 0x6ab   : > { %v4014_v52 = vmul.f32 0.6931472, %v5555_v49 }
 0x6ad   : > { %v4021_v36 = vadd.f32 %v4014_v52, %v6551_v57  ;;  %v4003_v63 = vpop.xlane.xlu0 %4002 }
 0x6ae   : > { %5558 = vlog2.f32 %v4003_v63 }
 0x6af   : > { %v4025_v51 = vsub.f32 %v6446_v26, %v4021_v36  ;;  %v4026_v59 = vsub.f32 %v6448_v27, %v4021_v36  ;;  %v4027_v47 = vsub.f32 %v6459_v5, %v4021_v36  ;;  %v4028_v2 = vsub.f32 %v6477_v44, %v4021_v36 }
 0x6b0   : > { %v4029_v4 = vsub.f32 %v6485_v53, %v4021_v36  ;;  %v4030_v7 = vsub.f32 %v6489_v55, %v4021_v36  ;;  %v4031_v30 = vsub.f32 %v6502_v8, %v4021_v36  ;;  %v4032_v9 = vsub.f32 %v6509_v13, %v4021_v36  ;;  %v5557_v26 = vpop.eup %5556 }
 0x6b1   : > { %4057 = vst [vmem:[#allocation12] sm:$0xff] %v4025_v51  ;;  %4058 = vst [vmem:[#allocation12 + $0x8] sm:$0xff] %v4026_v59  ;;  %v4016_v27 = vmul.f32 0.6931472, %v5557_v26 }
 0x6b2   : > { %4059 = vst [vmem:[#allocation12 + $0x10] sm:$0xff] %v4027_v47  ;;  %4060 = vst [vmem:[#allocation12 + $0x18] sm:$0xff] %v4028_v2 }
 0x6b3   : > { %4061 = vst [vmem:[#allocation12 + $0x20] sm:$0xff] %v4029_v4  ;;  %4062 = vst [vmem:[#allocation12 + $0x28] sm:$0xff] %v4030_v7  ;;  %v4022_v5 = vadd.f32 %v4016_v27, %v6563_v28 }
 0x6b4   : > { %4063 = vst [vmem:[#allocation12 + $0x30] sm:$0xff] %v4031_v30  ;;  %4064 = vst [vmem:[#allocation12 + $0x38] sm:$0xff] %v4032_v9 }
 0x6b5   : > { %v4033_v44 = vsub.f32 %v6451_v29, %v4022_v5  ;;  %v4034_v53 = vsub.f32 %v6453_v31, %v4022_v5  ;;  %v4035_v55 = vsub.f32 %v6466_v38, %v4022_v5  ;;  %v4036_v8 = vsub.f32 %v6481_v50, %v4022_v5  ;;  %v4012_v13 = vpop.xlane.xlu1 %4011 }
 0x6b6   : > { %v4037_v57 = vsub.f32 %v6495_v3, %v4022_v5  ;;  %v4038_v0 = vsub.f32 %v6499_v6, %v4022_v5  ;;  %v4039_v12 = vsub.f32 %v6511_v15, %v4022_v5  ;;  %v4040_v14 = vsub.f32 %v6525_v22, %v4022_v5 }
 0x6b7   : > { %4065 = vst [vmem:[#allocation12 + $0x40] sm:$0xff] %v4033_v44  ;;  %4066 = vst [vmem:[#allocation12 + $0x48] sm:$0xff] %v4034_v53  ;;  %5560 = vlog2.f32 %v4012_v13 }
 0x6b8   : > { %4067 = vst [vmem:[#allocation12 + $0x50] sm:$0xff] %v4035_v55  ;;  %4068 = vst [vmem:[#allocation12 + $0x58] sm:$0xff] %v4036_v8  ;;  %v5559_v29 = vpop.eup %5558 }
 0x6b9   : > { %4069 = vst [vmem:[#allocation12 + $0x60] sm:$0xff] %v4037_v57  ;;  %4070 = vst [vmem:[#allocation12 + $0x68] sm:$0xff] %v4038_v0  ;;  %v4018_v31 = vmul.f32 0.6931472, %v5559_v29 }
 0x6ba   : > { %4071 = vst [vmem:[#allocation12 + $0x70] sm:$0xff] %v4039_v12  ;;  %4072 = vst [vmem:[#allocation12 + $0x78] sm:$0xff] %v4040_v14 }
 0x6bb   : > { %v4023_v38 = vadd.f32 %v4018_v31, %v6577_v43 }
 0x6bd   : > { %v4041_v50 = vsub.f32 %v6468_v39, %v4023_v38  ;;  %v4042_v3 = vsub.f32 %v6470_v40, %v4023_v38  ;;  %v4043_v6 = vsub.f32 %v6492_v1, %v4023_v38  ;;  %v4044_v15 = vsub.f32 %v6506_v11, %v4023_v38 }
 0x6be   : > { %v4045_v22 = vsub.f32 %v6518_v23, %v4023_v38  ;;  %v4046_v28 = vsub.f32 %v6522_v32, %v4023_v38  ;;  %v4047_v16 = vsub.f32 %v6532_v46, %v4023_v38  ;;  %v4048_v19 = vsub.f32 %v6537_v54, %v4023_v38 }
 0x6bf   : > { %4073 = vst [vmem:[#allocation12 + $0x80] sm:$0xff] %v4041_v50  ;;  %4074 = vst [vmem:[#allocation12 + $0x88] sm:$0xff] %v4042_v3 }
 0x6c0   : > { %4075 = vst [vmem:[#allocation12 + $0x90] sm:$0xff] %v4043_v6  ;;  %4076 = vst [vmem:[#allocation12 + $0x98] sm:$0xff] %v4044_v15 }
 0x6c1   : > { %v5561_v43 = vpop.eup %5560  ;;  %4077 = vst [vmem:[#allocation12 + $0xa0] sm:$0xff] %v4045_v22  ;;  %4078 = vst [vmem:[#allocation12 + $0xa8] sm:$0xff] %v4046_v28 }
 0x6c2   : > { %4079 = vst [vmem:[#allocation12 + $0xb0] sm:$0xff] %v4047_v16  ;;  %4080 = vst [vmem:[#allocation12 + $0xb8] sm:$0xff] %v4048_v19  ;;  %v4020_v39 = vmul.f32 0.6931472, %v5561_v43 }
 0x6c4   : > { %v4024_v40 = vadd.f32 %v4020_v39, %v6595_v35 }
 0x6c6   : > { %v4049_v1 = vsub.f32 %v6472_v41, %v4024_v40  ;;  %v4050_v11 = vsub.f32 %v6474_v42, %v4024_v40  ;;  %v4051_v23 = vsub.f32 %v6497_v61, %v4024_v40  ;;  %v4052_v32 = vsub.f32 %v6515_v17, %v4024_v40 }
 0x6c7   : > { %v4053_v46 = vsub.f32 %v6528_v20, %v4024_v40  ;;  %v4054_v54 = vsub.f32 %v6530_v45, %v4024_v40  ;;  %v4055_v21 = vsub.f32 %v6539_v62, %v4024_v40  ;;  %v4056_v18 = vsub.f32 %v6545_v60, %v4024_v40 }
 0x6c8   : > { %4081 = vst [vmem:[#allocation12 + $0xc0] sm:$0xff] %v4049_v1  ;;  %4082 = vst [vmem:[#allocation12 + $0xc8] sm:$0xff] %v4050_v11 }
 0x6c9   : > { %4083 = vst [vmem:[#allocation12 + $0xd0] sm:$0xff] %v4051_v23  ;;  %4084 = vst [vmem:[#allocation12 + $0xd8] sm:$0xff] %v4052_v32 }
 0x6ca   : > { %4085 = vst [vmem:[#allocation12 + $0xe0] sm:$0xff] %v4053_v46  ;;  %4086 = vst [vmem:[#allocation12 + $0xe8] sm:$0xff] %v4054_v54 }
 0x6cb   : > { %4087 = vst [vmem:[#allocation12 + $0xf0] sm:$0xff] %v4055_v21  ;;  %4088 = vst [vmem:[#allocation12 + $0xf8] sm:$0xff] %v4056_v18 }
 0x6cc PF: > { %p4878_p7 = scmp.eq.s32.totalorder %s5969_s23, 1  ;;  %s5873_s12 = smov [#allocation13]  }
 0x6cd   : > { %s4119_s29 = sshll.u32 %s5873_s12, 4  ;;  %s4120_s29 = int_to_ptr.vmem [resolvable:$true] %s4119_s29 }
 0x6ce   : > { %s5706_s17 = scalar_lea.vmem %s4120_s29, 512  ;;  %p5713_p1 = scmp.lt.s32.totalorder %s4120_s29, %s4120_s29 }
 0x6cf   : > { %p5707_p9 = scmp.ne.s32.totalorder %s4120_s29, %s5706_s17  ;;  %p5714_p3 = scmp.lt.s32.totalorder %s5706_s17, %s5706_s17 }
 0x6d1   : > { %p5708_p5 = pnand %p5707_p9, %p4878_p7  ;;  %p5715_p2 = por %p5714_p3, %p5713_p1 }
 0x6d3   : > { %p5709_p10 = pneg %p5708_p5 }
 0x6d5   : > { %p5716_p13 = pnand %p5715_p2, %p5709_p10 }
 0x6d7   : > { %5719 = shalt.err (!%p5716_p13)
}
 0x6d8   : > { %s6803_s30 = sld [smem:[#allocation29_spill]] }
 0x6de   : > { %s5720_s27 = scalar_lea.hbm %s6803_s30, 512 }
 0x6df   : > { %p5721_p0 = scmp.ne.s32.totalorder %s6803_s30, %s5720_s27  ;;  %p5726_p11 = scmp.lt.u32.totalorder %s5720_s27, %s6803_s30 }
 0x6e1   : > { %p5722_p6 = pnand %p5721_p0, %p4878_p7 }
 0x6e3   : > { %p5723_p8 = pneg %p5722_p6 }
 0x6e5   : > { %p5728_p12 = pnand %p5726_p11, %p5723_p8 }
 0x6e7   : > { %5731 = shalt.err (!%p5728_p12)
}
 0x6e8   : > { %s5874_s26 = smov 128   ;;  %s5875_s13 = smov 8  }
 0x6e9   : > { %4845 = dma.vmem_to_hbm [thread:$0]  (%p4878_p7), %s4120_s29, 512, %s6803_s30, [#allocation14], %s5874_s26, %s5874_s26, %s5875_s13  }
 0x6ea   : > { %s5876_s11 = smov [#allocation12]  }
 0x6eb   : > { %s4103_s0 = sshll.u32 %s5876_s11, 4  ;;  %s4104_s0 = int_to_ptr.vmem [resolvable:$true] %s4103_s0 }
 0x6ec   : > { %s5732_s8 = scalar_lea.vmem %s4104_s0, 4096  ;;  %p5739_p10 = scmp.lt.s32.totalorder %s4104_s0, %s4104_s0 }
 0x6ed   : > { %p5733_p4 = scmp.ne.s32.totalorder %s4104_s0, %s5732_s8  ;;  %p5740_p1 = scmp.lt.s32.totalorder %s5732_s8, %s5732_s8 }
 0x6ef   : > { %p5734_p9 = pnand %p5733_p4, %p4878_p7  ;;  %p5741_p3 = por %p5740_p1, %p5739_p10 }
 0x6f1   : > { %p5735_p5 = pneg %p5734_p9 }
 0x6f3   : > { %p5742_p2 = pnand %p5741_p3, %p5735_p5 }
 0x6f5   : > { %5745 = shalt.err (!%p5742_p2)
}
 0x6f6   : > { %s6804_s12 = sld [smem:[#allocation28_spill]] }
 0x6fc   : > { %s5746_s17 = scalar_lea.hbm %s6804_s12, 4096 }
 0x6fd   : > { %p5747_p13 = scmp.ne.s32.totalorder %s6804_s12, %s5746_s17  ;;  %p5752_p8 = scmp.lt.u32.totalorder %s5746_s17, %s6804_s12 }
 0x6ff   : > { %p5748_p0 = pnand %p5747_p13, %p4878_p7 }
 0x701   : > { %p5749_p6 = pneg %p5748_p0 }
 0x703   : > { %p5754_p11 = pnand %p5752_p8, %p5749_p6 }
 0x705   : > { %5757 = shalt.err (!%p5754_p11)
}
 0x706   : > { %s5877_s5 = smov 1024   ;;  %s5878_s28 = smov 64  }
 0x707   : > { %4843 = dma.vmem_to_hbm [thread:$0]  (%p4878_p7), %s4104_s0, 4096, %s6804_s12, [#allocation5], %s5877_s5, %s5877_s5, %s5878_s28  }
 0x708   : > { %s5879_s14 = smov [#allocation15]  }
 0x709   : > { %s4135_s3 = sshll.u32 %s5879_s14, 4  ;;  %s4136_s3 = int_to_ptr.vmem [resolvable:$true] %s4135_s3 }
 0x70a   : > { %s5758_s11 = scalar_lea.vmem %s4136_s3, 512  ;;  %p5765_p5 = scmp.lt.s32.totalorder %s4136_s3, %s4136_s3 }
 0x70b   : > { %p5759_p12 = scmp.ne.s32.totalorder %s4136_s3, %s5758_s11  ;;  %p5766_p10 = scmp.lt.s32.totalorder %s5758_s11, %s5758_s11 }
 0x70d   : > { %p5760_p4 = pnand %p5759_p12, %p4878_p7  ;;  %p5767_p1 = por %p5766_p10, %p5765_p5 }
 0x70f   : > { %p5761_p9 = pneg %p5760_p4 }
 0x711   : > { %p5768_p3 = pnand %p5767_p1, %p5761_p9 }
 0x713   : > { %5771 = shalt.err (!%p5768_p3)
}
 0x714   : > { %s6805_s7 = sld [smem:[#allocation30_spill]] }
 0x71a   : > { %s5772_s17 = scalar_lea.hbm %s6805_s7, 512 }
 0x71b   : > { %p5773_p2 = scmp.ne.s32.totalorder %s6805_s7, %s5772_s17  ;;  %p5778_p6 = scmp.lt.u32.totalorder %s5772_s17, %s6805_s7 }
 0x71d   : > { %p5774_p13 = pnand %p5773_p2, %p4878_p7 }
 0x71f   : > { %p5775_p0 = pneg %p5774_p13 }
 0x721   : > { %p5780_p8 = pnand %p5778_p6, %p5775_p0 }
 0x723   : > { %5783 = shalt.err (!%p5780_p8)
}
 0x724   : > { %4847 = dma.vmem_to_hbm [thread:$0]  (%p4878_p7), %s4136_s3, 512, %s6805_s7, [#allocation14], %s5874_s26, %s5874_s26, %s5875_s13  }
 0x725   : > { %5825 = dma.done.wait (%p4878_p7), [#allocation5], 4096  }
 0x726   : > { %5827 = vsyncadd (%p4878_p7), [#allocation5], 4294963200 }
 0x727   : > { %5829 = dma.done.wait (%p4878_p7), [#allocation14], 1024  }
 0x728   : > { %5831 = vsyncadd (%p4878_p7), [#allocation14], 4294966272 }
 0x729 PF: > { %s31_s22 = sadd.s32 1, %s5854_s22   ;;  %s6806_s17 = smov %s5838_s18 }
 0x72a   : > { %p28_p11 = scmp.ge.s32.totalorder %s31_s22, 4   ;;  %s6807_s18 = smov %s5842_s19 }
 0x72b   : > { %s6808_s19 = smov %s6100_s15  ;;  %s6809_s20 = smov %s5850_s21 }
 0x72c   : > { %s6810_s21 = smov %s6812_s6  ;;  %30 = sbr.rel (!%p28_p11) target bundleno = 19 (0x13), region = 145 }
 0x733   :  { %4159 = vsyncpa [#allocation4], 1 }
 0x734   :  { %4161 = vsyncpa [#allocation4 + $0x1], 1 }
 0x735   :  { %4162 = vsyncpa [#allocation7], 1 }
 0x736   :  { %4164 = vsyncpa [#allocation7 + $0x1], 1 }
 0x737   :  { %4165 = vsyncpa [#allocation10], 1 }
 0x738   :  { %4166 = vsyncpa [#allocation5], 1 }
 0x739   :  { %4168 = vsyncpa [#allocation5 + $0x1], 1 }
 0x73a   :  { %4169 = vsyncpa [#allocation14], 1 }

</bundles_post_ra>
